<compile_context>
chip_gen: v6e
topology: v6e:2x2x1
jax: 0.10.0
libtpu: 0.0.40
codegen_flags: <defaults>
</compile_context>

<pallas_src>
import jax
import jax.numpy as jnp
from jax.experimental import pallas as pl
from jax.experimental.pallas import tpu as pltpu  # noqa: F401  (kept for TPU-specific tuning hooks)


# ----------------------------------------------------------------------------
# Pallas kernels
# ----------------------------------------------------------------------------
def _branch_kernel(xcol_ref, wx_ref, wm_ref, mask_ref, bias_ref,
                   scale_ref, shift_ref, o_ref):
    """Fused inception-branch stage.

    xcol : (25, N)  5x5 im2col of the single-channel input (zero padded), N=B*H*W
    wx   : (30, 25) packed branch weights applied to xcol
    wm   : (30, 1)  maxpool-branch 1x1 weights (rows 0..4), zeros elsewhere
    mask : (25, N)  0 at valid 3x3-maxpool taps, -1e30 elsewhere
    bias : (30, N)  precomputed bias map (folded 1x1 biases + conv biases,
                    border-correct)
    scale/shift : (30, 1) BatchNorm2d(30) inference affine
    out  : (30, N)  = bn2(relu(concat(branches)))
    """
    xcol = xcol_ref[...]                                                # (25, N)
    # MaxPool2d(kernel=3, stride=1, padding=1) of the raw input (torch pads
    # with -inf for max-pool; the additive -1e30 mask reproduces that):
    mp = jnp.max(xcol + mask_ref[...], axis=0, keepdims=True)           # (1, N)
    z = jnp.dot(wx_ref[...], xcol, preferred_element_type=jnp.float32)  # (30, N)
    z = z + wm_ref[...] * mp + bias_ref[...]
    z = jnp.maximum(z, 0.0)                                             # ReLU
    o_ref[...] = (z * scale_ref[...] + shift_ref[...]).astype(o_ref.dtype)


def _convpost_pool_kernel(a_ref, w_ref, b_ref, scale_ref, shift_ref, o_ref):
    """conv_post (3x3, 30->60) + ReLU + BN3 affine + MaxPool2d(2,2), lane-dense.

    a_ref : (4, 270, N)  im2col columns grouped by 2x2 pooling-window offset,
                         columns ordered (b, ho, wo), N = B*(H/2)*(W/2)
    w_ref : (60, 270)    conv_post weight
    o_ref : (60, N)      pooled output
    """
    w = w_ref[...]
    bias = b_ref[...]
    scale = scale_ref[...]
    shift = shift_ref[...]
    res = None
    for q in range(4):  # the four pixels of each 2x2 pooling window
        acc = jnp.dot(w, a_ref[q], preferred_element_type=jnp.float32)  # (60, N)
        y = jnp.maximum(acc + bias, 0.0) * scale + shift                # ReLU + BN3
        res = y if res is None else jnp.maximum(res, y)                 # 2x2 max-pool
    o_ref[...] = res.astype(o_ref.dtype)


def _matmul_bias_kernel(a_ref, w_ref, b_ref, o_ref):
    acc = jnp.dot(a_ref[...], w_ref[...], preferred_element_type=jnp.float32)
    o_ref[...] = (acc + b_ref[...]).astype(o_ref.dtype)


# ----------------------------------------------------------------------------
# pallas_call wrappers (all single-program; every operand fits VMEM easily)
# ----------------------------------------------------------------------------
def branch_stage(xcol, wx, wm, mp_mask, bias_map, scale2, shift2):
    n = xcol.shape[1]
    return pl.pallas_call(
        _branch_kernel,
        out_shape=jax.ShapeDtypeStruct((30, n), jnp.float32),
    )(xcol, wx, wm, mp_mask, bias_map, scale2, shift2)


def convpost_pool_stage(acp, wpost, bpost, scale3, shift3):
    n = acp.shape[2]
    cout = wpost.shape[0]                       # 60
    return pl.pallas_call(
        _convpost_pool_kernel,
        out_shape=jax.ShapeDtypeStruct((cout, n), jnp.float32),
    )(acp, wpost, bpost, scale3, shift3)


def linear(a, w, b):
    """a: (M, K), w: (K, N), b: (1, N) -> (M, N). Tiny after the l1@l2 fold."""
    M = a.shape[0]
    N = w.shape[1]
    return pl.pallas_call(
        _matmul_bias_kernel,
        out_shape=jax.ShapeDtypeStruct((M, N), a.dtype),
    )(a, w, b)


# ----------------------------------------------------------------------------
# JAX glue (tiny tensors only)
# ----------------------------------------------------------------------------
def _im2col5(img):
    """img: (B, H, W) -> (25, B*H*W). Zero-padded 5x5 patches, tap t = ky*5+kx
    (input offset (ky-2, kx-2)). Column order = (b, h, w)."""
    B, H, W = img.shape
    xp = jnp.pad(img, ((0, 0), (2, 2), (2, 2)))
    taps = [xp[:, ky:ky + H, kx:kx + W] for ky in range(5) for kx in range(5)]
    return jnp.stack(taps, axis=0).reshape(25, B * H * W)


def _convpost_cols(z, B, H, W):
    """z: (30, B*H*W) cols (b,h,w) -> (4, 270, B*(H/2)*(W/2)) im2col columns for
    conv_post, grouped by 2x2 pooling-window offset q = dy*2+dx, columns ordered
    (b, ho, wo) so the kernel output is lane-dense (last dim B*S)."""
    z4 = z.reshape(30, B, H, W)
    zp = jnp.pad(z4, ((0, 0), (0, 0), (1, 1), (1, 1)))
    taps = [zp[:, :, ty:ty + H, tx:tx + W]
            for ty in range(3) for tx in range(3)]          # 9 x (30, B, H, W)
    p = jnp.stack(taps, axis=1)                             # (30, 9, B, H, W)
    p = p.reshape(270, B, H // 2, 2, W // 2, 2)             # h = ho*2+dy, w = wo*2+dx
    p = p.transpose(3, 5, 0, 1, 2, 4)                       # (dy, dx, 270, B, ho, wo)
    return p.reshape(4, 270, B * (H // 2) * (W // 2))


# ----------------------------------------------------------------------------
# Parameters: raw (torch-layout) init + packing/folding
# ----------------------------------------------------------------------------
def init_raw_params(key, length):
    ks = jax.random.split(key, 32)
    it = iter(range(32))

    def nrm(shape, s=0.1):
        return jax.random.normal(ks[next(it)], shape, jnp.float32) * s

    p = {}
    p['w112'] = nrm((5, 1, 1, 1));  p['b112'] = nrm((5,))
    p['w121'] = nrm((5, 1, 1, 1));  p['b121'] = nrm((5,))
    p['w122'] = nrm((10, 5, 3, 3)); p['b122'] = nrm((10,))
    p['w131'] = nrm((5, 1, 1, 1));  p['b131'] = nrm((5,))
    p['w132'] = nrm((10, 5, 5, 5)); p['b132'] = nrm((10,))
    p['w14']  = nrm((5, 1, 1, 1));  p['b14']  = nrm((5,))
    p['bn2'] = (1.0 + nrm((30,)), nrm((30,)), nrm((30,)),
                1.0 + jnp.abs(nrm((30,))))
    p['wpost'] = nrm((60, 30, 3, 3)); p['bpost'] = nrm((60,))
    p['bn3'] = (1.0 + nrm((60,)), nrm((60,)), nrm((60,)),
                1.0 + jnp.abs(nrm((60,))))
    d1 = length * length * 60 // 4
    d2 = length * length * 30 // 4
    d3 = length * length // 4
    p['w_l1'] = nrm((d2, d1), 0.02); p['b_l1'] = nrm((d2,))
    p['w_l2'] = nrm((d3, d2), 0.02); p['b_l2'] = nrm((d3,))
    return p


def pack_params(raw, length, eps=1e-5):
    """Fold the 1x1 convs, conv biases, BN affines, the w_l1@w_l2 product, and
    weight transposes into kernel-ready tensors (one-time, at init).
    Batch-independent: bias_map / mp_mask are per-image."""
    H = W = length

    w112 = raw['w112'].reshape(5); b112 = raw['b112']
    w121 = raw['w121'].reshape(5); b121 = raw['b121']
    w122 = raw['w122'];            b122 = raw['b122']
    w131 = raw['w131'].reshape(5); b131 = raw['b131']
    w132 = raw['w132'];            b132 = raw['b132']
    w14  = raw['w14'].reshape(5);  b14  = raw['b14']

    # branch2: a 3x3 conv with pad 1 == a 5x5 conv with pad 2 using the 3x3
    # kernel zero-padded to the center of a 5x5 kernel.
    w122_5 = jnp.pad(w122, ((0, 0), (0, 0), (1, 1), (1, 1)))        # (10,5,5,5)
    wx2 = jnp.einsum('oihw,i->ohw', w122_5, w121).reshape(10, 25)   # fold conv1_2_1 weight
    wv2 = jnp.einsum('oihw,i->ohw', w122_5, b121).reshape(10, 25)   # fold conv1_2_1 bias
    wx3 = jnp.einsum('oihw,i->ohw', w132, w131).reshape(10, 25)     # fold conv1_3_1 weight
    wv3 = jnp.einsum('oihw,i->ohw', w132, b131).reshape(10, 25)     # fold conv1_3_1 bias
    wx4 = jnp.zeros((5, 25), jnp.float32).at[:, 12].set(w14)        # 1x1 = center tap

    z5 = jnp.zeros((5, 25), jnp.float32)
    W_x = jnp.concatenate([z5, wx2, wx3, wx4], axis=0)              # (30, 25)
    W_v = jnp.concatenate([z5, wv2, wv3, z5], axis=0)               # (30, 25)
    b_cat = jnp.concatenate([b112, b122, b132, b14])                # (30,)
    W_m = jnp.concatenate([w112, jnp.zeros((25,), jnp.float32)]).reshape(30, 1)

    # per-image validity im2col (same column ordering as the runtime im2col):
    vcol = _im2col5(jnp.ones((1, H, W), jnp.float32))                # (25, H*W)
    # border-correct bias map: folded 1x1 biases only act where the tap is valid
    bias_map = W_v @ vcol + b_cat[:, None]                           # (30, H*W)
    # additive mask selecting the valid 3x3 taps for the in-kernel maxpool
    in3x3 = jnp.zeros((5, 5), jnp.float32).at[1:4, 1:4].set(1.0).reshape(25, 1)
    mp_mask = jnp.where((vcol * in3x3) > 0.5, 0.0, -1e30)            # (25, H*W)

    g2, be2, mu2, va2 = raw['bn2']
    scale2 = g2 / jnp.sqrt(va2 + eps); shift2 = be2 - mu2 * scale2
    g3, be3, mu3, va3 = raw['bn3']
    scale3 = g3 / jnp.sqrt(va3 + eps); shift3 = be3 - mu3 * scale3

    # Fold linear1 @ linear2 (no nonlinearity between them in the reference
    # module; Dropout2d is identity here). Exact up to f32 rounding.
    w1t = raw['w_l1'].T                                  # (3840, 1920)
    w2t = raw['w_l2'].T                                  # (1920, 64)
    w_fold = w1t @ w2t                                   # (3840, 64)
    b_fold = raw['b_l1'] @ w2t + raw['b_l2']             # (64,)

    return dict(
        W_x=W_x, W_m=W_m, mp_mask=mp_mask, bias_map=bias_map,
        scale2=scale2.reshape(30, 1), shift2=shift2.reshape(30, 1),
        wpost=raw['wpost'].reshape(60, 270), bpost=raw['bpost'].reshape(60, 1),
        scale3=scale3.reshape(60, 1), shift3=shift3.reshape(60, 1),
        w_fold=w_fold, b_fold=b_fold.reshape(1, -1),
    )


# ----------------------------------------------------------------------------
# Forward pass
# ----------------------------------------------------------------------------
def inception_forward(x_nchw, p):
    B, C, H, W = x_nchw.shape                     # C == 1
    xcol = _im2col5(x_nchw.reshape(B, H, W))      # (25, B*H*W), cols (b,h,w)

    # per-image maps broadcast across batch (tiny XLA tile, keeps params
    # batch-independent):
    bias_map = jnp.tile(p['bias_map'], (1, B))    # (30, B*H*W)
    mp_mask = jnp.tile(p['mp_mask'], (1, B))      # (25, B*H*W)

    # inception branches + concat + ReLU + BN2 affine, fused:
    z = branch_stage(xcol, p['W_x'], p['W_m'], mp_mask, bias_map,
                     p['scale2'], p['shift2'])    # (30, B*H*W)
    # TODO(synk): Dropout2d(0.1) is stochastic; identity here (inference semantics).

    # conv_post + ReLU + BN3 affine + MaxPool2d(2,2), fused, lane-dense output:
    acp = _convpost_cols(z, B, H, W)              # (4, 270, B*S), S = H*W/4
    pooled = convpost_pool_stage(acp, p['wpost'], p['bpost'],
                                 p['scale3'], p['shift3'])   # (60, B*S)
    # TODO(synk): Dropout2d(0.1) is stochastic; identity here (inference semantics).

    # recover torch's NCHW flatten order (tiny 30 KB transpose):
    S = (H // 2) * (W // 2)
    flat = pooled.reshape(60, B, S).transpose(1, 0, 2).reshape(B, 60 * S)

    # folded linear1+linear2 (single ~1 MB weight stream):
    out = linear(flat, p['w_fold'], p['b_fold'])  # (B, H*W/4)
    return out


# ----------------------------------------------------------------------------
# Main
# ----------------------------------------------------------------------------
if __name__ == "__main__":
    length = 16
    batch = 2
    key = jax.random.PRNGKey(0)
    kx, kp = jax.random.split(key)
    x = jax.random.normal(kx, (batch, 1, length, length), jnp.float32)  # NCHW

    raw = init_raw_params(kp, length)
    params = pack_params(raw, length)

    out = jax.jit(inception_forward)(x, params)
    out = jax.block_until_ready(out)
    assert out.shape == (batch, length * length // 4), out.shape
    assert bool(jnp.all(jnp.isfinite(out)))
    print("KERNEL_OK")
</pallas_src>

<mosaic_0001>
module attributes {stable_mosaic.version = 11 : i64} {
  func.func @_branch_kernel(%arg0: memref<25x512xf32, #tpu.memory_space<vmem>>, %arg1: memref<30x25xf32, #tpu.memory_space<vmem>>, %arg2: memref<30x1xf32, #tpu.memory_space<vmem>>, %arg3: memref<25x512xf32, #tpu.memory_space<vmem>>, %arg4: memref<30x512xf32, #tpu.memory_space<vmem>>, %arg5: memref<30x1xf32, #tpu.memory_space<vmem>>, %arg6: memref<30x1xf32, #tpu.memory_space<vmem>>, %arg7: memref<30x512xf32, #tpu.memory_space<vmem>>) attributes {dimension_semantics = [], scalar_prefetch = 0 : i64, scratch_operands = 0 : i64, tpu.core_type = #tpu.core_type<tc>} {
    %c0 = arith.constant 0 : index
    %c0_0 = arith.constant 0 : index
    %0 = vector.load %arg0[%c0, %c0_0] : memref<25x512xf32, #tpu.memory_space<vmem>>, vector<25x512xf32>
    %c0_1 = arith.constant 0 : index
    %c0_2 = arith.constant 0 : index
    %1 = vector.load %arg3[%c0_1, %c0_2] : memref<25x512xf32, #tpu.memory_space<vmem>>, vector<25x512xf32>
    %2 = vector.shape_cast %1 : vector<25x512xf32> to vector<25x512xf32>
    %3 = arith.addf %0, %2 : vector<25x512xf32>
    %cst = arith.constant dense<0xFF800000> : vector<512xf32>
    %4 = vector.multi_reduction <maximumf>, %3, %cst [0] : vector<25x512xf32> to vector<512xf32>
    %5 = vector.shape_cast %4 : vector<512xf32> to vector<1x512xf32>
    %c0_3 = arith.constant 0 : index
    %c0_4 = arith.constant 0 : index
    %6 = vector.load %arg1[%c0_3, %c0_4] : memref<30x25xf32, #tpu.memory_space<vmem>>, vector<30x25xf32>
    %cst_5 = arith.constant dense<0.000000e+00> : vector<30x512xf32>
    %7 = tpu.matmul %6, %0, %cst_5 {dimension_numbers = #tpu.dot_dimension_numbers<[1], [0], [0], [1], [0, 0, 1, 1], [], []>} : vector<30x25xf32>, vector<25x512xf32>, vector<30x512xf32> -> vector<30x512xf32>
    %c0_6 = arith.constant 0 : index
    %c0_7 = arith.constant 0 : index
    %8 = vector.load %arg2[%c0_6, %c0_7] : memref<30x1xf32, #tpu.memory_space<vmem>>, vector<30x1xf32>
    %9 = vector.broadcast %8 : vector<30x1xf32> to vector<30x512xf32>
    %10 = vector.broadcast %5 : vector<1x512xf32> to vector<30x512xf32>
    %11 = arith.mulf %9, %10 : vector<30x512xf32>
    %12 = arith.addf %7, %11 : vector<30x512xf32>
    %c0_8 = arith.constant 0 : index
    %c0_9 = arith.constant 0 : index
    %13 = vector.load %arg4[%c0_8, %c0_9] : memref<30x512xf32, #tpu.memory_space<vmem>>, vector<30x512xf32>
    %14 = arith.addf %12, %13 : vector<30x512xf32>
    %cst_10 = arith.constant 0.000000e+00 : f32
    %15 = vector.broadcast %cst_10 : f32 to vector<30x512xf32>
    %16 = arith.maximumf %14, %15 : vector<30x512xf32>
    %c0_11 = arith.constant 0 : index
    %c0_12 = arith.constant 0 : index
    %17 = vector.load %arg5[%c0_11, %c0_12] : memref<30x1xf32, #tpu.memory_space<vmem>>, vector<30x1xf32>
    %18 = vector.broadcast %17 : vector<30x1xf32> to vector<30x512xf32>
    %19 = arith.mulf %16, %18 : vector<30x512xf32>
    %c0_13 = arith.constant 0 : index
    %c0_14 = arith.constant 0 : index
    %20 = vector.load %arg6[%c0_13, %c0_14] : memref<30x1xf32, #tpu.memory_space<vmem>>, vector<30x1xf32>
    %21 = vector.broadcast %20 : vector<30x1xf32> to vector<30x512xf32>
    %22 = arith.addf %19, %21 : vector<30x512xf32>
    %c0_15 = arith.constant 0 : index
    %c0_16 = arith.constant 0 : index
    %23 = vector.load %arg7[%c0_15, %c0_16] : memref<30x512xf32, #tpu.memory_space<vmem>>, vector<30x512xf32>
    tpu.vector_store %arg7[%c0_15, %c0_16], %22 {strides = array<i32>} : memref<30x512xf32, #tpu.memory_space<vmem>>, vector<30x512xf32>,
    return
  }
}

module attributes {stable_mosaic.version = 11 : i64} {
  func.func @_convpost_pool_kernel(%arg0: memref<4x270x128xf32, #tpu.memory_space<vmem>>, %arg1: memref<60x270xf32, #tpu.memory_space<vmem>>, %arg2: memref<60x1xf32, #tpu.memory_space<vmem>>, %arg3: memref<60x1xf32, #tpu.memory_space<vmem>>, %arg4: memref<60x1xf32, #tpu.memory_space<vmem>>, %arg5: memref<60x128xf32, #tpu.memory_space<vmem>>) attributes {dimension_semantics = [], scalar_prefetch = 0 : i64, scratch_operands = 0 : i64, tpu.core_type = #tpu.core_type<tc>} {
    %c0 = arith.constant 0 : index
    %c0_0 = arith.constant 0 : index
    %0 = vector.load %arg1[%c0, %c0_0] : memref<60x270xf32, #tpu.memory_space<vmem>>, vector<60x270xf32>
    %c0_1 = arith.constant 0 : index
    %c0_2 = arith.constant 0 : index
    %1 = vector.load %arg2[%c0_1, %c0_2] : memref<60x1xf32, #tpu.memory_space<vmem>>, vector<60x1xf32>
    %c0_3 = arith.constant 0 : index
    %c0_4 = arith.constant 0 : index
    %2 = vector.load %arg3[%c0_3, %c0_4] : memref<60x1xf32, #tpu.memory_space<vmem>>, vector<60x1xf32>
    %c0_5 = arith.constant 0 : index
    %c0_6 = arith.constant 0 : index
    %3 = vector.load %arg4[%c0_5, %c0_6] : memref<60x1xf32, #tpu.memory_space<vmem>>, vector<60x1xf32>
    %c0_7 = arith.constant 0 : index
    %c0_8 = arith.constant 0 : index
    %c0_9 = arith.constant 0 : index
    %4 = vector.load %arg0[%c0_7, %c0_8, %c0_9] : memref<4x270x128xf32, #tpu.memory_space<vmem>>, vector<1x270x128xf32>
    %5 = vector.shape_cast %4 : vector<1x270x128xf32> to vector<270x128xf32>
    %cst = arith.constant dense<0.000000e+00> : vector<60x128xf32>
    %6 = tpu.matmul %0, %5, %cst {dimension_numbers = #tpu.dot_dimension_numbers<[1], [0], [0], [1], [0, 0, 1, 1], [], []>} : vector<60x270xf32>, vector<270x128xf32>, vector<60x128xf32> -> vector<60x128xf32>
    %7 = vector.broadcast %1 : vector<60x1xf32> to vector<60x128xf32>
    %8 = arith.addf %6, %7 : vector<60x128xf32>
    %cst_10 = arith.constant 0.000000e+00 : f32
    %9 = vector.broadcast %cst_10 : f32 to vector<60x128xf32>
    %10 = arith.maximumf %8, %9 : vector<60x128xf32>
    %11 = vector.broadcast %2 : vector<60x1xf32> to vector<60x128xf32>
    %12 = arith.mulf %10, %11 : vector<60x128xf32>
    %13 = vector.broadcast %3 : vector<60x1xf32> to vector<60x128xf32>
    %14 = arith.addf %12, %13 : vector<60x128xf32>
    %c1 = arith.constant 1 : index
    %c0_11 = arith.constant 0 : index
    %c0_12 = arith.constant 0 : index
    %15 = vector.load %arg0[%c1, %c0_11, %c0_12] : memref<4x270x128xf32, #tpu.memory_space<vmem>>, vector<1x270x128xf32>
    %16 = vector.shape_cast %15 : vector<1x270x128xf32> to vector<270x128xf32>
    %cst_13 = arith.constant dense<0.000000e+00> : vector<60x128xf32>
    %17 = tpu.matmul %0, %16, %cst_13 {dimension_numbers = #tpu.dot_dimension_numbers<[1], [0], [0], [1], [0, 0, 1, 1], [], []>} : vector<60x270xf32>, vector<270x128xf32>, vector<60x128xf32> -> vector<60x128xf32>
    %18 = vector.broadcast %1 : vector<60x1xf32> to vector<60x128xf32>
    %19 = arith.addf %17, %18 : vector<60x128xf32>
    %cst_14 = arith.constant 0.000000e+00 : f32
    %20 = vector.broadcast %cst_14 : f32 to vector<60x128xf32>
    %21 = arith.maximumf %19, %20 : vector<60x128xf32>
    %22 = vector.broadcast %2 : vector<60x1xf32> to vector<60x128xf32>
    %23 = arith.mulf %21, %22 : vector<60x128xf32>
    %24 = vector.broadcast %3 : vector<60x1xf32> to vector<60x128xf32>
    %25 = arith.addf %23, %24 : vector<60x128xf32>
    %26 = arith.maximumf %14, %25 : vector<60x128xf32>
    %c2 = arith.constant 2 : index
    %c0_15 = arith.constant 0 : index
    %c0_16 = arith.constant 0 : index
    %27 = vector.load %arg0[%c2, %c0_15, %c0_16] : memref<4x270x128xf32, #tpu.memory_space<vmem>>, vector<1x270x128xf32>
    %28 = vector.shape_cast %27 : vector<1x270x128xf32> to vector<270x128xf32>
    %cst_17 = arith.constant dense<0.000000e+00> : vector<60x128xf32>
    %29 = tpu.matmul %0, %28, %cst_17 {dimension_numbers = #tpu.dot_dimension_numbers<[1], [0], [0], [1], [0, 0, 1, 1], [], []>} : vector<60x270xf32>, vector<270x128xf32>, vector<60x128xf32> -> vector<60x128xf32>
    %30 = vector.broadcast %1 : vector<60x1xf32> to vector<60x128xf32>
    %31 = arith.addf %29, %30 : vector<60x128xf32>
    %cst_18 = arith.constant 0.000000e+00 : f32
    %32 = vector.broadcast %cst_18 : f32 to vector<60x128xf32>
    %33 = arith.maximumf %31, %32 : vector<60x128xf32>
    %34 = vector.broadcast %2 : vector<60x1xf32> to vector<60x128xf32>
    %35 = arith.mulf %33, %34 : vector<60x128xf32>
    %36 = vector.broadcast %3 : vector<60x1xf32> to vector<60x128xf32>
    %37 = arith.addf %35, %36 : vector<60x128xf32>
    %38 = arith.maximumf %26, %37 : vector<60x128xf32>
    %c3 = arith.constant 3 : index
    %c0_19 = arith.constant 0 : index
    %c0_20 = arith.constant 0 : index
    %39 = vector.load %arg0[%c3, %c0_19, %c0_20] : memref<4x270x128xf32, #tpu.memory_space<vmem>>, vector<1x270x128xf32>
    %40 = vector.shape_cast %39 : vector<1x270x128xf32> to vector<270x128xf32>
    %cst_21 = arith.constant dense<0.000000e+00> : vector<60x128xf32>
    %41 = tpu.matmul %0, %40, %cst_21 {dimension_numbers = #tpu.dot_dimension_numbers<[1], [0], [0], [1], [0, 0, 1, 1], [], []>} : vector<60x270xf32>, vector<270x128xf32>, vector<60x128xf32> -> vector<60x128xf32>
    %42 = vector.broadcast %1 : vector<60x1xf32> to vector<60x128xf32>
    %43 = arith.addf %41, %42 : vector<60x128xf32>
    %cst_22 = arith.constant 0.000000e+00 : f32
    %44 = vector.broadcast %cst_22 : f32 to vector<60x128xf32>
    %45 = arith.maximumf %43, %44 : vector<60x128xf32>
    %46 = vector.broadcast %2 : vector<60x1xf32> to vector<60x128xf32>
    %47 = arith.mulf %45, %46 : vector<60x128xf32>
    %48 = vector.broadcast %3 : vector<60x1xf32> to vector<60x128xf32>
    %49 = arith.addf %47, %48 : vector<60x128xf32>
    %50 = arith.maximumf %38, %49 : vector<60x128xf32>
    %c0_23 = arith.constant 0 : index
    %c0_24 = arith.constant 0 : index
    %51 = vector.load %arg5[%c0_23, %c0_24] : memref<60x128xf32, #tpu.memory_space<vmem>>, vector<60x128xf32>
    tpu.vector_store %arg5[%c0_23, %c0_24], %50 {strides = array<i32>} : memref<60x128xf32, #tpu.memory_space<vmem>>, vector<60x128xf32>,
    return
  }
}

module attributes {stable_mosaic.version = 11 : i64} {
  func.func @_matmul_bias_kernel(%arg0: memref<2x3840xf32, #tpu.memory_space<vmem>>, %arg1: memref<3840x64xf32, #tpu.memory_space<vmem>>, %arg2: memref<1x64xf32, #tpu.memory_space<vmem>>, %arg3: memref<2x64xf32, #tpu.memory_space<vmem>>) attributes {dimension_semantics = [], scalar_prefetch = 0 : i64, scratch_operands = 0 : i64, tpu.core_type = #tpu.core_type<tc>} {
    %c0 = arith.constant 0 : index
    %c0_0 = arith.constant 0 : index
    %0 = vector.load %arg0[%c0, %c0_0] : memref<2x3840xf32, #tpu.memory_space<vmem>>, vector<2x3840xf32>
    %c0_1 = arith.constant 0 : index
    %c0_2 = arith.constant 0 : index
    %1 = vector.load %arg1[%c0_1, %c0_2] : memref<3840x64xf32, #tpu.memory_space<vmem>>, vector<3840x64xf32>
    %cst = arith.constant dense<0.000000e+00> : vector<2x64xf32>
    %2 = tpu.matmul %0, %1, %cst {dimension_numbers = #tpu.dot_dimension_numbers<[1], [0], [0], [1], [0, 0, 1, 1], [], []>} : vector<2x3840xf32>, vector<3840x64xf32>, vector<2x64xf32> -> vector<2x64xf32>
    %c0_3 = arith.constant 0 : index
    %c0_4 = arith.constant 0 : index
    %3 = vector.load %arg2[%c0_3, %c0_4] : memref<1x64xf32, #tpu.memory_space<vmem>>, vector<1x64xf32>
    %4 = vector.broadcast %3 : vector<1x64xf32> to vector<2x64xf32>
    %5 = arith.addf %2, %4 : vector<2x64xf32>
    %c0_5 = arith.constant 0 : index
    %c0_6 = arith.constant 0 : index
    %6 = vector.load %arg3[%c0_5, %c0_6] : memref<2x64xf32, #tpu.memory_space<vmem>>, vector<2x64xf32>
    tpu.vector_store %arg3[%c0_5, %c0_6], %5 {strides = array<i32>} : memref<2x64xf32, #tpu.memory_space<vmem>>, vector<2x64xf32>,
    return
  }
}

</mosaic_0001>

<bundles_post_ra>
// kernel: inception_forward.3
= control target key start
LH: loop header
LB: loop body
LE: loop exit
PB: predicated region body
PF: predicated region fallthrough
CT: control target
= control target key end

     0   :  { %12 = vsyncpa [#allocation3], 0  ;;  %s566_s24 = smov [#allocation2]   ;;  %s923_s0 = inlined_call_operand.vmem [shape: f32[25,512], index: 0, kind: input, shape index: {}]   ;;  %s924_s1 = inlined_call_operand.hbm [shape: f32[30,25], index: 1, kind: input, shape index: {}]   ;;  %s925_s2 = inlined_call_operand.vmem [shape: f32[30,1], index: 2, kind: input, shape index: {}]   ;;  %s926_s3 = inlined_call_operand.vmem [shape: f32[25,512], index: 3, kind: input, shape index: {}]   ;;  %s927_s4 = inlined_call_operand.vmem [shape: f32[30,512], index: 4, kind: input, shape index: {}]   ;;  %s928_s5 = inlined_call_operand.vmem [shape: f32[30,1], index: 5, kind: input, shape index: {}]   ;;  %s929_s6 = inlined_call_operand.vmem [shape: f32[30,1], index: 6, kind: input, shape index: {}]   ;;  %s930_s7 = inlined_call_operand.vmem [shape: f32[30,512], index: 7, kind: output, shape index: {}]  }
   0x1   :  { %s20_s25 = sshll.u32 %s566_s24, 4  ;;  %s21_s25 = int_to_ptr.vmem [resolvable:$true] %s20_s25 }
   0x2   :  { %s552_s26 = scalar_lea.vmem %s21_s25, 512  ;;  %p557_p1 = scmp.lt.s32.totalorder %s21_s25, %s21_s25 }
   0x3   :  { %p553_p0 = scmp.ne.s32.totalorder %s21_s25, %s552_s26  ;;  %p558_p2 = scmp.lt.s32.totalorder %s552_s26, %s552_s26 }
   0x5   :  { %p559_p3 = por %p558_p2, %p557_p1 }
   0x7   :  { %p560_p4 = pnand %p559_p3, %p553_p0 }
   0x9   :  { %563 = shalt.err (!%p560_p4)
}
   0xa   :  { %s567_s27 = smov 128   ;;  %s568_s28 = smov 8  }
   0xb   :  { %26 = dma.hbm_to_vmem [thread:$0]  %s924_s1, 512, %s21_s25, [#allocation3], %s567_s27, %s567_s27, %s568_s28  }
   0xc   :  { %564 = dma.done.wait [#allocation3], 512  }
   0xd   :  { %565 = vsyncadd [#allocation3], 4294966784  ;;  %v569_v0 = vmov 0.0   ;;  %v570_v1 = vmov 0   ;;  %vm90_vm0 = vcmask 1040384   ;;  %v49_v13 = vld [vmem:[%s923_s0 + $0x48] sm:$0xff] }
   0xe   :  { %262 = vmatprep.mubr.f32.mxu0 %v569_v0  ;;  %351 = vmatprep.mubr.f32.mxu1 %v569_v0  ;;  %v53_v2 = vld [vmem:[%s923_s0 + $0x68] sm:$0x1]  ;;  %v55_v4 = vld [vmem:[%s923_s0 + $0x78] sm:$0x1]  ;;  %v52_v7 = vld [vmem:[%s923_s0 + $0x60] sm:$0x1] }
   0xf   :  { %543 = vset.pattern.permute.xlu1 %v570_v1  ;;  %542 = vset.pattern.permute.xlu0 %v570_v1  ;;  %v69_v3 = vld [vmem:[%s926_s3 + $0x68] sm:$0x1]  ;;  %v71_v6 = vld [vmem:[%s926_s3 + $0x78] sm:$0x1]  ;;  %v68_v8 = vld [vmem:[%s926_s3 + $0x60] sm:$0x1] }
  0x10   :  { %v85_v5 = vadd.f32 %v69_v3, %v53_v2  ;;  %525 = vmatprep.subr.msk.mxu0 %vm90_vm0, %v53_v2  ;;  %531 = vmatprep.subr.msk.mxu1 %vm90_vm0, %v55_v4  ;;  %v87_v9 = vadd.f32 %v71_v6, %v55_v4  ;;  %v84_v10 = vadd.f32 %v68_v8, %v52_v7  ;;  %v54_v11 = vld [vmem:[%s923_s0 + $0x70] sm:$0x1]  ;;  %v51_v16 = vld [vmem:[%s923_s0 + $0x58] sm:$0xff]  ;;  %v65_v19 = vld [vmem:[%s926_s3 + $0x48] sm:$0xff]  ;;  %vm173_vm1 = vcmask 203776  }
  0x11   :  { %526 = vmatpush1.msk.msra.mxu0 %vm90_vm0, %v52_v7  ;;  %v70_v12 = vld [vmem:[%s926_s3 + $0x70] sm:$0x1]  ;;  %532 = vmatpush1.msk.msra.mxu1 %vm90_vm0, %v54_v11  ;;  %v48_v20 = vld [vmem:[%s923_s0 + $0x40] sm:$0xff]  ;;  %v67_v23 = vld [vmem:[%s926_s3 + $0x58] sm:$0xff]  ;;  %v81_v40 = vadd.f32 %v65_v19, %v49_v13 }
  0x12   :  { %v647_v14 = vsel %vm90_vm0, %v85_v5, -inf  ;;  %v86_v15 = vadd.f32 %v70_v12, %v54_v11  ;;  %224 = vmatprep.subr.mxu0 %v49_v13  ;;  %v654_v17 = vsel %vm90_vm0, %v87_v9, -inf  ;;  %v657_v18 = vsel %vm90_vm0, %v84_v10, -inf  ;;  %313 = vmatprep.subr.mxu1 %v51_v16  ;;  %v50_v21 = vld [vmem:[%s923_s0 + $0x50] sm:$0xff]  ;;  %v64_v24 = vld [vmem:[%s926_s3 + $0x40] sm:$0xff]  ;;  %v45_v25 = vld [vmem:[%s923_s0 + $0x28] sm:$0xff] }
  0x13   :  { %225 = vmatpush1.msra.mxu0 %v48_v20  ;;  %314 = vmatpush1.msra.mxu1 %v50_v21  ;;  %v61_v26 = vld [vmem:[%s926_s3 + $0x28] sm:$0xff]  ;;  %v66_v27 = vld [vmem:[%s926_s3 + $0x50] sm:$0xff]  ;;  %v47_v28 = vld [vmem:[%s923_s0 + $0x38] sm:$0xff]  ;;  %v83_v46 = vadd.f32 %v67_v23, %v51_v16  ;;  %v80_v47 = vadd.f32 %v64_v24, %v48_v20 }
  0x14   :  { %v669_v22 = vsel %vm90_vm0, %v86_v15, -inf  ;;  %226 = vmatprep.subr.mxu0 %v45_v25  ;;  %v63_v29 = vld [vmem:[%s926_s3 + $0x38] sm:$0xff]  ;;  %v44_v30 = vld [vmem:[%s923_s0 + $0x20] sm:$0xff]  ;;  %v77_v31 = vadd.f32 %v61_v26, %v45_v25  ;;  %315 = vmatprep.subr.mxu1 %v47_v28  ;;  %v46_v33 = vld [vmem:[%s923_s0 + $0x30] sm:$0xff]  ;;  %v82_v53 = vadd.f32 %v66_v27, %v50_v21 }
  0x15   :  { %v60_v32 = vld [vmem:[%s926_s3 + $0x20] sm:$0xff]  ;;  %227 = vmatpush1.msra.mxu0 %v44_v30  ;;  %v62_v34 = vld [vmem:[%s926_s3 + $0x30] sm:$0xff]  ;;  %v79_v35 = vadd.f32 %v63_v29, %v47_v28  ;;  %316 = vmatpush1.msra.mxu1 %v46_v33  ;;  %v41_v37 = vld [vmem:[%s923_s0 + $0x8] sm:$0xff] }
  0x16   :  { %v76_v36 = vadd.f32 %v60_v32, %v44_v30  ;;  %v57_v38 = vld [vmem:[%s926_s3 + $0x8] sm:$0xff]  ;;  %v43_v39 = vld [vmem:[%s923_s0 + $0x18] sm:$0xff]  ;;  %v78_v41 = vadd.f32 %v62_v34, %v46_v33  ;;  %228 = vmatprep.subr.mxu0 %v41_v37  ;;  %v40_v44 = vld [vmem:[%s923_s0] sm:$0xff] }
  0x17   :  { %v73_v42 = vadd.f32 %v57_v38, %v41_v37  ;;  %v59_v43 = vld [vmem:[%s926_s3 + $0x18] sm:$0xff]  ;;  %317 = vmatprep.subr.mxu1 %v43_v39  ;;  %v56_v45 = vld [vmem:[%s926_s3] sm:$0xff]  ;;  %229 = vmatpush1.msra.mxu0 %v40_v44  ;;  %v42_v50 = vld [vmem:[%s923_s0 + $0x10] sm:$0xff] }
  0x18   :  { %v75_v48 = vadd.f32 %v59_v43, %v43_v39  ;;  %v72_v49 = vadd.f32 %v56_v45, %v40_v44  ;;  %v58_v51 = vld [vmem:[%s926_s3 + $0x10] sm:$0xff]  ;;  %v129_v52 = vld [vmem:[#allocation2] sm:$0xff]  ;;  %318 = vmatpush1.msra.mxu1 %v42_v50  ;;  %v130_v58 = vld [vmem:[#allocation2 + $0x8] sm:$0xff] }
  0x19   :  { %v99_v54 = vmax.f32 %v73_v42, %v77_v31  ;;  %v74_v55 = vadd.f32 %v58_v51, %v42_v50  ;;  %527 = vmatmul.mubr.msk.f32.vlgmr.msra.gmra.mxu0 %vm173_vm1, %v129_v52  ;;  %533 = vmatmul.mubr.msk.f32.vlgmr.msra.gmra.mxu1 %vm173_vm1, %v129_v52  ;;  %v135_v59 = vld [vmem:[%s925_s2 + $0x10] sm:$0xff]  ;;  %v133_v60 = vld [vmem:[%s925_s2] sm:$0xff]  ;;  %v136_v2 = vld [vmem:[%s925_s2 + $0x18] sm:$0x3f] }
  0x1a   :  { %v119_v56 = vmax.f32 %v75_v48, %v79_v35  ;;  %v88_v57 = vmax.f32 %v72_v49, %v76_v36  ;;  %268 = vmatprep.mubr.f32.mxu0 %v569_v0  ;;  %357 = vmatprep.mubr.f32.mxu1 %v569_v0  ;;  %v134_v5 = vld [vmem:[%s925_s2 + $0x8] sm:$0xff]  ;;  %v131_v8 = vld [vmem:[#allocation2 + $0x10] sm:$0xff]  ;;  %v424_v11 = vld [vmem:[%s928_s5] sm:$0xff] }
  0x1b   :  { %v100_v61 = vmax.f32 %v99_v54, %v81_v40  ;;  %v109_v62 = vmax.f32 %v74_v55, %v78_v41  ;;  %149 = vperm.xlu1 %543, %v135_v59   ;;  %139 = vperm.xlu0 %542, %v133_v60   ;;  %v425_v10 = vld [vmem:[%s928_s5 + $0x8] sm:$0xff]  ;;  %v132_v12 = vld [vmem:[#allocation2 + $0x18] sm:$0x3f]  ;;  %v464_v15 = vld [vmem:[%s929_s6] sm:$0xff] }
  0x1c   :  { %v120_v63 = vmax.f32 %v119_v56, %v83_v46  ;;  %v89_v1 = vmax.f32 %v88_v57, %v80_v47  ;;  %v427_v13 = vld [vmem:[%s928_s5 + $0x18] sm:$0x3f]  ;;  %v376_v52 = vld [vmem:[%s927_s4] sm:$0xff]  ;;  %v378_v56 = vld [vmem:[%s927_s4 + $0x10] sm:$0xff] }
  0x1d   :  { %v102_v3 = vmax.f32 %v100_v61, %v647_v14  ;;  %v110_v4 = vmax.f32 %v109_v62, %v82_v53  ;;  %528 = vmatmul.mubr.msk.f32.gmra.mxu0 %vm173_vm1, %v130_v58  ;;  %534 = vmatmul.mubr.msk.f32.gmra.mxu1 %vm173_vm1, %v130_v58  ;;  %v426_v14 = vld [vmem:[%s928_s5 + $0x10] sm:$0xff]  ;;  %v467_v16 = vld [vmem:[%s929_s6 + $0x18] sm:$0x3f] }
  0x1e   :  { %v122_v6 = vmax.f32 %v120_v63, %v654_v17  ;;  %v92_v7 = vmax.f32 %v89_v1, %v657_v18  ;;  %274 = vmatprep.mubr.f32.mxu0 %v569_v0  ;;  %363 = vmatprep.mubr.f32.mxu1 %v569_v0  ;;  %v466_v17 = vld [vmem:[%s929_s6 + $0x10] sm:$0xff]  ;;  %v377_v63 = vld [vmem:[%s927_s4 + $0x8] sm:$0xff] }
  0x1f   :  { %v112_v9 = vmax.f32 %v110_v4, %v669_v22  ;;  %154 = vperm.xlu1 %543, %v136_v2   ;;  %144 = vperm.xlu0 %542, %v134_v5   ;;  %v103_v20 = vrot.slane %v102_v3, 4 }
  0x20   :  { %v93_v18 = vrot.slane %v92_v7, 4  ;;  %v123_v21 = vrot.slane %v122_v6, 4 }
  0x21   :  { %529 = vmatmul.mubr.msk.f32.gmra.mxu0 %vm173_vm1, %v131_v8  ;;  %535 = vmatmul.mubr.msk.f32.gmra.mxu1 %vm173_vm1, %v131_v8  ;;  %v113_v19 = vrot.slane %v112_v9, 4  ;;  %v104_v24 = vmax.f32 %v102_v3, %v103_v20 }
  0x22   :  { %280 = vmatprep.mubr.f32.mxu0 %v569_v0  ;;  %369 = vmatprep.mubr.f32.mxu1 %v569_v0  ;;  %v465_v0 = vld [vmem:[%s929_s6 + $0x8] sm:$0xff]  ;;  %v94_v22 = vmax.f32 %v92_v7, %v93_v18  ;;  %v124_v25 = vmax.f32 %v122_v6, %v123_v21  ;;  %v379_v7 = vld [vmem:[%s927_s4 + $0x18] sm:$0xff] }
  0x23   :  { %435 = vperm.xlu1 %543, %v425_v10   ;;  %430 = vperm.xlu0 %542, %v424_v11   ;;  %v114_v23 = vmax.f32 %v112_v9, %v113_v19  ;;  %v105_v28 = vrot.slane %v104_v24, 2  ;;  %v382_v19 = vld [vmem:[%s927_s4 + $0x30] sm:$0xff] }
  0x24   :  { %v95_v26 = vrot.slane %v94_v22, 2  ;;  %v125_v29 = vrot.slane %v124_v25, 2 }
  0x25   :  { %530 = vmatmul.mubr.msk.f32.gmra.mxu0 %vm173_vm1, %v132_v12  ;;  %536 = vmatmul.mubr.msk.f32.gmra.mxu1 %vm173_vm1, %v132_v12  ;;  %v115_v27 = vrot.slane %v114_v23, 2  ;;  %v106_v33 = vmax.f32 %v104_v24, %v105_v28 }
  0x26   :  { %v96_v31 = vmax.f32 %v94_v22, %v95_v26  ;;  %v126_v35 = vmax.f32 %v124_v25, %v125_v29  ;;  %v381_v26 = vld [vmem:[%s927_s4 + $0x28] sm:$0xff] }
  0x27   :  { %445 = vperm.xlu1 %543, %v427_v13   ;;  %440 = vperm.xlu0 %542, %v426_v14   ;;  %v116_v32 = vmax.f32 %v114_v23, %v115_v27  ;;  %v107_v39 = vrot.slane %v106_v33, 1  ;;  %v380_v13 = vld [vmem:[%s927_s4 + $0x20] sm:$0xff] }
  0x28   :  { %v97_v36 = vrot.slane %v96_v31, 1  ;;  %v127_v40 = vrot.slane %v126_v35, 1 }
  0x29   :  { %v117_v38 = vrot.slane %v116_v32, 1  ;;  %v108_v44 = vmax.f32 %v106_v33, %v107_v39  ;;  %v383_v33 = vld [vmem:[%s927_s4 + $0x38] sm:$0xff] }
  0x2a   :  { %v98_v41 = vmax.f32 %v96_v31, %v97_v36  ;;  %v128_v46 = vmax.f32 %v126_v35, %v127_v40 }
  0x2b   :  { %475 = vperm.xlu1 %543, %v465_v0   ;;  %470 = vperm.xlu0 %542, %v464_v15   ;;  %v118_v43 = vmax.f32 %v116_v32, %v117_v38 }
  0x2f   :  { %485 = vperm.xlu1 %543, %v467_v16   ;;  %480 = vperm.xlu0 %542, %v466_v17  }
  0x96   :  { %v140_v30 = vpop.permute.xlu0 %139  ;;  %v150_v34 = vpop.permute.xlu1 %149 }
  0x97   :  { %v157_v47 = vmul.f32 %v140_v30, %v98_v41  ;;  %v159_v48 = vmul.f32 %v140_v30, %v118_v43  ;;  %v158_v49 = vmul.f32 %v140_v30, %v108_v44  ;;  %v160_v53 = vmul.f32 %v140_v30, %v128_v46 }
  0x98   :  { %v165_v58 = vmul.f32 %v150_v34, %v98_v41  ;;  %v792_v59 = vmul.f32 %v150_v34, %v118_v43  ;;  %v799_v2 = vmul.f32 %v150_v34, %v108_v44  ;;  %v801_v3 = vmul.f32 %v150_v34, %v128_v46 }
  0x9a   :  { %v145_v37 = vpop.permute.xlu0 %144  ;;  %v155_v42 = vpop.permute.xlu1 %154 }
  0x9b   :  { %v161_v57 = vmul.f32 %v145_v37, %v98_v41  ;;  %v163_v1 = vmul.f32 %v145_v37, %v118_v43  ;;  %v806_v8 = vmul.f32 %v155_v42, %v98_v41  ;;  %v808_v9 = vmul.f32 %v155_v42, %v118_v43 }
  0x9c   :  { %v813_v14 = vmul.f32 %v155_v42, %v108_v44  ;;  %v815_v0 = vmul.f32 %v155_v42, %v128_v46  ;;  %v162_v20 = vmul.f32 %v145_v37, %v108_v44  ;;  %v164_v27 = vmul.f32 %v145_v37, %v128_v46 }
  0x9e   :  { %v782_v45 = vpop.permute.xlu0 %430  ;;  %v784_v50 = vpop.permute.xlu1 %435 }
  0xa2   :  { %v794_v60 = vpop.permute.xlu0 %440  ;;  %v820_v21 = vpop.permute.xlu1 %445 }
  0xa6   :  { %v471_v34 = vpop.permute.xlu0 %470 }
  0xd9   :  { %v264_v51 = vpop.f32.mrf.mxu0  ;;  %v353_v55 = vpop.f32.mrf.mxu1 }
  0xda   :  { %v265_v54 = vadd.f32 %v264_v51, %v157_v47  ;;  %v354_v61 = vadd.f32 %v353_v55, %v159_v48  ;;  %v384_v51 = vld [vmem:[%s927_s4 + $0x40] sm:$0xff] }
  0xdb   :  { %v266_v62 = vpop.f32.mrf.mxu0  ;;  %v355_v6 = vpop.f32.mrf.mxu1 }
  0xdc   :  { %v392_v4 = vadd.f32 %v376_v52, %v265_v54  ;;  %v267_v5 = vadd.f32 %v266_v62, %v158_v49  ;;  %v394_v10 = vadd.f32 %v378_v56, %v354_v61  ;;  %v356_v11 = vadd.f32 %v355_v6, %v160_v53  ;;  %v476_v61 = vpop.permute.xlu1 %475 }
  0xdd   :  { %v270_v12 = vpop.f32.mrf.mxu0  ;;  %v359_v18 = vpop.f32.mrf.mxu1 }
  0xde   :  { %v408_v15 = vmax.f32 %v392_v4, 0.0  ;;  %v393_v16 = vadd.f32 %v377_v63, %v267_v5  ;;  %v271_v17 = vadd.f32 %v270_v12, %v161_v57  ;;  %v410_v22 = vmax.f32 %v394_v10, 0.0  ;;  %v387_v12 = vld [vmem:[%s927_s4 + $0x58] sm:$0xff] }
  0xdf   :  { %v395_v23 = vadd.f32 %v379_v7, %v356_v11  ;;  %v360_v24 = vadd.f32 %v359_v18, %v163_v1  ;;  %v272_v25 = vpop.f32.mrf.mxu0  ;;  %v361_v32 = vpop.f32.mrf.mxu1  ;;  %v388_v18 = vld [vmem:[%s927_s4 + $0x60] sm:$0x3f] }
  0xe0   :  { %v448_v28 = vmul.f32 %v782_v45, %v408_v15  ;;  %v409_v29 = vmax.f32 %v393_v16, 0.0  ;;  %v396_v30 = vadd.f32 %v380_v13, %v271_v17  ;;  %v273_v31 = vadd.f32 %v272_v25, %v162_v20 }
  0xe1   :  { %v450_v35 = vmul.f32 %v782_v45, %v410_v22  ;;  %v411_v36 = vmax.f32 %v395_v23, 0.0  ;;  %v398_v38 = vadd.f32 %v382_v19, %v360_v24  ;;  %v362_v39 = vadd.f32 %v361_v32, %v164_v27  ;;  %v276_v40 = vpop.f32.mrf.mxu0  ;;  %v365_v44 = vpop.f32.mrf.mxu1  ;;  %v391_v32 = vld [vmem:[%s927_s4 + $0x78] sm:$0x3f] }
  0xe2   :  { %v488_v41 = vadd.f32 %v471_v34, %v448_v28  ;;  %v449_v37 = vmul.f32 %v782_v45, %v409_v29  ;;  %v412_v42 = vmax.f32 %v396_v30, 0.0  ;;  %v397_v43 = vadd.f32 %v381_v26, %v273_v31  ;;  %v389_v28 = vld [vmem:[%s927_s4 + $0x68] sm:$0x3f] }
  0xe3   :  { %v490_v46 = vadd.f32 %v471_v34, %v450_v35  ;;  %v451_v47 = vmul.f32 %v782_v45, %v411_v36  ;;  %v414_v48 = vmax.f32 %v398_v38, 0.0  ;;  %v399_v49 = vadd.f32 %v383_v33, %v362_v39  ;;  %v278_v52 = vpop.f32.mrf.mxu0  ;;  %v386_v45 = vld [vmem:[%s927_s4 + $0x50] sm:$0xff]  ;;  %v367_v57 = vpop.f32.mrf.mxu1 }
  0xe4   :  { %504 = vst [vmem:[%s930_s7] sm:$0xff] %v488_v41  ;;  %v489_v53 = vadd.f32 %v471_v34, %v449_v37  ;;  %v452_v54 = vmul.f32 %v784_v50, %v412_v42  ;;  %v413_v55 = vmax.f32 %v397_v43, 0.0  ;;  %v277_v56 = vadd.f32 %v276_v40, %v165_v58  ;;  %v385_v58 = vld [vmem:[%s927_s4 + $0x48] sm:$0xff]  ;;  %v481_v33 = vpop.permute.xlu0 %480 }
  0xe5   :  { %506 = vst [vmem:[%s930_s7 + $0x10] sm:$0xff] %v490_v46  ;;  %v491_v62 = vadd.f32 %v471_v34, %v451_v47  ;;  %v454_v63 = vmul.f32 %v784_v50, %v414_v48  ;;  %v415_v1 = vmax.f32 %v399_v49, 0.0  ;;  %v366_v4 = vadd.f32 %v365_v44, %v792_v59  ;;  %v282_v5 = vpop.f32.mrf.mxu0  ;;  %v371_v59 = vpop.f32.mrf.mxu1 }
  0xe6   :  { %505 = vst [vmem:[%s930_s7 + $0x8] sm:$0xff] %v489_v53  ;;  %v492_v6 = vadd.f32 %v476_v61, %v452_v54  ;;  %v453_v7 = vmul.f32 %v784_v50, %v413_v55  ;;  %v400_v10 = vadd.f32 %v384_v51, %v277_v56  ;;  %v279_v11 = vadd.f32 %v278_v52, %v799_v2  ;;  %v486_v48 = vpop.permute.xlu1 %485 }
  0xe7   :  { %507 = vst [vmem:[%s930_s7 + $0x18] sm:$0xff] %v491_v62  ;;  %v494_v13 = vadd.f32 %v476_v61, %v454_v63  ;;  %v455_v15 = vmul.f32 %v784_v50, %v415_v1  ;;  %v402_v16 = vadd.f32 %v386_v45, %v366_v4  ;;  %v368_v17 = vadd.f32 %v367_v57, %v801_v3  ;;  %v284_v2 = vpop.f32.mrf.mxu0  ;;  %v390_v50 = vld [vmem:[%s927_s4 + $0x70] sm:$0x3f]  ;;  %v373_v24 = vpop.f32.mrf.mxu1 }
  0xe8   :  { %508 = vst [vmem:[%s930_s7 + $0x20] sm:$0xff] %v492_v6  ;;  %v493_v19 = vadd.f32 %v476_v61, %v453_v7  ;;  %v416_v20 = vmax.f32 %v400_v10, 0.0  ;;  %v401_v22 = vadd.f32 %v385_v58, %v279_v11  ;;  %v283_v23 = vadd.f32 %v282_v5, %v806_v8 }
  0xe9   :  { %510 = vst [vmem:[%s930_s7 + $0x30] sm:$0xff] %v494_v13  ;;  %v495_v3 = vadd.f32 %v476_v61, %v455_v15  ;;  %v418_v25 = vmax.f32 %v402_v16, 0.0  ;;  %v403_v26 = vadd.f32 %v387_v12, %v368_v17  ;;  %v372_v27 = vadd.f32 %v371_v59, %v808_v9 }
  0xea   :  { %509 = vst [vmem:[%s930_s7 + $0x28] sm:$0xff] %v493_v19  ;;  %v456_v8 = vmul.f32 %v794_v60, %v416_v20  ;;  %v417_v29 = vmax.f32 %v401_v22, 0.0  ;;  %v404_v30 = vadd.f32 %v388_v18, %v283_v23  ;;  %v285_v31 = vadd.f32 %v284_v2, %v813_v14 }
  0xeb   :  { %511 = vst [vmem:[%s930_s7 + $0x38] sm:$0xff] %v495_v3  ;;  %v458_v9 = vmul.f32 %v794_v60, %v418_v25  ;;  %v419_v34 = vmax.f32 %v403_v26, 0.0  ;;  %v406_v35 = vadd.f32 %v390_v50, %v372_v27  ;;  %v374_v36 = vadd.f32 %v373_v24, %v815_v0 }
  0xec   :  { %v496_v38 = vadd.f32 %v481_v33, %v456_v8  ;;  %v457_v39 = vmul.f32 %v794_v60, %v417_v29  ;;  %v420_v40 = vmax.f32 %v404_v30, 0.0  ;;  %v405_v14 = vadd.f32 %v389_v28, %v285_v31 }
  0xed   :  { %v498_v41 = vadd.f32 %v481_v33, %v458_v9  ;;  %v459_v37 = vmul.f32 %v794_v60, %v419_v34  ;;  %v422_v42 = vmax.f32 %v406_v35, 0.0  ;;  %v407_v43 = vadd.f32 %v391_v32, %v374_v36 }
  0xee   :  { %512 = vst [vmem:[%s930_s7 + $0x40] sm:$0xff] %v496_v38  ;;  %v497_v44 = vadd.f32 %v481_v33, %v457_v39  ;;  %v460_v46 = vmul.f32 %v820_v21, %v420_v40  ;;  %v421_v47 = vmax.f32 %v405_v14, 0.0 }
  0xef   :  { %514 = vst [vmem:[%s930_s7 + $0x50] sm:$0xff] %v498_v41  ;;  %v499_v0 = vadd.f32 %v481_v33, %v459_v37  ;;  %v462_v49 = vmul.f32 %v820_v21, %v422_v42  ;;  %v423_v51 = vmax.f32 %v407_v43, 0.0 }
  0xf0   :  { %513 = vst [vmem:[%s930_s7 + $0x48] sm:$0xff] %v497_v44  ;;  %v500_v60 = vadd.f32 %v486_v48, %v460_v46  ;;  %v461_v52 = vmul.f32 %v820_v21, %v421_v47 }
  0xf1   :  { %515 = vst [vmem:[%s930_s7 + $0x58] sm:$0xff] %v499_v0  ;;  %v502_v53 = vadd.f32 %v486_v48, %v462_v49  ;;  %v463_v54 = vmul.f32 %v820_v21, %v423_v51 }
  0xf2   :  { %516 = vst [vmem:[%s930_s7 + $0x60] sm:$0x3f] %v500_v60  ;;  %v501_v55 = vadd.f32 %v486_v48, %v461_v52 }
  0xf3   :  { %518 = vst [vmem:[%s930_s7 + $0x70] sm:$0x3f] %v502_v53  ;;  %v503_v56 = vadd.f32 %v486_v48, %v463_v54 }
  0xf4   :  { %517 = vst [vmem:[%s930_s7 + $0x68] sm:$0x3f] %v501_v55 }
  0xf5   :  { %519 = vst [vmem:[%s930_s7 + $0x78] sm:$0x3f] %v503_v56 }
  0xf6   :  { %524 = vsyncpa [#allocation3], 1 }

// kernel: inception_forward.4
= control target key start
LH: loop header
LB: loop body
LE: loop exit
PB: predicated region body
PF: predicated region fallthrough
CT: control target
= control target key end

     0   :  { %v1806_v3 = vmov 0   ;;  %vm167_vm0 = vcmask 1045504   ;;  %vm142_vm1 = vcmask 113664   ;;  %s2909_s0 = inlined_call_operand.vmem [shape: f32[4,270,128], index: 0, kind: input, shape index: {}]   ;;  %s2910_s1 = inlined_call_operand.vmem [shape: f32[60,270], index: 1, kind: input, shape index: {}]   ;;  %s2911_s2 = inlined_call_operand.vmem [shape: f32[60,1], index: 2, kind: input, shape index: {}]   ;;  %s2912_s3 = inlined_call_operand.vmem [shape: f32[60,1], index: 3, kind: input, shape index: {}]   ;;  %s2913_s4 = inlined_call_operand.vmem [shape: f32[60,1], index: 4, kind: input, shape index: {}]   ;;  %s2914_s5 = inlined_call_operand.vmem [shape: f32[60,128], index: 5, kind: output, shape index: {}]  }
   0x1   :  { %v99_v0 = vld [vmem:[%s2909_s0 + $0xf8] sm:$0xff]  ;;  %v1377_v1 = vld [vmem:[%s2909_s0 + $0x208] sm:$0xff]  ;;  %1804 = vset.pattern.permute.xlu0 %v1806_v3  ;;  %1805 = vset.pattern.permute.xlu1 %v1806_v3  ;;  %v98_v5 = vld [vmem:[%s2909_s0 + $0xf0] sm:$0xff] }
   0x2   :  { %v83_v2 = vld [vmem:[%s2909_s0 + $0x78] sm:$0xff]  ;;  %1475 = vmatprep.subr.mxu0 %v99_v0  ;;  %1541 = vmatprep.subr.mxu1 %v1377_v1  ;;  %v1361_v4 = vld [vmem:[%s2909_s0 + $0x188] sm:$0xff]  ;;  %v1376_v6 = vld [vmem:[%s2909_s0 + $0x200] sm:$0xff] }
   0x3   :  { %1476 = vmatpush3.msra.mxu0 %v83_v2  ;;  %1542 = vmatpush3.msra.mxu1 %v1361_v4  ;;  %v82_v7 = vld [vmem:[%s2909_s0 + $0x70] sm:$0xff]  ;;  %v1360_v8 = vld [vmem:[%s2909_s0 + $0x180] sm:$0xff]  ;;  %v97_v9 = vld [vmem:[%s2909_s0 + $0xe8] sm:$0xff] }
   0x4   :  { %1477 = vmatprep.subr.mxu0 %v98_v5  ;;  %1543 = vmatprep.subr.mxu1 %v1376_v6  ;;  %v1375_v10 = vld [vmem:[%s2909_s0 + $0x1f8] sm:$0xff]  ;;  %v81_v11 = vld [vmem:[%s2909_s0 + $0x68] sm:$0xff]  ;;  %v96_v13 = vld [vmem:[%s2909_s0 + $0xe0] sm:$0xff] }
   0x5   :  { %v1359_v12 = vld [vmem:[%s2909_s0 + $0x178] sm:$0xff]  ;;  %1478 = vmatpush3.msra.mxu0 %v82_v7  ;;  %1544 = vmatpush3.msra.mxu1 %v1360_v8  ;;  %v1374_v14 = vld [vmem:[%s2909_s0 + $0x1f0] sm:$0xff]  ;;  %v80_v15 = vld [vmem:[%s2909_s0 + $0x60] sm:$0xff] }
   0x6   :  { %1479 = vmatprep.subr.mxu0 %v97_v9  ;;  %1545 = vmatprep.subr.mxu1 %v1375_v10  ;;  %v1358_v16 = vld [vmem:[%s2909_s0 + $0x170] sm:$0xff]  ;;  %v95_v17 = vld [vmem:[%s2909_s0 + $0xd8] sm:$0xff]  ;;  %v1373_v18 = vld [vmem:[%s2909_s0 + $0x1e8] sm:$0xff] }
   0x7   :  { %1480 = vmatpush3.msra.mxu0 %v81_v11  ;;  %1546 = vmatpush3.msra.mxu1 %v1359_v12  ;;  %v79_v19 = vld [vmem:[%s2909_s0 + $0x58] sm:$0xff]  ;;  %v1357_v20 = vld [vmem:[%s2909_s0 + $0x168] sm:$0xff]  ;;  %v94_v21 = vld [vmem:[%s2909_s0 + $0xd0] sm:$0xff] }
   0x8   :  { %1481 = vmatprep.subr.mxu0 %v96_v13  ;;  %1547 = vmatprep.subr.mxu1 %v1374_v14  ;;  %v1372_v22 = vld [vmem:[%s2909_s0 + $0x1e0] sm:$0xff]  ;;  %v78_v23 = vld [vmem:[%s2909_s0 + $0x50] sm:$0xff]  ;;  %v93_v25 = vld [vmem:[%s2909_s0 + $0xc8] sm:$0xff] }
   0x9   :  { %1482 = vmatpush3.msra.mxu0 %v80_v15  ;;  %1548 = vmatpush3.msra.mxu1 %v1358_v16  ;;  %v1356_v24 = vld [vmem:[%s2909_s0 + $0x160] sm:$0xff]  ;;  %v1371_v26 = vld [vmem:[%s2909_s0 + $0x1d8] sm:$0xff]  ;;  %v77_v27 = vld [vmem:[%s2909_s0 + $0x48] sm:$0xff] }
   0xa   :  { %1483 = vmatprep.subr.mxu0 %v95_v17  ;;  %1549 = vmatprep.subr.mxu1 %v1373_v18  ;;  %v1355_v28 = vld [vmem:[%s2909_s0 + $0x158] sm:$0xff]  ;;  %v92_v29 = vld [vmem:[%s2909_s0 + $0xc0] sm:$0xff]  ;;  %v1370_v30 = vld [vmem:[%s2909_s0 + $0x1d0] sm:$0xff] }
   0xb   :  { %1484 = vmatpush3.msra.mxu0 %v79_v19  ;;  %1550 = vmatpush3.msra.mxu1 %v1357_v20  ;;  %v76_v31 = vld [vmem:[%s2909_s0 + $0x40] sm:$0xff]  ;;  %v1354_v32 = vld [vmem:[%s2909_s0 + $0x150] sm:$0xff]  ;;  %v91_v33 = vld [vmem:[%s2909_s0 + $0xb8] sm:$0xff] }
   0xc   :  { %1485 = vmatprep.subr.mxu0 %v94_v21  ;;  %1551 = vmatprep.subr.mxu1 %v1372_v22  ;;  %v1369_v34 = vld [vmem:[%s2909_s0 + $0x1c8] sm:$0xff]  ;;  %v75_v35 = vld [vmem:[%s2909_s0 + $0x38] sm:$0xff]  ;;  %v90_v37 = vld [vmem:[%s2909_s0 + $0xb0] sm:$0xff] }
   0xd   :  { %1486 = vmatpush3.msra.mxu0 %v78_v23  ;;  %1552 = vmatpush3.msra.mxu1 %v1356_v24  ;;  %v1353_v36 = vld [vmem:[%s2909_s0 + $0x148] sm:$0xff]  ;;  %v1368_v38 = vld [vmem:[%s2909_s0 + $0x1c0] sm:$0xff]  ;;  %v74_v39 = vld [vmem:[%s2909_s0 + $0x30] sm:$0xff] }
   0xe   :  { %1487 = vmatprep.subr.mxu0 %v93_v25  ;;  %1553 = vmatprep.subr.mxu1 %v1371_v26  ;;  %v1352_v40 = vld [vmem:[%s2909_s0 + $0x140] sm:$0xff]  ;;  %v89_v41 = vld [vmem:[%s2909_s0 + $0xa8] sm:$0xff]  ;;  %v1367_v42 = vld [vmem:[%s2909_s0 + $0x1b8] sm:$0xff] }
   0xf   :  { %1488 = vmatpush3.msra.mxu0 %v77_v27  ;;  %1554 = vmatpush3.msra.mxu1 %v1355_v28  ;;  %v73_v43 = vld [vmem:[%s2909_s0 + $0x28] sm:$0xff]  ;;  %v1351_v44 = vld [vmem:[%s2909_s0 + $0x138] sm:$0xff]  ;;  %v88_v45 = vld [vmem:[%s2909_s0 + $0xa0] sm:$0xff] }
  0x10   :  { %1489 = vmatprep.subr.mxu0 %v92_v29  ;;  %1555 = vmatprep.subr.mxu1 %v1370_v30  ;;  %v1366_v46 = vld [vmem:[%s2909_s0 + $0x1b0] sm:$0xff]  ;;  %v72_v47 = vld [vmem:[%s2909_s0 + $0x20] sm:$0xff]  ;;  %v87_v49 = vld [vmem:[%s2909_s0 + $0x98] sm:$0xff] }
  0x11   :  { %1490 = vmatpush3.msra.mxu0 %v76_v31  ;;  %1556 = vmatpush3.msra.mxu1 %v1354_v32  ;;  %v1350_v48 = vld [vmem:[%s2909_s0 + $0x130] sm:$0xff]  ;;  %v1365_v50 = vld [vmem:[%s2909_s0 + $0x1a8] sm:$0xff]  ;;  %v71_v51 = vld [vmem:[%s2909_s0 + $0x18] sm:$0xff] }
  0x12   :  { %1491 = vmatprep.subr.mxu0 %v91_v33  ;;  %1557 = vmatprep.subr.mxu1 %v1369_v34  ;;  %v1349_v52 = vld [vmem:[%s2909_s0 + $0x128] sm:$0xff]  ;;  %v86_v53 = vld [vmem:[%s2909_s0 + $0x90] sm:$0xff]  ;;  %v1364_v54 = vld [vmem:[%s2909_s0 + $0x1a0] sm:$0xff] }
  0x13   :  { %1492 = vmatpush3.msra.mxu0 %v75_v35  ;;  %1558 = vmatpush3.msra.mxu1 %v1353_v36  ;;  %v70_v55 = vld [vmem:[%s2909_s0 + $0x10] sm:$0xff]  ;;  %v1348_v56 = vld [vmem:[%s2909_s0 + $0x120] sm:$0xff]  ;;  %v85_v57 = vld [vmem:[%s2909_s0 + $0x88] sm:$0xff] }
  0x14   :  { %1493 = vmatprep.subr.mxu0 %v90_v37  ;;  %1559 = vmatprep.subr.mxu1 %v1368_v38  ;;  %v1363_v58 = vld [vmem:[%s2909_s0 + $0x198] sm:$0xff]  ;;  %v69_v59 = vld [vmem:[%s2909_s0 + $0x8] sm:$0xff]  ;;  %v84_v61 = vld [vmem:[%s2909_s0 + $0x80] sm:$0xff] }
  0x15   :  { %1494 = vmatpush3.msra.mxu0 %v74_v39  ;;  %1560 = vmatpush3.msra.mxu1 %v1352_v40  ;;  %v1347_v60 = vld [vmem:[%s2909_s0 + $0x118] sm:$0xff]  ;;  %v1362_v62 = vld [vmem:[%s2909_s0 + $0x190] sm:$0xff]  ;;  %v68_v63 = vld [vmem:[%s2909_s0] sm:$0xff] }
  0x16   :  { %1495 = vmatprep.subr.mxu0 %v89_v41  ;;  %1561 = vmatprep.subr.mxu1 %v1367_v42  ;;  %v2029_v0 = vld [vmem:[%s2910_s1 + $0x8] sm:$0xff]  ;;  %v1346_v1 = vld [vmem:[%s2909_s0 + $0x110] sm:$0xff]  ;;  %v2037_v2 = vld [vmem:[%s2910_s1] sm:$0xff] }
  0x17   :  { %1496 = vmatpush3.msra.mxu0 %v73_v43  ;;  %1562 = vmatpush3.msra.mxu1 %v1351_v44  ;;  %v1420_v3 = vld [vmem:[%s2909_s0 + $0x318] sm:$0xff]  ;;  %v2046_v4 = vld [vmem:[%s2910_s1 + $0x20] sm:$0xff]  ;;  %v1419_v6 = vld [vmem:[%s2909_s0 + $0x310] sm:$0xff] }
  0x18   :  { %1497 = vmatprep.subr.mxu0 %v88_v45  ;;  %1563 = vmatprep.subr.mxu1 %v1366_v46  ;;  %v1404_v5 = vld [vmem:[%s2909_s0 + $0x298] sm:$0xff]  ;;  %v101_v7 = vld [vmem:[%s2909_s0 + $0x108] sm:$0x3f]  ;;  %v1403_v8 = vld [vmem:[%s2909_s0 + $0x290] sm:$0xff] }
  0x19   :  { %1498 = vmatpush3.msra.mxu0 %v72_v47  ;;  %1564 = vmatpush3.msra.mxu1 %v1350_v48  ;;  %v2067_v9 = vld [vmem:[%s2910_s1 + $0x18] sm:$0xff]  ;;  %v1418_v10 = vld [vmem:[%s2909_s0 + $0x308] sm:$0xff]  ;;  %v1417_v12 = vld [vmem:[%s2909_s0 + $0x300] sm:$0xff] }
  0x1a   :  { %1499 = vmatprep.subr.mxu0 %v87_v49  ;;  %1565 = vmatprep.subr.mxu1 %v1365_v50  ;;  %v1402_v11 = vld [vmem:[%s2909_s0 + $0x288] sm:$0xff]  ;;  %v2084_v13 = vld [vmem:[%s2910_s1 + $0x38] sm:$0xff]  ;;  %v1401_v14 = vld [vmem:[%s2909_s0 + $0x280] sm:$0xff] }
  0x1b   :  { %1500 = vmatpush3.msra.mxu0 %v71_v51  ;;  %1566 = vmatpush3.msra.mxu1 %v1349_v52  ;;  %v2094_v15 = vld [vmem:[%s2910_s1 + $0x30] sm:$0xff]  ;;  %v1416_v16 = vld [vmem:[%s2909_s0 + $0x2f8] sm:$0xff]  ;;  %v100_v20 = vld [vmem:[%s2909_s0 + $0x100] sm:$0xff] }
  0x1c   :  { %1501 = vmatprep.subr.mxu0 %v86_v53  ;;  %1567 = vmatprep.subr.mxu1 %v1364_v54  ;;  %v2103_v17 = vld [vmem:[%s2910_s1 + $0x50] sm:$0xff]  ;;  %v1400_v18 = vld [vmem:[%s2909_s0 + $0x278] sm:$0xff]  ;;  %v2124_v22 = vld [vmem:[%s2910_s1 + $0x48] sm:$0xff] }
  0x1d   :  { %1502 = vmatpush3.msra.mxu0 %v70_v55  ;;  %1568 = vmatpush3.msra.mxu1 %v1348_v56  ;;  %v1415_v19 = vld [vmem:[%s2909_s0 + $0x2f0] sm:$0xff]  ;;  %v1414_v23 = vld [vmem:[%s2909_s0 + $0x2e8] sm:$0xff]  ;;  %v1413_v26 = vld [vmem:[%s2909_s0 + $0x2e0] sm:$0xff] }
  0x1e   :  { %1503 = vmatprep.subr.mxu0 %v85_v57  ;;  %1569 = vmatprep.subr.mxu1 %v1363_v58  ;;  %v1399_v21 = vld [vmem:[%s2909_s0 + $0x270] sm:$0xff]  ;;  %v1398_v24 = vld [vmem:[%s2909_s0 + $0x268] sm:$0xff]  ;;  %v1397_v27 = vld [vmem:[%s2909_s0 + $0x260] sm:$0xff] }
  0x1f   :  { %1504 = vmatpush3.msra.mxu0 %v69_v59  ;;  %1570 = vmatpush3.msra.mxu1 %v1347_v60  ;;  %v2136_v25 = vld [vmem:[%s2910_s1 + $0x68] sm:$0xff]  ;;  %v2149_v28 = vld [vmem:[%s2910_s1 + $0x60] sm:$0xff]  ;;  %v1412_v29 = vld [vmem:[%s2909_s0 + $0x2d8] sm:$0xff] }
  0x20   :  { %1505 = vmatprep.subr.mxu0 %v84_v61  ;;  %1571 = vmatprep.subr.mxu1 %v1362_v62  ;;  %v1396_v30 = vld [vmem:[%s2909_s0 + $0x258] sm:$0xff]  ;;  %v2162_v31 = vld [vmem:[%s2910_s1 + $0x80] sm:$0xff]  ;;  %v1411_v32 = vld [vmem:[%s2909_s0 + $0x2d0] sm:$0xff] }
  0x21   :  { %1506 = vmatpush3.msra.mxu0 %v68_v63  ;;  %235 = vmatprep.mubr.f32.mxu0 %v2029_v0  ;;  %v1395_v33 = vld [vmem:[%s2909_s0 + $0x250] sm:$0xff]  ;;  %v2175_v34 = vld [vmem:[%s2910_s1 + $0x78] sm:$0xff]  ;;  %v1410_v35 = vld [vmem:[%s2909_s0 + $0x2c8] sm:$0xff] }
  0x22   :  { %1572 = vmatpush3.msra.mxu1 %v1346_v1  ;;  %587 = vmatprep.mubr.f32.mxu1 %v2029_v0  ;;  %v1394_v36 = vld [vmem:[%s2909_s0 + $0x248] sm:$0xff]  ;;  %v1409_v37 = vld [vmem:[%s2909_s0 + $0x2c0] sm:$0xff]  ;;  %v2192_v38 = vld [vmem:[%s2910_s1 + $0x98] sm:$0xff] }
  0x23   :  { %236 = vmatmul.mubr.f32.vlgmr.msra.gmra.mxu0 %v2037_v2  ;;  %588 = vmatmul.mubr.f32.vlgmr.msra.gmra.mxu1 %v2037_v2  ;;  %v1393_v39 = vld [vmem:[%s2909_s0 + $0x240] sm:$0xff]  ;;  %v2201_v40 = vld [vmem:[%s2910_s1 + $0x90] sm:$0xff]  ;;  %v1408_v41 = vld [vmem:[%s2909_s0 + $0x2b8] sm:$0xff] }
  0x24   :  { %1607 = vmatprep.subr.mxu1 %v1420_v3  ;;  %240 = vmatprep.mubr.f32.mxu0 %v2046_v4  ;;  %v2210_v42 = vld [vmem:[%s2910_s1 + $0xb0] sm:$0xf]  ;;  %v1392_v43 = vld [vmem:[%s2909_s0 + $0x238] sm:$0xff]  ;;  %v2231_v47 = vld [vmem:[%s2910_s1 + $0xa8] sm:$0xf] }
  0x25   :  { %1608 = vmatpush3.msra.mxu1 %v1404_v5  ;;  %592 = vmatprep.mubr.f32.mxu1 %v2046_v4  ;;  %v1407_v44 = vld [vmem:[%s2909_s0 + $0x2b0] sm:$0xff]  ;;  %v1379_v45 = vld [vmem:[%s2909_s0 + $0x218] sm:$0x3f]  ;;  %v1406_v48 = vld [vmem:[%s2909_s0 + $0x2a8] sm:$0xff] }
  0x26   :  { %1609 = vmatprep.subr.mxu1 %v1419_v6  ;;  %1739 = vmatprep.subr.msk.mxu0 %vm167_vm0, %v101_v7  ;;  %v1391_v46 = vld [vmem:[%s2909_s0 + $0x230] sm:$0xff]  ;;  %v1390_v49 = vld [vmem:[%s2909_s0 + $0x228] sm:$0xff]  ;;  %v1405_v51 = vld [vmem:[%s2909_s0 + $0x2a0] sm:$0xff] }
  0x27   :  { %1610 = vmatpush3.msra.mxu1 %v1403_v8  ;;  %241 = vmatmul.mubr.f32.gmra.mxu0 %v2067_v9  ;;  %v2243_v50 = vld [vmem:[%s2910_s1 + $0x10] sm:$0xff]  ;;  %v1389_v52 = vld [vmem:[%s2909_s0 + $0x220] sm:$0xff]  ;;  %v2257_v53 = vld [vmem:[%s2910_s1 + $0x28] sm:$0xff] }
  0x28   :  { %593 = vmatmul.mubr.f32.gmra.mxu1 %v2067_v9  ;;  %1611 = vmatprep.subr.mxu1 %v1418_v10  ;;  %v1463_v54 = vld [vmem:[%s2909_s0 + $0x428] sm:$0xff]  ;;  %v2271_v56 = vld [vmem:[%s2910_s1 + $0x40] sm:$0xff]  ;;  %v2285_v59 = vld [vmem:[%s2910_s1 + $0x58] sm:$0xff] }
  0x29   :  { %1740 = vmatpush3.msk.msra.mxu0 %vm167_vm0, %v101_v7  ;;  %1612 = vmatpush3.msra.mxu1 %v1402_v11  ;;  %v1447_v55 = vld [vmem:[%s2909_s0 + $0x3a8] sm:$0xff]  ;;  %v1462_v57 = vld [vmem:[%s2909_s0 + $0x420] sm:$0xff]  ;;  %v1461_v60 = vld [vmem:[%s2909_s0 + $0x418] sm:$0xff] }
  0x2a   :  { %1613 = vmatprep.subr.mxu1 %v1417_v12  ;;  %245 = vmatprep.mubr.f32.mxu0 %v2084_v13  ;;  %v1446_v58 = vld [vmem:[%s2909_s0 + $0x3a0] sm:$0xff]  ;;  %v1445_v61 = vld [vmem:[%s2909_s0 + $0x398] sm:$0xff]  ;;  %v1460_v62 = vld [vmem:[%s2909_s0 + $0x410] sm:$0xff] }
  0x2b   :  { %597 = vmatprep.mubr.f32.mxu1 %v2084_v13  ;;  %1614 = vmatpush3.msra.mxu1 %v1401_v14  ;;  %v2304_v63 = vld [vmem:[%s2910_s1 + $0x70] sm:$0xff]  ;;  %v2314_v3 = vld [vmem:[%s2910_s1 + $0x88] sm:$0xff]  ;;  %v2324_v6 = vld [vmem:[%s2910_s1 + $0xa0] sm:$0xff] }
  0x2c   :  { %246 = vmatmul.mubr.f32.gmra.mxu0 %v2094_v15  ;;  %598 = vmatmul.mubr.f32.gmra.mxu1 %v2094_v15  ;;  %v1444_v1 = vld [vmem:[%s2909_s0 + $0x390] sm:$0xff]  ;;  %v1459_v5 = vld [vmem:[%s2909_s0 + $0x408] sm:$0xff]  ;;  %v1458_v8 = vld [vmem:[%s2909_s0 + $0x400] sm:$0xff] }
  0x2d   :  { %1615 = vmatprep.subr.mxu1 %v1416_v16  ;;  %250 = vmatprep.mubr.f32.mxu0 %v2103_v17  ;;  %v1443_v7 = vld [vmem:[%s2909_s0 + $0x388] sm:$0xff]  ;;  %v1378_v10 = vld [vmem:[%s2909_s0 + $0x210] sm:$0xff]  ;;  %v1442_v11 = vld [vmem:[%s2909_s0 + $0x380] sm:$0xff] }
  0x2e   :  { %1616 = vmatpush3.msra.mxu1 %v1400_v18  ;;  %602 = vmatprep.mubr.f32.mxu1 %v2103_v17  ;;  %v2347_v12 = vld [vmem:[%s2910_s1 + $0xb8] sm:$0xf]  ;;  %v1456_v18 = vld [vmem:[%s2909_s0 + $0x3f0] sm:$0xff] }
  0x2f   :  { %1617 = vmatprep.subr.mxu1 %v1415_v19  ;;  %1741 = vmatprep.subr.mxu0 %v100_v20  ;;  %v1457_v14 = vld [vmem:[%s2909_s0 + $0x3f8] sm:$0xff]  ;;  %v1440_v19 = vld [vmem:[%s2909_s0 + $0x370] sm:$0xff] }
  0x30   :  { %1618 = vmatpush3.msra.mxu1 %v1399_v21  ;;  %251 = vmatmul.mubr.f32.gmra.mxu0 %v2124_v22  ;;  %v1441_v16 = vld [vmem:[%s2909_s0 + $0x378] sm:$0xff]  ;;  %v1439_v21 = vld [vmem:[%s2909_s0 + $0x368] sm:$0xff] }
  0x31   :  { %603 = vmatmul.mubr.f32.gmra.mxu1 %v2124_v22  ;;  %1619 = vmatprep.subr.mxu1 %v1414_v23  ;;  %v1454_v23 = vld [vmem:[%s2909_s0 + $0x3e0] sm:$0xff] }
  0x32   :  { %1620 = vmatpush3.msra.mxu1 %v1398_v24  ;;  %255 = vmatprep.mubr.f32.mxu0 %v2136_v25  ;;  %v1422_v24 = vld [vmem:[%s2909_s0 + $0x328] sm:$0x3f] }
  0x33   :  { %1621 = vmatprep.subr.mxu1 %v1413_v26  ;;  %607 = vmatprep.mubr.f32.mxu1 %v2136_v25  ;;  %v1438_v26 = vld [vmem:[%s2909_s0 + $0x360] sm:$0xff] }
  0x34   :  { %1622 = vmatpush3.msra.mxu1 %v1397_v27  ;;  %256 = vmatmul.mubr.f32.gmra.mxu0 %v2149_v28  ;;  %v1453_v27 = vld [vmem:[%s2909_s0 + $0x3d8] sm:$0xff] }
  0x35   :  { %608 = vmatmul.mubr.f32.gmra.mxu1 %v2149_v28  ;;  %1623 = vmatprep.subr.mxu1 %v1412_v29  ;;  %v1437_v29 = vld [vmem:[%s2909_s0 + $0x358] sm:$0xff] }
  0x36   :  { %1624 = vmatpush3.msra.mxu1 %v1396_v30  ;;  %260 = vmatprep.mubr.f32.mxu0 %v2162_v31  ;;  %v1452_v30 = vld [vmem:[%s2909_s0 + $0x3d0] sm:$0xff] }
  0x37   :  { %1625 = vmatprep.subr.mxu1 %v1411_v32  ;;  %612 = vmatprep.mubr.f32.mxu1 %v2162_v31  ;;  %v1436_v32 = vld [vmem:[%s2909_s0 + $0x350] sm:$0xff] }
  0x38   :  { %1626 = vmatpush3.msra.mxu1 %v1395_v33  ;;  %261 = vmatmul.mubr.f32.gmra.mxu0 %v2175_v34  ;;  %v1451_v33 = vld [vmem:[%s2909_s0 + $0x3c8] sm:$0xff] }
  0x39   :  { %613 = vmatmul.mubr.f32.gmra.mxu1 %v2175_v34  ;;  %1627 = vmatprep.subr.mxu1 %v1410_v35  ;;  %v1435_v35 = vld [vmem:[%s2909_s0 + $0x348] sm:$0xff] }
  0x3a   :  { %1742 = vmatpush3.msra.mxu0 %v100_v20  ;;  %1628 = vmatpush3.msra.mxu1 %v1394_v36  ;;  %v1455_v20 = vld [vmem:[%s2909_s0 + $0x3e8] sm:$0xff]  ;;  %v1450_v36 = vld [vmem:[%s2909_s0 + $0x3c0] sm:$0xff] }
  0x3b   :  { %1629 = vmatprep.subr.mxu1 %v1409_v37  ;;  %265 = vmatprep.mubr.f32.mxu0 %v2192_v38  ;;  %v1421_v37 = vld [vmem:[%s2909_s0 + $0x320] sm:$0xff] }
  0x3c   :  { %617 = vmatprep.mubr.f32.mxu1 %v2192_v38  ;;  %1630 = vmatpush3.msra.mxu1 %v1393_v39  ;;  %v1434_v39 = vld [vmem:[%s2909_s0 + $0x340] sm:$0xff] }
  0x3d   :  { %266 = vmatmul.mubr.f32.gmra.mxu0 %v2201_v40  ;;  %618 = vmatmul.mubr.f32.gmra.mxu1 %v2201_v40 }
  0x3e   :  { %1631 = vmatprep.subr.mxu1 %v1408_v41  ;;  %270 = vmatprep.mubr.f32.mxu0 %v2210_v42  ;;  %v1449_v41 = vld [vmem:[%s2909_s0 + $0x3b8] sm:$0xff] }
  0x3f   :  { %1632 = vmatpush3.msra.mxu1 %v1392_v43  ;;  %622 = vmatprep.mubr.f32.mxu1 %v2210_v42  ;;  %v1433_v43 = vld [vmem:[%s2909_s0 + $0x338] sm:$0xff] }
  0x40   :  { %1633 = vmatprep.subr.mxu1 %v1407_v44  ;;  %1755 = vmatprep.subr.msk.mxu0 %vm167_vm0, %v1379_v45  ;;  %v1448_v44 = vld [vmem:[%s2909_s0 + $0x3b0] sm:$0xff] }
  0x41   :  { %1634 = vmatpush3.msra.mxu1 %v1391_v46  ;;  %271 = vmatmul.mubr.f32.gmra.mxu0 %v2231_v47  ;;  %v1465_v46 = vld [vmem:[%s2909_s0 + $0x438] sm:$0x3f] }
  0x42   :  { %623 = vmatmul.mubr.f32.gmra.mxu1 %v2231_v47  ;;  %1635 = vmatprep.subr.mxu1 %v1406_v48  ;;  %v44_v48 = vld [vmem:[%s2911_s2] sm:$0xff] }
  0x43   :  { %1636 = vmatpush3.msra.mxu1 %v1390_v49  ;;  %1743 = vmatprep.mubr.msk.f32.mxu0 %vm142_vm1, %v2243_v50  ;;  %v46_v49 = vld [vmem:[%s2911_s2 + $0x10] sm:$0xff] }
  0x44   :  { %1637 = vmatprep.subr.mxu1 %v1405_v51  ;;  %867 = vmatprep.mubr.f32.mxu1 %v2029_v0  ;;  %v48_v51 = vld [vmem:[%s2911_s2 + $0x20] sm:$0xff] }
  0x45   :  { %1638 = vmatpush3.msra.mxu1 %v1389_v52  ;;  %1744 = vmatmul.mubr.msk.f32.vlgmr.msra.gmra.mxu0 %vm142_vm1, %v2257_v53  ;;  %v63_v52 = vld [vmem:[%s2913_s4 + $0x18] sm:$0xff] }
  0x46   :  { %868 = vmatmul.mubr.f32.vlgmr.msra.gmra.mxu1 %v2037_v2  ;;  %1673 = vmatprep.subr.mxu1 %v1463_v54  ;;  %v65_v54 = vld [vmem:[%s2913_s4 + $0x28] sm:$0xff] }
  0x47   :  { %1674 = vmatpush3.msra.mxu1 %v1447_v55  ;;  %1746 = vmatprep.mubr.msk.f32.mxu0 %vm142_vm1, %v2271_v56  ;;  %v66_v55 = vld [vmem:[%s2913_s4 + $0x30] sm:$0xff] }
  0x48   :  { %1675 = vmatprep.subr.mxu1 %v1462_v57  ;;  %872 = vmatprep.mubr.f32.mxu1 %v2046_v4 }
  0x49   :  { %1676 = vmatpush3.msra.mxu1 %v1446_v58  ;;  %1747 = vmatmul.mubr.msk.f32.gmra.mxu0 %vm142_vm1, %v2285_v59 }
  0x4a   :  { %873 = vmatmul.mubr.f32.gmra.mxu1 %v2067_v9  ;;  %1677 = vmatprep.subr.mxu1 %v1461_v60 }
  0x4b   :  { %1756 = vmatpush3.msk.msra.mxu0 %vm167_vm0, %v1379_v45  ;;  %1678 = vmatpush3.msra.mxu1 %v1445_v61  ;;  %v1432_v45 = vld [vmem:[%s2909_s0 + $0x330] sm:$0xff] }
  0x4c   :  { %1679 = vmatprep.subr.mxu1 %v1460_v62  ;;  %1749 = vmatprep.mubr.msk.f32.mxu0 %vm142_vm1, %v2304_v63 }
  0x4d   :  { %877 = vmatprep.mubr.f32.mxu1 %v2084_v13  ;;  %1680 = vmatpush3.msra.mxu1 %v1444_v1 }
  0x4e   :  { %1750 = vmatmul.mubr.msk.f32.gmra.mxu0 %vm142_vm1, %v2314_v3  ;;  %878 = vmatmul.mubr.f32.gmra.mxu1 %v2094_v15 }
  0x4f   :  { %1681 = vmatprep.subr.mxu1 %v1459_v5  ;;  %1752 = vmatprep.mubr.msk.f32.mxu0 %vm142_vm1, %v2324_v6 }
  0x50   :  { %1682 = vmatpush3.msra.mxu1 %v1443_v7  ;;  %882 = vmatprep.mubr.f32.mxu1 %v2103_v17 }
  0x51   :  { %1683 = vmatprep.subr.mxu1 %v1458_v8  ;;  %1757 = vmatprep.subr.mxu0 %v1378_v10 }
  0x52   :  { %1684 = vmatpush3.msra.mxu1 %v1442_v11  ;;  %1753 = vmatmul.mubr.msk.f32.gmra.mxu0 %vm142_vm1, %v2347_v12 }
  0x53   :  { %883 = vmatmul.mubr.f32.gmra.mxu1 %v2124_v22  ;;  %1685 = vmatprep.subr.mxu1 %v1457_v14 }
  0x54   :  { %1758 = vmatpush3.msra.mxu0 %v1378_v10  ;;  %1686 = vmatpush3.msra.mxu1 %v1441_v16 }
  0x55   :  { %1687 = vmatprep.subr.mxu1 %v1456_v18  ;;  %1759 = vmatprep.mubr.msk.f32.mxu0 %vm142_vm1, %v2243_v50 }
  0x56   :  { %887 = vmatprep.mubr.f32.mxu1 %v2136_v25  ;;  %1688 = vmatpush3.msra.mxu1 %v1440_v19 }
  0x57   :  { %1760 = vmatmul.mubr.msk.f32.vlgmr.msra.gmra.mxu0 %vm142_vm1, %v2257_v53  ;;  %888 = vmatmul.mubr.f32.gmra.mxu1 %v2149_v28 }
  0x58   :  { %1689 = vmatprep.subr.mxu1 %v1455_v20  ;;  %1762 = vmatprep.mubr.msk.f32.mxu0 %vm142_vm1, %v2271_v56 }
  0x59   :  { %1690 = vmatpush3.msra.mxu1 %v1439_v21  ;;  %892 = vmatprep.mubr.f32.mxu1 %v2162_v31 }
  0x5a   :  { %1691 = vmatprep.subr.mxu1 %v1454_v23  ;;  %1771 = vmatprep.subr.msk.mxu0 %vm167_vm0, %v1422_v24 }
  0x5b   :  { %1692 = vmatpush3.msra.mxu1 %v1438_v26  ;;  %1763 = vmatmul.mubr.msk.f32.gmra.mxu0 %vm142_vm1, %v2285_v59 }
  0x5c   :  { %893 = vmatmul.mubr.f32.gmra.mxu1 %v2175_v34  ;;  %1693 = vmatprep.subr.mxu1 %v1453_v27 }
  0x5d   :  { %1772 = vmatpush3.msk.msra.mxu0 %vm167_vm0, %v1422_v24  ;;  %1694 = vmatpush3.msra.mxu1 %v1437_v29 }
  0x5e   :  { %1695 = vmatprep.subr.mxu1 %v1452_v30  ;;  %1765 = vmatprep.mubr.msk.f32.mxu0 %vm142_vm1, %v2304_v63 }
  0x5f   :  { %897 = vmatprep.mubr.f32.mxu1 %v2192_v38  ;;  %1696 = vmatpush3.msra.mxu1 %v1436_v32 }
  0x60   :  { %1766 = vmatmul.mubr.msk.f32.gmra.mxu0 %vm142_vm1, %v2314_v3  ;;  %898 = vmatmul.mubr.f32.gmra.mxu1 %v2201_v40 }
  0x61   :  { %1697 = vmatprep.subr.mxu1 %v1451_v33  ;;  %1768 = vmatprep.mubr.msk.f32.mxu0 %vm142_vm1, %v2324_v6 }
  0x62   :  { %1698 = vmatpush3.msra.mxu1 %v1435_v35  ;;  %902 = vmatprep.mubr.f32.mxu1 %v2210_v42 }
  0x63   :  { %1699 = vmatprep.subr.mxu1 %v1450_v36  ;;  %1773 = vmatprep.subr.mxu0 %v1421_v37 }
  0x64   :  { %1700 = vmatpush3.msra.mxu1 %v1434_v39  ;;  %1769 = vmatmul.mubr.msk.f32.gmra.mxu0 %vm142_vm1, %v2347_v12 }
  0x65   :  { %903 = vmatmul.mubr.f32.gmra.mxu1 %v2231_v47  ;;  %1701 = vmatprep.subr.mxu1 %v1449_v41 }
  0x66   :  { %1774 = vmatpush3.msra.mxu0 %v1421_v37  ;;  %1702 = vmatpush3.msra.mxu1 %v1433_v43 }
  0x67   :  { %1703 = vmatprep.subr.mxu1 %v1448_v44  ;;  %1775 = vmatprep.mubr.msk.f32.mxu0 %vm142_vm1, %v2243_v50 }
  0x68   :  { %1704 = vmatpush3.msra.mxu1 %v1432_v45  ;;  %1147 = vmatprep.mubr.f32.mxu1 %v2029_v0  ;;  %v1464_v0 = vld [vmem:[%s2909_s0 + $0x430] sm:$0xff] }
  0x69   :  { %1776 = vmatmul.mubr.msk.f32.vlgmr.msra.gmra.mxu0 %vm142_vm1, %v2257_v53  ;;  %1148 = vmatmul.mubr.f32.vlgmr.msra.gmra.mxu1 %v2037_v2  ;;  %v45_v2 = vld [vmem:[%s2911_s2 + $0x8] sm:$0xff] }
  0x6a   :  { %1778 = vmatprep.mubr.msk.f32.mxu0 %vm142_vm1, %v2271_v56  ;;  %1152 = vmatprep.mubr.f32.mxu1 %v2046_v4  ;;  %v47_v4 = vld [vmem:[%s2911_s2 + $0x18] sm:$0xff] }
  0x6b   :  { %1787 = vmatprep.subr.msk.mxu0 %vm167_vm0, %v1465_v46  ;;  %104 = vperm.xlu0 %1804, %v44_v48  }
  0x6c   :  { %1788 = vmatpush3.msk.msra.mxu0 %vm167_vm0, %v1465_v46  ;;  %114 = vperm.xlu1 %1805, %v46_v49  }
  0x6d   :  { %1779 = vmatmul.mubr.msk.f32.gmra.mxu0 %vm142_vm1, %v2285_v59  ;;  %1153 = vmatmul.mubr.f32.gmra.mxu1 %v2067_v9  ;;  %v49_v9 = vld [vmem:[%s2911_s2 + $0x28] sm:$0xff] }
  0x6e   :  { %1781 = vmatprep.mubr.msk.f32.mxu0 %vm142_vm1, %v2304_v63  ;;  %1157 = vmatprep.mubr.f32.mxu1 %v2084_v13  ;;  %v50_v13 = vld [vmem:[%s2911_s2 + $0x30] sm:$0xff] }
  0x6f   :  { %1789 = vmatprep.subr.mxu0 %v1464_v0  ;;  %109 = vperm.xlu0 %1804, %v45_v2  }
  0x70   :  { %1790 = vmatpush3.msra.mxu0 %v1464_v0  ;;  %119 = vperm.xlu1 %1805, %v47_v4  }
  0x71   :  { %1782 = vmatmul.mubr.msk.f32.gmra.mxu0 %vm142_vm1, %v2314_v3  ;;  %1158 = vmatmul.mubr.f32.gmra.mxu1 %v2094_v15  ;;  %v51_v15 = vld [vmem:[%s2911_s2 + $0x38] sm:$0xf] }
  0x72   :  { %1784 = vmatprep.mubr.msk.f32.mxu0 %vm142_vm1, %v2324_v6  ;;  %1162 = vmatprep.mubr.f32.mxu1 %v2103_v17  ;;  %v52_v17 = vld [vmem:[%s2912_s3] sm:$0xff] }
  0x73   :  { %124 = vperm.xlu0 %1804, %v48_v51  }
  0x74   :  { %129 = vperm.xlu1 %1805, %v49_v9  }
  0x75   :  { %1785 = vmatmul.mubr.msk.f32.gmra.mxu0 %vm142_vm1, %v2347_v12  ;;  %1163 = vmatmul.mubr.f32.gmra.mxu1 %v2124_v22  ;;  %v53_v22 = vld [vmem:[%s2912_s3 + $0x8] sm:$0xff] }
  0x76   :  { %1167 = vmatprep.mubr.f32.mxu1 %v2136_v25  ;;  %1791 = vmatprep.mubr.msk.f32.mxu0 %vm142_vm1, %v2243_v50  ;;  %v54_v25 = vld [vmem:[%s2912_s3 + $0x10] sm:$0xff]  ;;  %v61_v50 = vld [vmem:[%s2913_s4 + $0x8] sm:$0xff] }
  0x77   :  { %134 = vperm.xlu0 %1804, %v50_v13  }
  0x78   :  { %139 = vperm.xlu1 %1805, %v51_v15  }
  0x79   :  { %1168 = vmatmul.mubr.f32.gmra.mxu1 %v2149_v28  ;;  %1792 = vmatmul.mubr.msk.f32.vlgmr.msra.gmra.mxu0 %vm142_vm1, %v2257_v53  ;;  %v55_v28 = vld [vmem:[%s2912_s3 + $0x18] sm:$0xff]  ;;  %v64_v53 = vld [vmem:[%s2913_s4 + $0x20] sm:$0xff] }
  0x7a   :  { %1172 = vmatprep.mubr.f32.mxu1 %v2162_v31  ;;  %1794 = vmatprep.mubr.msk.f32.mxu0 %vm142_vm1, %v2271_v56  ;;  %v56_v31 = vld [vmem:[%s2912_s3 + $0x20] sm:$0xff]  ;;  %v67_v56 = vld [vmem:[%s2913_s4 + $0x38] sm:$0xf] }
  0x7b   :  { %391 = vperm.xlu0 %1804, %v52_v17  }
  0x7c   :  { %396 = vperm.xlu1 %1805, %v53_v22  }
  0x7d   :  { %1173 = vmatmul.mubr.f32.gmra.mxu1 %v2175_v34  ;;  %1795 = vmatmul.mubr.msk.f32.gmra.mxu0 %vm142_vm1, %v2285_v59  ;;  %v57_v34 = vld [vmem:[%s2912_s3 + $0x28] sm:$0xff] }
  0x7e   :  { %1177 = vmatprep.mubr.f32.mxu1 %v2192_v38  ;;  %1797 = vmatprep.mubr.msk.f32.mxu0 %vm142_vm1, %v2304_v63  ;;  %v58_v38 = vld [vmem:[%s2912_s3 + $0x30] sm:$0xff] }
  0x7f   :  { %401 = vperm.xlu0 %1804, %v54_v25  }
  0x80   :  { %406 = vperm.xlu1 %1805, %v55_v28  }
  0x81   :  { %1178 = vmatmul.mubr.f32.gmra.mxu1 %v2201_v40  ;;  %1798 = vmatmul.mubr.msk.f32.gmra.mxu0 %vm142_vm1, %v2314_v3  ;;  %v59_v40 = vld [vmem:[%s2912_s3 + $0x38] sm:$0xf] }
  0x82   :  { %1182 = vmatprep.mubr.f32.mxu1 %v2210_v42  ;;  %1800 = vmatprep.mubr.msk.f32.mxu0 %vm142_vm1, %v2324_v6  ;;  %v60_v42 = vld [vmem:[%s2913_s4] sm:$0xff] }
  0x83   :  { %411 = vperm.xlu0 %1804, %v56_v31  }
  0x84   :  { %416 = vperm.xlu1 %1805, %v57_v34  }
  0x85   :  { %1183 = vmatmul.mubr.f32.gmra.mxu1 %v2231_v47  ;;  %1801 = vmatmul.mubr.msk.f32.gmra.mxu0 %vm142_vm1, %v2347_v12  ;;  %v62_v47 = vld [vmem:[%s2913_s4 + $0x10] sm:$0xff] }
  0x87   :  { %421 = vperm.xlu0 %1804, %v58_v38  }
  0x88   :  { %426 = vperm.xlu1 %1805, %v59_v40  }
  0x8b   :  { %439 = vperm.xlu0 %1804, %v60_v42  }
  0x8c   :  { %444 = vperm.xlu1 %1805, %v61_v50  }
  0x8f   :  { %449 = vperm.xlu0 %1804, %v62_v47  }
  0x90   :  { %454 = vperm.xlu1 %1805, %v63_v52  }
  0x93   :  { %459 = vperm.xlu0 %1804, %v64_v53  }
  0x94   :  { %464 = vperm.xlu1 %1805, %v65_v54  }
  0x97   :  { %469 = vperm.xlu0 %1804, %v66_v55  }
  0x98   :  { %474 = vperm.xlu1 %1805, %v67_v56  }
  0xe3   :  { %v1507_v57 = vpop.f32.mrf.mxu0  ;;  %v1573_v58 = vpop.f32.mrf.mxu1 }
  0xe5   :  { %v1508_v59 = vpop.f32.mrf.mxu0  ;;  %v1574_v60 = vpop.f32.mrf.mxu1 }
  0xe6   :  { %v2573_v61 = vadd.f32 %v1508_v59, %v1507_v57  ;;  %v2575_v62 = vadd.f32 %v1574_v60, %v1573_v58  ;;  %v2579_v6 = vpop.permute.xlu0 %104 }
  0xe7   :  { %v1510_v63 = vpop.f32.mrf.mxu0  ;;  %v2577_v1 = vpop.permute.xlu1 %114 }
  0xe8   :  { %v1576_v3 = vpop.f32.mrf.mxu1 }
  0xe9   :  { %v1511_v5 = vpop.f32.mrf.mxu0 }
  0xea   :  { %v1512_v7 = vadd.f32 %v1511_v5, %v1510_v63  ;;  %v1577_v8 = vpop.f32.mrf.mxu1  ;;  %v2587_v21 = vpop.permute.xlu0 %109  ;;  %v238_v5 = vadd.f32 %v2573_v61, %v2579_v6 }
  0xeb   :  { %v2581_v10 = vadd.f32 %v1577_v8, %v1576_v3  ;;  %v2583_v11 = vpop.permute.xlu1 %119 }
  0xec   :  { %v1513_v12 = vpop.f32.mrf.mxu0  ;;  %v1579_v14 = vpop.f32.mrf.mxu1  ;;  %v243_v58 = vadd.f32 %v1512_v7, %v2587_v21 }
  0xed   :  { %v595_v61 = vadd.f32 %v2581_v10, %v2587_v21 }
  0xee   :  { %v1514_v16 = vpop.f32.mrf.mxu0  ;;  %v1580_v18 = vpop.f32.mrf.mxu1 }
  0xef   :  { %v1515_v19 = vadd.f32 %v1514_v16, %v1513_v12  ;;  %v2585_v20 = vadd.f32 %v1580_v18, %v1579_v14  ;;  %v2589_v26 = vpop.permute.xlu1 %129  ;;  %v2591_v30 = vpop.permute.xlu0 %124 }
  0xf0   :  { %v1516_v23 = vpop.f32.mrf.mxu0 }
  0xf1   :  { %v1582_v24 = vpop.f32.mrf.mxu1 }
  0xf2   :  { %v1517_v27 = vpop.f32.mrf.mxu0 }
  0xf3   :  { %v1583_v29 = vpop.f32.mrf.mxu1  ;;  %v2595_v39 = vpop.permute.xlu1 %139  ;;  %v1518_v57 = vadd.f32 %v1517_v27, %v1516_v23 }
  0xf4   :  { %v1519_v32 = vpop.f32.mrf.mxu0  ;;  %v2603_v45 = vpop.permute.xlu0 %134 }
  0xf5   :  { %v1585_v33 = vpop.f32.mrf.mxu1  ;;  %v253_v16 = vadd.f32 %v1518_v57, %v2583_v11 }
  0xf6   :  { %v1520_v35 = vpop.f32.mrf.mxu0 }
  0xf7   :  { %v2593_v36 = vadd.f32 %v1520_v35, %v1519_v32  ;;  %v1586_v37 = vpop.f32.mrf.mxu1  ;;  %v2613_v2 = vpop.permute.xlu1 %396  ;;  %v248_v32 = vadd.f32 %v1515_v19, %v2577_v1  ;;  %v1584_v35 = vadd.f32 %v1583_v29, %v1582_v24 }
  0xf8   :  { %v2597_v41 = vadd.f32 %v1586_v37, %v1585_v33  ;;  %v2599_v43 = vpop.f32.mrf.mxu0  ;;  %v2619_v9 = vpop.permute.xlu0 %391 }
  0xf9   :  { %v2601_v44 = vpop.f32.mrf.mxu1 }
  0xfa   :  { %v2605_v46 = vpop.f32.mrf.mxu0 }
  0xfb   :  { %v2607_v48 = vpop.f32.mrf.mxu1  ;;  %v2629_v25 = vpop.permute.xlu1 %406 }
  0xfc   :  { %v2631_v31 = vpop.permute.xlu0 %401 }
  0xfd   :  { %v2609_v49 = vpop.f32.mrf.mxu0  ;;  %v2611_v0 = vpop.f32.mrf.mxu1 }
  0xff   :  { %v2615_v4 = vpop.f32.mrf.mxu0  ;;  %v2617_v51 = vpop.f32.mrf.mxu1 }
 0x100   :  { %v2639_v47 = vpop.permute.xlu1 %416  ;;  %v2641_v53 = vpop.permute.xlu0 %411 }
 0x101   :  { %v2621_v13 = vpop.f32.mrf.mxu0 }
 0x102   :  { %v2623_v15 = vpop.f32.mrf.mxu1 }
 0x103   :  { %v2625_v17 = vpop.f32.mrf.mxu0 }
 0x104   :  { %v2627_v22 = vpop.f32.mrf.mxu1  ;;  %v2652_v3 = vpop.permute.xlu1 %426 }
 0x105   :  { %v1745_v28 = vpop.f32.mrf.mxu0  ;;  %2923 = vst [vmem:[#allocation2_spill] sm:$0xff] %v2652_v3  ;;  %v2656_v8 = vpop.permute.xlu0 %421 }
 0x106   :  { %v2633_v34 = vpop.f32.mrf.mxu1  ;;  %v348_v63 = vadd.f32 %v1745_v28, %v243_v58  ;;  %2924 = vst [vmem:[#allocation3_spill] sm:$0xff] %v2656_v8 }
 0x107   :  { %v342_v38 = vpop.f32.mrf.mxu0 }
 0x108   :  { %v2635_v40 = vpop.f32.mrf.mxu1  ;;  %v343_v14 = vadd.f32 %v342_v38, %v238_v5  ;;  %v382_v7 = vmax.f32 %v348_v63, 0.0  ;;  %v2672_v57 = vpop.permute.xlu1 %444 }
 0x109   :  { %v1748_v42 = vpop.f32.mrf.mxu0  ;;  %v2674_v5 = vpop.permute.xlu0 %439 }
 0x10a   :  { %v2637_v50 = vpop.f32.mrf.mxu1  ;;  %v358_v27 = vadd.f32 %v1748_v42, %v253_v16  ;;  %v381_v37 = vmax.f32 %v343_v14, 0.0  ;;  %v590_v42 = vadd.f32 %v2575_v62, %v2579_v6  ;;  %v430_v19 = vmul.f32 %v2613_v2, %v382_v7 }
 0x10b   :  { %v352_v52 = vpop.f32.mrf.mxu0 }
 0x10c   :  { %v2643_v54 = vpop.f32.mrf.mxu1  ;;  %v353_v28 = vadd.f32 %v352_v52, %v248_v32  ;;  %v384_v63 = vmax.f32 %v358_v27, 0.0  ;;  %v605_v52 = vadd.f32 %v1584_v35, %v2583_v11  ;;  %v429_v16 = vmul.f32 %v2619_v9, %v381_v37 }
 0x10d   :  { %v600_v27 = vadd.f32 %v2585_v20, %v2577_v1  ;;  %v2692_v35 = vadd.f32 %v2672_v57, %v430_v19  ;;  %v2706_v19 = vpop.permute.xlu0 %449 }
 0x10e   :  { %v2645_v55 = vpop.f32.mrf.mxu0  ;;  %v2647_v56 = vpop.f32.mrf.mxu1  ;;  %v383_v32 = vmax.f32 %v353_v28, 0.0  ;;  %v2702_v20 = vadd.f32 %v2674_v5, %v429_v16  ;;  %v1524_v16 = vadd.f32 %v2605_v46, %v2599_v43 }
 0x110   :  { %v362_v59 = vpop.f32.mrf.mxu0  ;;  %v2650_v60 = vpop.f32.mrf.mxu1 }
 0x112   :  { %v2658_v12 = vpop.f32.mrf.mxu0 }
 0x113   :  { %v2661_v18 = vpop.f32.mrf.mxu1 }
 0x114   :  { %v2663_v23 = vpop.f32.mrf.mxu0 }
 0x115   :  { %v2666_v33 = vpop.f32.mrf.mxu1 }
 0x117   :  { %v1761_v58 = vpop.f32.mrf.mxu0  ;;  %v2670_v38 = vpop.f32.mrf.mxu1 }
 0x118   :  { %2925 = vst [vmem:[#allocation4_spill] sm:$0xff] %v2670_v38  ;;  %v700_v3 = vadd.f32 %v1761_v58, %v595_v61  ;;  %v258_v38 = vadd.f32 %v2593_v36, %v2591_v30 }
 0x119   :  { %v694_v24 = vpop.f32.mrf.mxu0  ;;  %v2679_v29 = vpop.f32.mrf.mxu1 }
 0x11a   :  { %v734_v10 = vmax.f32 %v700_v3, 0.0  ;;  %v695_v14 = vadd.f32 %v694_v24, %v590_v42  ;;  %v432_v3 = vmul.f32 %v2629_v25, %v384_v63  ;;  %v363_v37 = vadd.f32 %v362_v59, %v258_v38  ;;  %v2704_v63 = vpop.permute.xlu1 %454 }
 0x11b   :  { %v1764_v61 = vpop.f32.mrf.mxu0 }
 0x11c   :  { %v742_v58 = vmul.f32 %v734_v10, %v2613_v2  ;;  %v733_v62 = vmax.f32 %v695_v14, 0.0  ;;  %v710_v8 = vadd.f32 %v1764_v61, %v605_v52  ;;  %v2686_v7 = vpop.f32.mrf.mxu1  ;;  %v431_v52 = vmul.f32 %v2631_v31, %v383_v32 }
 0x11d   :  { %v704_v28 = vpop.f32.mrf.mxu0  ;;  %v1590_v32 = vadd.f32 %v2607_v48, %v2601_v44  ;;  %v2723_v59 = vadd.f32 %v2704_v63, %v432_v3  ;;  %v1527_v44 = vadd.f32 %v2615_v4, %v2609_v49  ;;  %v1644_v49 = vadd.f32 %v2643_v54, %v2637_v50  ;;  %v2749_v4 = vpop.permute.xlu0 %459 }
 0x11e   :  { %v2695_v42 = vadd.f32 %v742_v58, %v2672_v57  ;;  %v741_v36 = vmul.f32 %v733_v62, %v2619_v9  ;;  %v736_v24 = vmax.f32 %v710_v8, 0.0  ;;  %v705_v10 = vadd.f32 %v704_v28, %v600_v27  ;;  %v2698_v14 = vpop.f32.mrf.mxu1 }
 0x11f   :  { %v385_v27 = vmax.f32 %v363_v37, 0.0  ;;  %v610_v28 = vadd.f32 %v2597_v41, %v2591_v30  ;;  %v2736_v41 = vadd.f32 %v2706_v19, %v431_v52  ;;  %v615_v52 = vadd.f32 %v1590_v32, %v2589_v26 }
 0x120   :  { %2926 = vst [vmem:[#allocation5_spill] sm:$0xff] %v2695_v42  ;;  %v2711_v38 = vadd.f32 %v741_v36, %v2674_v5  ;;  %v744_v8 = vmul.f32 %v736_v24, %v2629_v25  ;;  %v735_v61 = vmax.f32 %v705_v10, 0.0  ;;  %v1767_v58 = vpop.f32.mrf.mxu0  ;;  %v2714_v62 = vpop.f32.mrf.mxu1  ;;  %v268_v50 = vadd.f32 %v1527_v44, %v2603_v45 }
 0x121   :  { %2928 = vst [vmem:[#allocation7_spill] sm:$0xff] %v2736_v41  ;;  %v1650_v54 = vadd.f32 %v2666_v33, %v2661_v18  ;;  %v2786_v41 = vpop.permute.xlu1 %464 }
 0x122   :  { %2927 = vst [vmem:[#allocation6_spill] sm:$0xff] %v2711_v38  ;;  %v2728_v24 = vadd.f32 %v744_v8, %v2704_v63  ;;  %v743_v10 = vmul.f32 %v735_v61, %v2631_v31  ;;  %v714_v42 = vpop.f32.mrf.mxu0  ;;  %v2731_v43 = vpop.f32.mrf.mxu1  ;;  %v263_v8 = vadd.f32 %v1524_v16, %v2589_v26  ;;  %v433_v61 = vmul.f32 %v2641_v53, %v385_v27 }
 0x123   :  { %v715_v46 = vadd.f32 %v714_v42, %v610_v28  ;;  %v1641_v16 = vadd.f32 %v2635_v40, %v2633_v34  ;;  %v720_v42 = vadd.f32 %v1767_v58, %v615_v52  ;;  %v373_v40 = vadd.f32 %v2663_v23, %v268_v50 }
 0x124   :  { %v2741_v3 = vadd.f32 %v743_v10, %v2706_v19  ;;  %v1770_v37 = vpop.f32.mrf.mxu0  ;;  %v1530_v10 = vadd.f32 %v2625_v17, %v2621_v13  ;;  %v368_v27 = vadd.f32 %v2645_v55, %v263_v8  ;;  %v2766_v32 = vadd.f32 %v2749_v4, %v433_v61 }
 0x125   :  { %v737_v36 = vmax.f32 %v715_v46, 0.0  ;;  %v2745_v38 = vpop.f32.mrf.mxu1  ;;  %v875_v55 = vadd.f32 %v1644_v49, %v2587_v21  ;;  %v870_v18 = vadd.f32 %v1641_v16, %v2579_v6  ;;  %v1593_v58 = vadd.f32 %v2617_v51, %v2611_v0 }
 0x126   :  { %2929 = vst [vmem:[#allocation8_spill] sm:$0xff] %v2741_v3  ;;  %v724_v28 = vpop.f32.mrf.mxu0  ;;  %2930 = vst [vmem:[#allocation9_spill] sm:$0xff] %v2766_v32  ;;  %v273_v8 = vadd.f32 %v1530_v10, %v2595_v39  ;;  %v1596_v52 = vadd.f32 %v2627_v22, %v2623_v15  ;;  %v885_v23 = vadd.f32 %v1650_v54, %v2583_v11  ;;  %v387_v44 = vmax.f32 %v373_v40, 0.0 }
 0x127   :  { %v745_v46 = vmul.f32 %v737_v36, %v2641_v53  ;;  %v2760_v48 = vpop.f32.mrf.mxu1  ;;  %v386_v36 = vmax.f32 %v368_v27, 0.0  ;;  %v738_v27 = vmax.f32 %v720_v42, 0.0  ;;  %v1647_v16 = vadd.f32 %v2650_v60, %v2647_v56 }
 0x128   :  { %v378_v49 = vadd.f32 %v2658_v12, %v273_v8  ;;  %v625_v15 = vadd.f32 %v1596_v52, %v2595_v39  ;;  %v620_v22 = vadd.f32 %v1593_v58, %v2603_v45  ;;  %v1656_v54 = vadd.f32 %v2698_v14, %v2686_v7  ;;  %v2794_v8 = vpop.permute.xlu0 %469 }
 0x129   :  { %v2769_v13 = vadd.f32 %v745_v46, %v2749_v4  ;;  %v1777_v17 = vpop.f32.mrf.mxu0  ;;  %v1705_v34 = vpop.f32.mrf.mxu1  ;;  %v434_v32 = vmul.f32 %v2639_v47, %v386_v36  ;;  %v880_v52 = vadd.f32 %v1647_v16, %v2577_v1 }
 0x12a   :  { %v980_v46 = vadd.f32 %v1777_v17, %v875_v55  ;;  %v388_v42 = vmax.f32 %v378_v49, 0.0  ;;  %v746_v17 = vmul.f32 %v738_v27, %v2639_v47  ;;  %v2932_v55 = vld [vmem:[#allocation3_spill] sm:$0xff]  ;;  %v725_v7 = vadd.f32 %v724_v28, %v620_v22 }
 0x12b   :  { %2931 = vst [vmem:[#allocation10_spill] sm:$0xff] %v2769_v13  ;;  %v974_v33 = vpop.f32.mrf.mxu0  ;;  %v1706_v61 = vpop.f32.mrf.mxu1  ;;  %v435_v36 = vmul.f32 %v2932_v55, %v387_v44  ;;  %v2798_v58 = vadd.f32 %v2786_v41, %v434_v32  ;;  %v1659_v27 = vadd.f32 %v2731_v43, %v2714_v62  ;;  %v1662_v43 = vadd.f32 %v2760_v48, %v2745_v38 }
 0x12c   :  { %v975_v10 = vadd.f32 %v974_v33, %v870_v18  ;;  %v1014_v12 = vmax.f32 %v980_v46, 0.0  ;;  %v730_v18 = vadd.f32 %v1770_v37, %v625_v15  ;;  %v2933_v46 = vld [vmem:[#allocation4_spill] sm:$0xff]  ;;  %v2934_v37 = vld [vmem:[#allocation2_spill] sm:$0xff]  ;;  %v2809_v16 = vadd.f32 %v746_v17, %v2786_v41 }
 0x12d   :  { %v1780_v50 = vpop.f32.mrf.mxu0  ;;  %v1708_v3 = vpop.f32.mrf.mxu1  ;;  %v2814_v22 = vadd.f32 %v2794_v8, %v435_v36 }
 0x12e   :  { %v990_v13 = vadd.f32 %v1780_v50, %v885_v23  ;;  %v1013_v56 = vmax.f32 %v975_v10, 0.0  ;;  %v1653_v23 = vadd.f32 %v2679_v29, %v2933_v46  ;;  %v1022_v44 = vmul.f32 %v1014_v12, %v2613_v2 }
 0x12f   :  { %v984_v0 = vpop.f32.mrf.mxu0  ;;  %v1709_v51 = vpop.f32.mrf.mxu1  ;;  %v895_v29 = vadd.f32 %v1656_v54, %v2589_v26  ;;  %v740_v62 = vmax.f32 %v730_v18, 0.0  ;;  %v900_v46 = vadd.f32 %v1659_v27, %v2603_v45 }
 0x130   :  { %v1016_v33 = vmax.f32 %v990_v13, 0.0  ;;  %v985_v10 = vadd.f32 %v984_v0, %v880_v52  ;;  %v1710_v50 = vadd.f32 %v1709_v51, %v1708_v3  ;;  %v2806_v13 = vmul.f32 %v2934_v37, %v388_v42 }
 0x131   :  { %v1783_v60 = vpop.f32.mrf.mxu0  ;;  %v1711_v40 = vpop.f32.mrf.mxu1  ;;  %v1021_v32 = vmul.f32 %v1013_v56, %v2619_v9  ;;  %v739_v0 = vmax.f32 %v725_v7, 0.0  ;;  %v1707_v51 = vadd.f32 %v1706_v61, %v1705_v34  ;;  %v890_v42 = vadd.f32 %v1653_v23, %v2591_v30 }
 0x132   :  { %v1024_v3 = vmul.f32 %v1016_v33, %v2629_v25  ;;  %v1000_v12 = vadd.f32 %v1783_v60, %v895_v29  ;;  %v1030_v54 = vadd.f32 %v1022_v44, %v2672_v57  ;;  %v1015_v52 = vmax.f32 %v985_v10, 0.0 }
 0x133   :  { %v994_v14 = vpop.f32.mrf.mxu0  ;;  %v1712_v49 = vpop.f32.mrf.mxu1  ;;  %v1155_v36 = vadd.f32 %v1710_v50, %v2587_v21  ;;  %v1029_v38 = vadd.f32 %v1021_v32, %v2674_v5  ;;  %v2827_v60 = vmul.f32 %v740_v62, %v2934_v37  ;;  %v905_v7 = vadd.f32 %v1662_v43, %v2595_v39  ;;  %v2937_v43 = vld [vmem:[#allocation6_spill] sm:$0xff] }
 0x134   :  { %v995_v48 = vadd.f32 %v994_v14, %v890_v42  ;;  %v1032_v23 = vadd.f32 %v1024_v3, %v2704_v63  ;;  %v747_v27 = vmul.f32 %v739_v0, %v2932_v55  ;;  %v1018_v21 = vmax.f32 %v1000_v12, 0.0  ;;  %v2935_v14 = vld [vmem:[#allocation5_spill] sm:$0xff] }
 0x135   :  { %v1786_v28 = vpop.f32.mrf.mxu0  ;;  %v1714_v15 = vpop.f32.mrf.mxu1  ;;  %v1713_v10 = vadd.f32 %v1712_v49, %v1711_v40  ;;  %v1150_v29 = vadd.f32 %v1707_v51, %v2579_v6  ;;  %v1023_v62 = vmul.f32 %v1015_v52, %v2631_v31  ;;  %v2939_v6 = vmax.f32 %v2723_v59, %v2728_v24 }
 0x136   :  { %v1017_v0 = vmax.f32 %v995_v48, 0.0 }
 0x137   :  { %v1004_v17 = vpop.f32.mrf.mxu0  ;;  %v1715_v56 = vpop.f32.mrf.mxu1  ;;  %v1040_v51 = vmax.f32 %v2939_v6, %v1032_v23  ;;  %v755_v6 = vadd.f32 %v747_v27, %v2794_v8 }
 0x138   :  { %v1716_v33 = vadd.f32 %v1715_v56, %v1714_v15  ;;  %v2936_v15 = vmax.f32 %v2692_v35, %v2935_v14  ;;  %v1005_v12 = vadd.f32 %v1004_v17, %v900_v46  ;;  %v1031_v17 = vadd.f32 %v1023_v62, %v2706_v19 }
 0x139   :  { %v1717_v34 = vpop.f32.mrf.mxu1  ;;  %v1793_v61 = vpop.f32.mrf.mxu0  ;;  %v1025_v59 = vmul.f32 %v1017_v0, %v2641_v53 }
 0x13a   :  { %v1260_v44 = vadd.f32 %v1793_v61, %v1155_v36  ;;  %v1038_v42 = vmax.f32 %v2936_v15, %v1030_v54  ;;  %v1165_v3 = vadd.f32 %v1716_v33, %v2583_v11  ;;  %v2938_v36 = vmax.f32 %v2702_v20, %v2937_v43 }
 0x13b   :  { %v1718_v50 = vpop.f32.mrf.mxu1  ;;  %v1254_v32 = vpop.f32.mrf.mxu0  ;;  %v1010_v11 = vadd.f32 %v1786_v28, %v905_v7  ;;  %v1160_v20 = vadd.f32 %v1713_v10, %v2577_v1  ;;  %v1019_v24 = vmax.f32 %v1005_v12, 0.0 }
 0x13c   :  { %v1294_v56 = vmax.f32 %v1260_v44, 0.0  ;;  %v1037_v61 = vmax.f32 %v2938_v36, %v1029_v38  ;;  %v1255_v40 = vadd.f32 %v1254_v32, %v1150_v29  ;;  %v1719_v54 = vadd.f32 %v1718_v50, %v1717_v34 }
 0x13d   :  { %v1720_v49 = vpop.f32.mrf.mxu1  ;;  %v1796_v18 = vpop.f32.mrf.mxu0  ;;  %v1026_v44 = vmul.f32 %v1018_v21, %v2639_v47 }
 0x13e   :  { %v1302_v35 = vmul.f32 %v1294_v56, %v2613_v2  ;;  %v1270_v52 = vadd.f32 %v1796_v18, %v1165_v3  ;;  %v1293_v33 = vmax.f32 %v1255_v40, 0.0  ;;  %v1170_v21 = vadd.f32 %v1719_v54, %v2591_v30 }
 0x13f   :  { %v1721_v14 = vpop.f32.mrf.mxu1  ;;  %v1264_v38 = vpop.f32.mrf.mxu0  ;;  %v1034_v10 = vadd.f32 %v1026_v44, %v2786_v41  ;;  %v1027_v30 = vmul.f32 %v1019_v24, %v2932_v55 }
 0x140   :  { %v1310_v46 = vadd.f32 %v1302_v35, %v2672_v57  ;;  %v1296_v48 = vmax.f32 %v1270_v52, 0.0  ;;  %v1722_v29 = vadd.f32 %v1721_v14, %v1720_v49  ;;  %v1301_v2 = vmul.f32 %v1293_v33, %v2619_v9  ;;  %v2941_v35 = vld [vmem:[#allocation8_spill] sm:$0xff] }
 0x141   :  { %v1265_v18 = vadd.f32 %v1264_v38, %v1160_v20  ;;  %v1723_v34 = vpop.f32.mrf.mxu1  ;;  %v1799_v23 = vpop.f32.mrf.mxu0  ;;  %v1020_v57 = vmax.f32 %v1010_v11, 0.0  ;;  %v2943_v14 = vmax.f32 %v2798_v58, %v2809_v16  ;;  %v2944_v38 = vld [vmem:[#allocation9_spill] sm:$0xff]  ;;  %v763_v58 = vmax.f32 %v2814_v22, %v755_v6 }
 0x142   :  { %v1318_v28 = vmax.f32 %v1038_v42, %v1310_v46  ;;  %v1304_v7 = vmul.f32 %v1296_v48, %v2629_v25  ;;  %v1175_v1 = vadd.f32 %v1722_v29, %v2589_v26  ;;  %v1309_v50 = vadd.f32 %v1301_v2, %v2674_v5 }
 0x143   :  { %v1295_v32 = vmax.f32 %v1265_v18, 0.0  ;;  %v1724_v15 = vpop.f32.mrf.mxu1  ;;  %v1274_v62 = vpop.f32.mrf.mxu0  ;;  %v1033_v26 = vadd.f32 %v1025_v59, %v2749_v4  ;;  %v1028_v44 = vmul.f32 %v1020_v57, %v2934_v37  ;;  %v1042_v20 = vmax.f32 %v2943_v14, %v1034_v10 }
 0x144   :  { %1326 = vst [vmem:[%s2914_s5 + $0x8] sm:$0xff] %v1318_v28  ;;  %v1312_v9 = vadd.f32 %v1304_v7, %v2704_v63  ;;  %v1280_v42 = vadd.f32 %v1799_v23, %v1175_v1  ;;  %v1725_v25 = vadd.f32 %v1724_v15, %v1723_v34  ;;  %v1275_v56 = vadd.f32 %v1274_v62, %v1170_v21  ;;  %v2940_v63 = vld [vmem:[#allocation7_spill] sm:$0xff]  ;;  %v475_v59 = vpop.permute.xlu1 %474 }
 0x145   :  { %v1317_v3 = vmax.f32 %v1037_v61, %v1309_v50  ;;  %v1303_v43 = vmul.f32 %v1295_v32, %v2631_v31  ;;  %v1726_v5 = vpop.f32.mrf.mxu1  ;;  %v1802_v36 = vpop.f32.mrf.mxu0  ;;  %v2942_v54 = vmax.f32 %v2940_v63, %v2941_v35  ;;  %v1035_v48 = vadd.f32 %v1027_v30, %v2794_v8 }
 0x146   :  { %v1320_v0 = vmax.f32 %v1040_v51, %v1312_v9  ;;  %v1298_v12 = vmax.f32 %v1280_v42, 0.0  ;;  %v1297_v40 = vmax.f32 %v1275_v56, 0.0  ;;  %v1180_v49 = vadd.f32 %v1725_v25, %v2603_v45 }
 0x147   :  { %v1039_v52 = vmax.f32 %v2942_v54, %v1031_v17  ;;  %1325 = vst [vmem:[%s2914_s5] sm:$0xff] %v1317_v3  ;;  %v1311_v31 = vadd.f32 %v1303_v43, %v2706_v19  ;;  %v1727_v61 = vpop.f32.mrf.mxu1  ;;  %v1284_v51 = vpop.f32.mrf.mxu0  ;;  %v2945_v17 = vld [vmem:[#allocation10_spill] sm:$0xff]  ;;  %v756_v18 = vadd.f32 %v2827_v60, %v475_v59  ;;  %v1036_v7 = vadd.f32 %v1028_v44, %v475_v59 }
 0x148   :  { %1328 = vst [vmem:[%s2914_s5 + $0x18] sm:$0xff] %v1320_v0  ;;  %v1306_v45 = vmul.f32 %v1298_v12, %v2639_v47  ;;  %v1305_v27 = vmul.f32 %v1297_v40, %v2641_v53  ;;  %v1728_v11 = vadd.f32 %v1727_v61, %v1726_v5  ;;  %v1285_v33 = vadd.f32 %v1284_v51, %v1180_v49 }
 0x149   :  { %v2946_v46 = vmax.f32 %v2944_v38, %v2945_v17  ;;  %v1319_v29 = vmax.f32 %v1039_v52, %v1311_v31 }
 0x14a   :  { %v1314_v24 = vadd.f32 %v1306_v45, %v2786_v41  ;;  %v1313_v47 = vadd.f32 %v1305_v27, %v2749_v4  ;;  %v1185_v53 = vadd.f32 %v1728_v11, %v2595_v39  ;;  %v1299_v2 = vmax.f32 %v1285_v33, 0.0 }
 0x14b   :  { %v1041_v19 = vmax.f32 %v2946_v46, %v1033_v26  ;;  %1327 = vst [vmem:[%s2914_s5 + $0x10] sm:$0xff] %v1319_v29  ;;  %v484_v41 = vadd.f32 %v475_v59, %v2806_v13  ;;  %v1043_v4 = vmax.f32 %v763_v58, %v1035_v48 }
 0x14c   :  { %v1322_v16 = vmax.f32 %v1042_v20, %v1314_v24  ;;  %v1290_v23 = vadd.f32 %v1802_v36, %v1185_v53  ;;  %v1307_v28 = vmul.f32 %v1299_v2, %v2932_v55 }
 0x14d   :  { %v1321_v34 = vmax.f32 %v1041_v19, %v1313_v47  ;;  %v764_v60 = vmax.f32 %v484_v41, %v756_v18 }
 0x14e   :  { %1330 = vst [vmem:[%s2914_s5 + $0x28] sm:$0xff] %v1322_v16  ;;  %v1300_v39 = vmax.f32 %v1290_v23, 0.0  ;;  %v1315_v22 = vadd.f32 %v1307_v28, %v2794_v8 }
 0x14f   :  { %1329 = vst [vmem:[%s2914_s5 + $0x20] sm:$0xff] %v1321_v34  ;;  %v1044_v55 = vmax.f32 %v764_v60, %v1036_v7 }
 0x150   :  { %v1308_v1 = vmul.f32 %v1300_v39, %v2934_v37  ;;  %v1323_v21 = vmax.f32 %v1043_v4, %v1315_v22 }
 0x152   :  { %v1316_v10 = vadd.f32 %v1308_v1, %v475_v59  ;;  %1331 = vst [vmem:[%s2914_s5 + $0x30] sm:$0xff] %v1323_v21 }
 0x154   :  { %v1324_v13 = vmax.f32 %v1044_v55, %v1316_v10 }
 0x156   :  { %1332 = vst [vmem:[%s2914_s5 + $0x38] sm:$0xf] %v1324_v13 }

// kernel: inception_forward.5
= control target key start
LH: loop header
LB: loop body
LE: loop exit
PB: predicated region body
PF: predicated region fallthrough
CT: control target
= control target key end

     0   :  { %v2299_v27 = vmov 1983009808   ;;  %v522_v29 = vlaneseq  ;;  %s3812_s0 = inlined_call_operand.vmem [shape: f32[2,3840], index: 0, kind: input, shape index: {}]   ;;  %s3813_s1 = inlined_call_operand.vmem [shape: f32[3840,64], index: 1, kind: input, shape index: {}]   ;;  %s3814_s2 = inlined_call_operand.vmem [shape: f32[1,64], index: 2, kind: input, shape index: {}]   ;;  %s3815_s3 = inlined_call_operand.hbm [shape: f32[2,64], index: 3, kind: output, shape index: {}]  }
   0x1   :  { %v54_v0 = vld [vmem:[%s3813_s1 + $0xf8] sm:$0xff]  ;;  %v53_v2 = vld [vmem:[%s3813_s1 + $0xf0] sm:$0xff]  ;;  %v52_v6 = vld [vmem:[%s3813_s1 + $0xe8] sm:$0xff]  ;;  %v520_v28 = vunpack.c.l.s4 %v2299_v27 }
   0x2   :  { %v38_v1 = vld [vmem:[%s3813_s1 + $0x78] sm:$0xff]  ;;  %1743 = vmatprep.subr.mxu0 %v54_v0  ;;  %v37_v4 = vld [vmem:[%s3813_s1 + $0x70] sm:$0xff]  ;;  %v36_v8 = vld [vmem:[%s3813_s1 + $0x68] sm:$0xff]  ;;  %v523_v39 = vshrl.u32 %v522_v29, 7 }
   0x3   :  { %v86_v3 = vld [vmem:[%s3813_s1 + $0x1f8] sm:$0xff]  ;;  %1744 = vmatpush3.msra.mxu0 %v38_v1  ;;  %v85_v7 = vld [vmem:[%s3813_s1 + $0x1f0] sm:$0xff]  ;;  %v84_v10 = vld [vmem:[%s3813_s1 + $0x1e8] sm:$0xff]  ;;  %v521_v38 = vunpack.c.0.s8 %v520_v28 }
   0x4   :  { %v70_v5 = vld [vmem:[%s3813_s1 + $0x178] sm:$0xff]  ;;  %1778 = vmatprep.subr.mxu1 %v86_v3  ;;  %1745 = vmatprep.subr.mxu0 %v53_v2  ;;  %v69_v9 = vld [vmem:[%s3813_s1 + $0x170] sm:$0xff]  ;;  %v51_v11 = vld [vmem:[%s3813_s1 + $0xe0] sm:$0xff] }
   0x5   :  { %1779 = vmatpush3.msra.mxu1 %v70_v5  ;;  %1746 = vmatpush3.msra.mxu0 %v37_v4  ;;  %v68_v12 = vld [vmem:[%s3813_s1 + $0x168] sm:$0xff]  ;;  %v35_v13 = vld [vmem:[%s3813_s1 + $0x60] sm:$0xff]  ;;  %v50_v15 = vld [vmem:[%s3813_s1 + $0xd8] sm:$0xff]  ;;  %v2450_v48 = vsub.s32 %v521_v38, %v523_v39 }
   0x6   :  { %1780 = vmatprep.subr.mxu1 %v85_v7  ;;  %1747 = vmatprep.subr.mxu0 %v52_v6  ;;  %v83_v14 = vld [vmem:[%s3813_s1 + $0x1e0] sm:$0xff]  ;;  %v34_v17 = vld [vmem:[%s3813_s1 + $0x58] sm:$0xff]  ;;  %v49_v19 = vld [vmem:[%s3813_s1 + $0xd0] sm:$0xff] }
   0x7   :  { %1781 = vmatpush3.msra.mxu1 %v69_v9  ;;  %1748 = vmatpush3.msra.mxu0 %v36_v8  ;;  %v67_v16 = vld [vmem:[%s3813_s1 + $0x160] sm:$0xff]  ;;  %v82_v18 = vld [vmem:[%s3813_s1 + $0x1d8] sm:$0xff]  ;;  %v33_v21 = vld [vmem:[%s3813_s1 + $0x50] sm:$0xff] }
   0x8   :  { %1782 = vmatprep.subr.mxu1 %v84_v10  ;;  %1749 = vmatprep.subr.mxu0 %v51_v11  ;;  %v66_v20 = vld [vmem:[%s3813_s1 + $0x158] sm:$0xff]  ;;  %v81_v22 = vld [vmem:[%s3813_s1 + $0x1d0] sm:$0xff]  ;;  %v48_v23 = vld [vmem:[%s3813_s1 + $0xc8] sm:$0xff] }
   0x9   :  { %1783 = vmatpush3.msra.mxu1 %v68_v12  ;;  %1750 = vmatpush3.msra.mxu0 %v35_v13  ;;  %v65_v24 = vld [vmem:[%s3813_s1 + $0x150] sm:$0xff]  ;;  %v32_v25 = vld [vmem:[%s3813_s1 + $0x48] sm:$0xff]  ;;  %v47_v30 = vld [vmem:[%s3813_s1 + $0xc0] sm:$0xff] }
   0xa   :  { %1784 = vmatprep.subr.mxu1 %v83_v14  ;;  %1751 = vmatprep.subr.mxu0 %v50_v15  ;;  %v80_v26 = vld [vmem:[%s3813_s1 + $0x1c8] sm:$0xff]  ;;  %v31_v32 = vld [vmem:[%s3813_s1 + $0x40] sm:$0xff]  ;;  %v46_v34 = vld [vmem:[%s3813_s1 + $0xb8] sm:$0xff] }
   0xb   :  { %1785 = vmatpush3.msra.mxu1 %v67_v16  ;;  %1752 = vmatpush3.msra.mxu0 %v34_v17  ;;  %v64_v31 = vld [vmem:[%s3813_s1 + $0x148] sm:$0xff]  ;;  %v79_v33 = vld [vmem:[%s3813_s1 + $0x1c0] sm:$0xff]  ;;  %v30_v36 = vld [vmem:[%s3813_s1 + $0x38] sm:$0xff] }
   0xc   :  { %1786 = vmatprep.subr.mxu1 %v82_v18  ;;  %1753 = vmatprep.subr.mxu0 %v49_v19  ;;  %v63_v35 = vld [vmem:[%s3813_s1 + $0x140] sm:$0xff]  ;;  %v78_v37 = vld [vmem:[%s3813_s1 + $0x1b8] sm:$0xff]  ;;  %v45_v40 = vld [vmem:[%s3813_s1 + $0xb0] sm:$0xff] }
   0xd   :  { %1787 = vmatpush3.msra.mxu1 %v66_v20  ;;  %1754 = vmatpush3.msra.mxu0 %v33_v21  ;;  %v62_v41 = vld [vmem:[%s3813_s1 + $0x138] sm:$0xff]  ;;  %v29_v42 = vld [vmem:[%s3813_s1 + $0x30] sm:$0xff]  ;;  %v44_v44 = vld [vmem:[%s3813_s1 + $0xa8] sm:$0xff] }
   0xe   :  { %1788 = vmatprep.subr.mxu1 %v81_v22  ;;  %1755 = vmatprep.subr.mxu0 %v48_v23  ;;  %v77_v43 = vld [vmem:[%s3813_s1 + $0x1b0] sm:$0xff]  ;;  %v28_v46 = vld [vmem:[%s3813_s1 + $0x28] sm:$0xff]  ;;  %v43_v49 = vld [vmem:[%s3813_s1 + $0xa0] sm:$0xff] }
   0xf   :  { %1789 = vmatpush3.msra.mxu1 %v65_v24  ;;  %1756 = vmatpush3.msra.mxu0 %v32_v25  ;;  %v61_v45 = vld [vmem:[%s3813_s1 + $0x130] sm:$0xff]  ;;  %v76_v47 = vld [vmem:[%s3813_s1 + $0x1a8] sm:$0xff]  ;;  %v15_v51 = vld [vmem:[%s3812_s0] sm:$0xff] }
  0x10   :  { %1790 = vmatprep.subr.mxu1 %v80_v26  ;;  %1757 = vmatprep.subr.mxu0 %v47_v30  ;;  %v60_v50 = vld [vmem:[%s3813_s1 + $0x128] sm:$0xff]  ;;  %v27_v52 = vld [vmem:[%s3813_s1 + $0x20] sm:$0xff]  ;;  %v42_v54 = vld [vmem:[%s3813_s1 + $0x98] sm:$0xff]  ;;  %v525_v58 = vrot.slane %v15_v51, %v2450_v48  ;;  %v518_v59 = vcombine.high %v15_v51, %v15_v51 }
  0x11   :  { %1791 = vmatpush3.msra.mxu1 %v64_v31  ;;  %1758 = vmatpush3.msra.mxu0 %v31_v32  ;;  %v75_v53 = vld [vmem:[%s3813_s1 + $0x1a0] sm:$0xff]  ;;  %v26_v56 = vld [vmem:[%s3813_s1 + $0x18] sm:$0xff]  ;;  %v41_v60 = vld [vmem:[%s3813_s1 + $0x90] sm:$0xff] }
  0x12   :  { %1792 = vmatprep.subr.mxu1 %v79_v33  ;;  %1759 = vmatprep.subr.mxu0 %v46_v34  ;;  %v59_v55 = vld [vmem:[%s3813_s1 + $0x120] sm:$0xff]  ;;  %v74_v57 = vld [vmem:[%s3813_s1 + $0x198] sm:$0xff]  ;;  %v25_v62 = vld [vmem:[%s3813_s1 + $0x10] sm:$0xff]  ;;  %v533_v4 = vcombine.high %v525_v58, %v525_v58  ;;  %v532_v5 = vrot.slane %v518_v59, %v2450_v48 }
  0x13   :  { %1793 = vmatpush3.msra.mxu1 %v63_v35  ;;  %1760 = vmatpush3.msra.mxu0 %v30_v36  ;;  %v58_v61 = vld [vmem:[%s3813_s1 + $0x118] sm:$0xff]  ;;  %v73_v63 = vld [vmem:[%s3813_s1 + $0x190] sm:$0xff]  ;;  %v40_v0 = vld [vmem:[%s3813_s1 + $0x88] sm:$0xff] }
  0x14   :  { %1794 = vmatprep.subr.mxu1 %v78_v37  ;;  %1761 = vmatprep.subr.mxu0 %v45_v40  ;;  %v57_v1 = vld [vmem:[%s3813_s1 + $0x110] sm:$0xff]  ;;  %v24_v2 = vld [vmem:[%s3813_s1 + $0x8] sm:$0xff]  ;;  %v39_v6 = vld [vmem:[%s3813_s1 + $0x80] sm:$0xff]  ;;  %v534_v12 = vcombine.high %v532_v5, %v532_v5 }
  0x15   :  { %1795 = vmatpush3.msra.mxu1 %v62_v41  ;;  %1762 = vmatpush3.msra.mxu0 %v29_v42  ;;  %v72_v3 = vld [vmem:[%s3813_s1 + $0x188] sm:$0xff]  ;;  %v23_v7 = vld [vmem:[%s3813_s1] sm:$0xff]  ;;  %v118_v10 = vld [vmem:[%s3813_s1 + $0x2f8] sm:$0xff] }
  0x16   :  { %1796 = vmatprep.subr.mxu1 %v77_v43  ;;  %1763 = vmatprep.subr.mxu0 %v44_v44  ;;  %v56_v8 = vld [vmem:[%s3813_s1 + $0x108] sm:$0xff]  ;;  %v71_v9 = vld [vmem:[%s3813_s1 + $0x180] sm:$0xff]  ;;  %v102_v13 = vld [vmem:[%s3813_s1 + $0x278] sm:$0xff] }
  0x17   :  { %1797 = vmatpush3.msra.mxu1 %v61_v45  ;;  %1764 = vmatpush3.msra.mxu0 %v28_v46  ;;  %v55_v11 = vld [vmem:[%s3813_s1 + $0x100] sm:$0xff]  ;;  %v117_v14 = vld [vmem:[%s3813_s1 + $0x2f0] sm:$0xff]  ;;  %v150_v15 = vld [vmem:[%s3813_s1 + $0x3f8] sm:$0xff] }
  0x18   :  { %1798 = vmatprep.subr.mxu1 %v76_v47  ;;  %1765 = vmatprep.subr.mxu0 %v43_v49  ;;  %v101_v16 = vld [vmem:[%s3813_s1 + $0x270] sm:$0xff]  ;;  %v134_v17 = vld [vmem:[%s3813_s1 + $0x378] sm:$0xff]  ;;  %v116_v18 = vld [vmem:[%s3813_s1 + $0x2e8] sm:$0xff] }
  0x19   :  { %1799 = vmatpush3.msra.mxu1 %v60_v50  ;;  %1766 = vmatpush3.msra.mxu0 %v27_v52  ;;  %v149_v19 = vld [vmem:[%s3813_s1 + $0x3f0] sm:$0xff]  ;;  %v100_v20 = vld [vmem:[%s3813_s1 + $0x268] sm:$0xff]  ;;  %v115_v22 = vld [vmem:[%s3813_s1 + $0x2e0] sm:$0xff] }
  0x1a   :  { %1800 = vmatprep.subr.mxu1 %v75_v53  ;;  %1767 = vmatprep.subr.mxu0 %v42_v54  ;;  %v133_v21 = vld [vmem:[%s3813_s1 + $0x370] sm:$0xff]  ;;  %v148_v23 = vld [vmem:[%s3813_s1 + $0x3e8] sm:$0xff]  ;;  %v99_v24 = vld [vmem:[%s3813_s1 + $0x260] sm:$0xff] }
  0x1b   :  { %1801 = vmatpush3.msra.mxu1 %v59_v55  ;;  %1768 = vmatpush3.msra.mxu0 %v26_v56  ;;  %v132_v25 = vld [vmem:[%s3813_s1 + $0x368] sm:$0xff]  ;;  %v114_v26 = vld [vmem:[%s3813_s1 + $0x2d8] sm:$0xff]  ;;  %v147_v27 = vld [vmem:[%s3813_s1 + $0x3e0] sm:$0xff] }
  0x1c   :  { %1802 = vmatprep.subr.mxu1 %v74_v57  ;;  %1769 = vmatprep.subr.mxu0 %v41_v60  ;;  %v98_v28 = vld [vmem:[%s3813_s1 + $0x258] sm:$0xff]  ;;  %v131_v29 = vld [vmem:[%s3813_s1 + $0x360] sm:$0xff]  ;;  %v113_v30 = vld [vmem:[%s3813_s1 + $0x2d0] sm:$0xff] }
  0x1d   :  { %1803 = vmatpush3.msra.mxu1 %v58_v61  ;;  %1770 = vmatpush3.msra.mxu0 %v25_v62  ;;  %v146_v31 = vld [vmem:[%s3813_s1 + $0x3d8] sm:$0xff]  ;;  %v97_v32 = vld [vmem:[%s3813_s1 + $0x250] sm:$0xff]  ;;  %v112_v34 = vld [vmem:[%s3813_s1 + $0x2c8] sm:$0xff] }
  0x1e   :  { %1804 = vmatprep.subr.mxu1 %v73_v63  ;;  %1771 = vmatprep.subr.mxu0 %v40_v0  ;;  %v130_v33 = vld [vmem:[%s3813_s1 + $0x358] sm:$0xff]  ;;  %v145_v35 = vld [vmem:[%s3813_s1 + $0x3d0] sm:$0xff]  ;;  %v96_v36 = vld [vmem:[%s3813_s1 + $0x248] sm:$0xff] }
  0x1f   :  { %1805 = vmatpush3.msra.mxu1 %v57_v1  ;;  %1772 = vmatpush3.msra.mxu0 %v24_v2  ;;  %v129_v37 = vld [vmem:[%s3813_s1 + $0x350] sm:$0xff]  ;;  %v111_v38 = vld [vmem:[%s3813_s1 + $0x2c0] sm:$0xff]  ;;  %v144_v39 = vld [vmem:[%s3813_s1 + $0x3c8] sm:$0xff] }
  0x20   :  { %1806 = vmatprep.subr.mxu1 %v72_v3  ;;  %1773 = vmatprep.subr.mxu0 %v39_v6  ;;  %v95_v40 = vld [vmem:[%s3813_s1 + $0x240] sm:$0xff]  ;;  %v128_v41 = vld [vmem:[%s3813_s1 + $0x348] sm:$0xff]  ;;  %v110_v42 = vld [vmem:[%s3813_s1 + $0x2b8] sm:$0xff] }
  0x21   :  { %739 = vmatprep.mubr.f32.mxu0 %v533_v4  ;;  %1774 = vmatpush3.msra.mxu0 %v23_v7  ;;  %v143_v43 = vld [vmem:[%s3813_s1 + $0x3c0] sm:$0xff]  ;;  %v94_v44 = vld [vmem:[%s3813_s1 + $0x238] sm:$0xff]  ;;  %v109_v46 = vld [vmem:[%s3813_s1 + $0x2b0] sm:$0xff] }
  0x22   :  { %1807 = vmatpush3.msra.mxu1 %v56_v8  ;;  %740 = vmatmul.mubr.f32.vlgmr.msra.gmra.mxu0 %v525_v58  ;;  %v127_v45 = vld [vmem:[%s3813_s1 + $0x340] sm:$0xff]  ;;  %v142_v47 = vld [vmem:[%s3813_s1 + $0x3b8] sm:$0xff]  ;;  %v93_v49 = vld [vmem:[%s3813_s1 + $0x230] sm:$0xff] }
  0x23   :  { %1808 = vmatprep.subr.mxu1 %v71_v9  ;;  %1813 = vmatprep.subr.mxu0 %v118_v10  ;;  %v126_v50 = vld [vmem:[%s3813_s1 + $0x338] sm:$0xff]  ;;  %v108_v51 = vld [vmem:[%s3813_s1 + $0x2a8] sm:$0xff]  ;;  %v141_v52 = vld [vmem:[%s3813_s1 + $0x3b0] sm:$0xff] }
  0x24   :  { %1809 = vmatpush3.msra.mxu1 %v55_v11  ;;  %809 = vmatprep.mubr.f32.mxu1 %v534_v12  ;;  %v92_v53 = vld [vmem:[%s3813_s1 + $0x228] sm:$0xff]  ;;  %v125_v54 = vld [vmem:[%s3813_s1 + $0x330] sm:$0xff]  ;;  %v107_v55 = vld [vmem:[%s3813_s1 + $0x2a0] sm:$0xff] }
  0x25   :  { %1814 = vmatpush3.msra.mxu0 %v102_v13  ;;  %810 = vmatmul.mubr.f32.vlgmr.msra.gmra.mxu1 %v532_v5  ;;  %v140_v56 = vld [vmem:[%s3813_s1 + $0x3a8] sm:$0xff]  ;;  %v91_v57 = vld [vmem:[%s3813_s1 + $0x220] sm:$0xff]  ;;  %v106_v60 = vld [vmem:[%s3813_s1 + $0x298] sm:$0xff] }
  0x26   :  { %1815 = vmatprep.subr.mxu0 %v117_v14  ;;  %1848 = vmatprep.subr.mxu1 %v150_v15  ;;  %v16_v58 = vld [vmem:[%s3812_s0 + $0x8] sm:$0xff]  ;;  %v139_v61 = vld [vmem:[%s3813_s1 + $0x3a0] sm:$0xff]  ;;  %v90_v62 = vld [vmem:[%s3813_s1 + $0x218] sm:$0xff] }
  0x27   :  { %1816 = vmatpush3.msra.mxu0 %v101_v16  ;;  %1849 = vmatpush3.msra.mxu1 %v134_v17  ;;  %v124_v59 = vld [vmem:[%s3813_s1 + $0x328] sm:$0xff]  ;;  %v123_v63 = vld [vmem:[%s3813_s1 + $0x320] sm:$0xff]  ;;  %v105_v0 = vld [vmem:[%s3813_s1 + $0x290] sm:$0xff]  ;;  %v535_v1 = vcombine.high %v16_v58, %v16_v58  ;;  %v542_v4 = vrot.slane %v16_v58, %v2450_v48 }
  0x28   :  { %1817 = vmatprep.subr.mxu0 %v116_v18  ;;  %1850 = vmatprep.subr.mxu1 %v149_v19  ;;  %v138_v2 = vld [vmem:[%s3813_s1 + $0x398] sm:$0xff]  ;;  %v89_v3 = vld [vmem:[%s3813_s1 + $0x210] sm:$0xff]  ;;  %v104_v6 = vld [vmem:[%s3813_s1 + $0x288] sm:$0xff] }
  0x29   :  { %1818 = vmatpush3.msra.mxu0 %v100_v20  ;;  %1851 = vmatpush3.msra.mxu1 %v133_v21  ;;  %v122_v5 = vld [vmem:[%s3813_s1 + $0x318] sm:$0xff]  ;;  %v137_v7 = vld [vmem:[%s3813_s1 + $0x390] sm:$0xff]  ;;  %v88_v8 = vld [vmem:[%s3813_s1 + $0x208] sm:$0xff]  ;;  %v549_v11 = vrot.slane %v535_v1, %v2450_v48  ;;  %v550_v14 = vcombine.high %v542_v4, %v542_v4 }
  0x2a   :  { %1819 = vmatprep.subr.mxu0 %v115_v22  ;;  %1852 = vmatprep.subr.mxu1 %v148_v23  ;;  %v121_v9 = vld [vmem:[%s3813_s1 + $0x310] sm:$0xff]  ;;  %v103_v10 = vld [vmem:[%s3813_s1 + $0x280] sm:$0xff]  ;;  %v136_v12 = vld [vmem:[%s3813_s1 + $0x388] sm:$0xff] }
  0x2b   :  { %1820 = vmatpush3.msra.mxu0 %v99_v24  ;;  %1853 = vmatpush3.msra.mxu1 %v132_v25  ;;  %v87_v13 = vld [vmem:[%s3813_s1 + $0x200] sm:$0xff]  ;;  %v120_v15 = vld [vmem:[%s3813_s1 + $0x308] sm:$0xff]  ;;  %v182_v17 = vld [vmem:[%s3813_s1 + $0x4f8] sm:$0xff]  ;;  %v551_v19 = vcombine.high %v549_v11, %v549_v11 }
  0x2c   :  { %1821 = vmatprep.subr.mxu0 %v114_v26  ;;  %1854 = vmatprep.subr.mxu1 %v147_v27  ;;  %v135_v16 = vld [vmem:[%s3813_s1 + $0x380] sm:$0xff]  ;;  %v166_v20 = vld [vmem:[%s3813_s1 + $0x478] sm:$0xff]  ;;  %v181_v21 = vld [vmem:[%s3813_s1 + $0x4f0] sm:$0xff] }
  0x2d   :  { %1822 = vmatpush3.msra.mxu0 %v98_v28  ;;  %1855 = vmatpush3.msra.mxu1 %v131_v29  ;;  %v119_v18 = vld [vmem:[%s3813_s1 + $0x300] sm:$0xff]  ;;  %v214_v22 = vld [vmem:[%s3813_s1 + $0x5f8] sm:$0xff]  ;;  %v165_v23 = vld [vmem:[%s3813_s1 + $0x470] sm:$0xff] }
  0x2e   :  { %1823 = vmatprep.subr.mxu0 %v113_v30  ;;  %1856 = vmatprep.subr.mxu1 %v146_v31  ;;  %v198_v24 = vld [vmem:[%s3813_s1 + $0x578] sm:$0xff]  ;;  %v180_v25 = vld [vmem:[%s3813_s1 + $0x4e8] sm:$0xff]  ;;  %v213_v26 = vld [vmem:[%s3813_s1 + $0x5f0] sm:$0xff] }
  0x2f   :  { %1824 = vmatpush3.msra.mxu0 %v97_v32  ;;  %1857 = vmatpush3.msra.mxu1 %v130_v33  ;;  %v164_v27 = vld [vmem:[%s3813_s1 + $0x468] sm:$0xff]  ;;  %v197_v28 = vld [vmem:[%s3813_s1 + $0x570] sm:$0xff]  ;;  %v179_v29 = vld [vmem:[%s3813_s1 + $0x4e0] sm:$0xff] }
  0x30   :  { %1825 = vmatprep.subr.mxu0 %v112_v34  ;;  %1858 = vmatprep.subr.mxu1 %v145_v35  ;;  %v212_v30 = vld [vmem:[%s3813_s1 + $0x5e8] sm:$0xff]  ;;  %v163_v31 = vld [vmem:[%s3813_s1 + $0x460] sm:$0xff]  ;;  %v178_v33 = vld [vmem:[%s3813_s1 + $0x4d8] sm:$0xff] }
  0x31   :  { %1826 = vmatpush3.msra.mxu0 %v96_v36  ;;  %1859 = vmatpush3.msra.mxu1 %v129_v37  ;;  %v196_v32 = vld [vmem:[%s3813_s1 + $0x568] sm:$0xff]  ;;  %v211_v34 = vld [vmem:[%s3813_s1 + $0x5e0] sm:$0xff]  ;;  %v162_v35 = vld [vmem:[%s3813_s1 + $0x458] sm:$0xff] }
  0x32   :  { %1827 = vmatprep.subr.mxu0 %v111_v38  ;;  %1860 = vmatprep.subr.mxu1 %v144_v39  ;;  %v195_v36 = vld [vmem:[%s3813_s1 + $0x560] sm:$0xff]  ;;  %v177_v37 = vld [vmem:[%s3813_s1 + $0x4d0] sm:$0xff]  ;;  %v210_v38 = vld [vmem:[%s3813_s1 + $0x5d8] sm:$0xff] }
  0x33   :  { %1828 = vmatpush3.msra.mxu0 %v95_v40  ;;  %1861 = vmatpush3.msra.mxu1 %v128_v41  ;;  %v161_v39 = vld [vmem:[%s3813_s1 + $0x450] sm:$0xff]  ;;  %v194_v40 = vld [vmem:[%s3813_s1 + $0x558] sm:$0xff]  ;;  %v176_v41 = vld [vmem:[%s3813_s1 + $0x4c8] sm:$0xff] }
  0x34   :  { %1829 = vmatprep.subr.mxu0 %v110_v42  ;;  %1862 = vmatprep.subr.mxu1 %v143_v43  ;;  %v209_v42 = vld [vmem:[%s3813_s1 + $0x5d0] sm:$0xff]  ;;  %v160_v43 = vld [vmem:[%s3813_s1 + $0x448] sm:$0xff] }
  0x35   :  { %1830 = vmatpush3.msra.mxu0 %v94_v44  ;;  %1863 = vmatpush3.msra.mxu1 %v127_v45  ;;  %v193_v44 = vld [vmem:[%s3813_s1 + $0x550] sm:$0xff]  ;;  %v175_v45 = vld [vmem:[%s3813_s1 + $0x4c0] sm:$0xff]  ;;  %v172_v58 = vld [vmem:[%s3813_s1 + $0x4a8] sm:$0xff] }
  0x36   :  { %1831 = vmatprep.subr.mxu0 %v109_v46  ;;  %1864 = vmatprep.subr.mxu1 %v142_v47  ;;  %v208_v46 = vld [vmem:[%s3813_s1 + $0x5c8] sm:$0xff]  ;;  %v159_v47 = vld [vmem:[%s3813_s1 + $0x440] sm:$0xff]  ;;  %v17_v1 = vld [vmem:[%s3812_s0 + $0x10] sm:$0xff] }
  0x37   :  { %1832 = vmatpush3.msra.mxu0 %v93_v49  ;;  %1865 = vmatpush3.msra.mxu1 %v126_v50  ;;  %v192_v49 = vld [vmem:[%s3813_s1 + $0x548] sm:$0xff]  ;;  %v174_v50 = vld [vmem:[%s3813_s1 + $0x4b8] sm:$0xff] }
  0x38   :  { %1833 = vmatprep.subr.mxu0 %v108_v51  ;;  %1866 = vmatprep.subr.mxu1 %v141_v52  ;;  %v207_v51 = vld [vmem:[%s3813_s1 + $0x5c0] sm:$0xff]  ;;  %v158_v52 = vld [vmem:[%s3813_s1 + $0x438] sm:$0xff] }
  0x39   :  { %1834 = vmatpush3.msra.mxu0 %v92_v53  ;;  %1867 = vmatpush3.msra.mxu1 %v125_v54  ;;  %v191_v53 = vld [vmem:[%s3813_s1 + $0x540] sm:$0xff]  ;;  %v173_v54 = vld [vmem:[%s3813_s1 + $0x4b0] sm:$0xff] }
  0x3a   :  { %1835 = vmatprep.subr.mxu0 %v107_v55  ;;  %1868 = vmatprep.subr.mxu1 %v140_v56  ;;  %v206_v55 = vld [vmem:[%s3813_s1 + $0x5b8] sm:$0xff]  ;;  %v157_v56 = vld [vmem:[%s3813_s1 + $0x430] sm:$0xff] }
  0x3b   :  { %1836 = vmatpush3.msra.mxu0 %v91_v57  ;;  %1869 = vmatpush3.msra.mxu1 %v124_v59  ;;  %v190_v57 = vld [vmem:[%s3813_s1 + $0x538] sm:$0xff]  ;;  %v205_v59 = vld [vmem:[%s3813_s1 + $0x5b0] sm:$0xff] }
  0x3c   :  { %1837 = vmatprep.subr.mxu0 %v106_v60  ;;  %1870 = vmatprep.subr.mxu1 %v139_v61  ;;  %v156_v60 = vld [vmem:[%s3813_s1 + $0x428] sm:$0xff]  ;;  %v189_v61 = vld [vmem:[%s3813_s1 + $0x530] sm:$0xff] }
  0x3d   :  { %1838 = vmatpush3.msra.mxu0 %v90_v62  ;;  %1871 = vmatpush3.msra.mxu1 %v123_v63  ;;  %v171_v62 = vld [vmem:[%s3813_s1 + $0x4a0] sm:$0xff]  ;;  %v204_v63 = vld [vmem:[%s3813_s1 + $0x5a8] sm:$0xff] }
  0x3e   :  { %1839 = vmatprep.subr.mxu0 %v105_v0  ;;  %1872 = vmatprep.subr.mxu1 %v138_v2  ;;  %v155_v0 = vld [vmem:[%s3813_s1 + $0x420] sm:$0xff]  ;;  %v188_v2 = vld [vmem:[%s3813_s1 + $0x528] sm:$0xff] }
  0x3f   :  { %1840 = vmatpush3.msra.mxu0 %v89_v3  ;;  %1873 = vmatpush3.msra.mxu1 %v122_v5  ;;  %v170_v3 = vld [vmem:[%s3813_s1 + $0x498] sm:$0xff] }
  0x40   :  { %1841 = vmatprep.subr.mxu0 %v104_v6  ;;  %1874 = vmatprep.subr.mxu1 %v137_v7  ;;  %v154_v5 = vld [vmem:[%s3813_s1 + $0x418] sm:$0xff]  ;;  %v187_v6 = vld [vmem:[%s3813_s1 + $0x520] sm:$0xff]  ;;  %v169_v7 = vld [vmem:[%s3813_s1 + $0x490] sm:$0xff] }
  0x41   :  { %1842 = vmatpush3.msra.mxu0 %v88_v8  ;;  %1875 = vmatpush3.msra.mxu1 %v121_v9  ;;  %v552_v8 = vcombine.high %v17_v1, %v17_v1  ;;  %v202_v9 = vld [vmem:[%s3813_s1 + $0x598] sm:$0xff] }
  0x42   :  { %1843 = vmatprep.subr.mxu0 %v103_v10  ;;  %1876 = vmatprep.subr.mxu1 %v136_v12  ;;  %v153_v10 = vld [vmem:[%s3813_s1 + $0x410] sm:$0xff]  ;;  %v186_v12 = vld [vmem:[%s3813_s1 + $0x518] sm:$0xff] }
  0x43   :  { %1844 = vmatpush3.msra.mxu0 %v87_v13  ;;  %879 = vmatprep.mubr.f32.mxu0 %v550_v14  ;;  %v168_v13 = vld [vmem:[%s3813_s1 + $0x488] sm:$0xff]  ;;  %v201_v14 = vld [vmem:[%s3813_s1 + $0x590] sm:$0xff] }
  0x44   :  { %1877 = vmatpush3.msra.mxu1 %v120_v15  ;;  %880 = vmatmul.mubr.f32.vlgmr.msra.gmra.mxu0 %v542_v4  ;;  %v203_v4 = vld [vmem:[%s3813_s1 + $0x5a0] sm:$0xff]  ;;  %v152_v15 = vld [vmem:[%s3813_s1 + $0x408] sm:$0xff] }
  0x45   :  { %1878 = vmatprep.subr.mxu1 %v135_v16  ;;  %1883 = vmatprep.subr.mxu0 %v182_v17  ;;  %v185_v16 = vld [vmem:[%s3813_s1 + $0x510] sm:$0xff]  ;;  %v167_v17 = vld [vmem:[%s3813_s1 + $0x480] sm:$0xff] }
  0x46   :  { %1879 = vmatpush3.msra.mxu1 %v119_v18  ;;  %949 = vmatprep.mubr.f32.mxu1 %v551_v19  ;;  %v566_v18 = vrot.slane %v552_v8, %v2450_v48  ;;  %v200_v19 = vld [vmem:[%s3813_s1 + $0x588] sm:$0xff]  ;;  %v18_v8 = vld [vmem:[%s3812_s0 + $0x18] sm:$0xff] }
  0x47   :  { %1884 = vmatpush3.msra.mxu0 %v166_v20  ;;  %950 = vmatmul.mubr.f32.vlgmr.msra.gmra.mxu1 %v549_v11  ;;  %v559_v11 = vrot.slane %v17_v1, %v2450_v48  ;;  %v151_v20 = vld [vmem:[%s3813_s1 + $0x400] sm:$0xff]  ;;  %v236_v1 = vld [vmem:[%s3813_s1 + $0x6a8] sm:$0xff] }
  0x48   :  { %1885 = vmatprep.subr.mxu0 %v181_v21  ;;  %1918 = vmatprep.subr.mxu1 %v214_v22  ;;  %v184_v22 = vld [vmem:[%s3813_s1 + $0x508] sm:$0xff] }
  0x49   :  { %1886 = vmatpush3.msra.mxu0 %v165_v23  ;;  %1919 = vmatpush3.msra.mxu1 %v198_v24  ;;  %v567_v21 = vcombine.high %v559_v11, %v559_v11  ;;  %v199_v23 = vld [vmem:[%s3813_s1 + $0x580] sm:$0xff]  ;;  %v246_v24 = vld [vmem:[%s3813_s1 + $0x6f8] sm:$0xff] }
  0x4a   :  { %1887 = vmatprep.subr.mxu0 %v180_v25  ;;  %1920 = vmatprep.subr.mxu1 %v213_v26  ;;  %v183_v25 = vld [vmem:[%s3813_s1 + $0x500] sm:$0xff]  ;;  %v568_v26 = vcombine.high %v566_v18, %v566_v18 }
  0x4b   :  { %1888 = vmatpush3.msra.mxu0 %v164_v27  ;;  %1921 = vmatpush3.msra.mxu1 %v197_v28  ;;  %v230_v27 = vld [vmem:[%s3813_s1 + $0x678] sm:$0xff]  ;;  %v245_v28 = vld [vmem:[%s3813_s1 + $0x6f0] sm:$0xff] }
  0x4c   :  { %1889 = vmatprep.subr.mxu0 %v179_v29  ;;  %1922 = vmatprep.subr.mxu1 %v212_v30  ;;  %v278_v29 = vld [vmem:[%s3813_s1 + $0x7f8] sm:$0xff]  ;;  %v229_v30 = vld [vmem:[%s3813_s1 + $0x670] sm:$0xff] }
  0x4d   :  { %1890 = vmatpush3.msra.mxu0 %v163_v31  ;;  %1923 = vmatpush3.msra.mxu1 %v196_v32  ;;  %v262_v31 = vld [vmem:[%s3813_s1 + $0x778] sm:$0xff]  ;;  %v244_v32 = vld [vmem:[%s3813_s1 + $0x6e8] sm:$0xff] }
  0x4e   :  { %1891 = vmatprep.subr.mxu0 %v178_v33  ;;  %1924 = vmatprep.subr.mxu1 %v211_v34  ;;  %v277_v33 = vld [vmem:[%s3813_s1 + $0x7f0] sm:$0xff]  ;;  %v228_v34 = vld [vmem:[%s3813_s1 + $0x668] sm:$0xff] }
  0x4f   :  { %1892 = vmatpush3.msra.mxu0 %v162_v35  ;;  %1925 = vmatpush3.msra.mxu1 %v195_v36  ;;  %v261_v35 = vld [vmem:[%s3813_s1 + $0x770] sm:$0xff]  ;;  %v243_v36 = vld [vmem:[%s3813_s1 + $0x6e0] sm:$0xff] }
  0x50   :  { %1893 = vmatprep.subr.mxu0 %v177_v37  ;;  %1926 = vmatprep.subr.mxu1 %v210_v38  ;;  %v276_v37 = vld [vmem:[%s3813_s1 + $0x7e8] sm:$0xff]  ;;  %v227_v38 = vld [vmem:[%s3813_s1 + $0x660] sm:$0xff] }
  0x51   :  { %1894 = vmatpush3.msra.mxu0 %v161_v39  ;;  %1927 = vmatpush3.msra.mxu1 %v194_v40  ;;  %v260_v39 = vld [vmem:[%s3813_s1 + $0x768] sm:$0xff]  ;;  %v242_v40 = vld [vmem:[%s3813_s1 + $0x6d8] sm:$0xff] }
  0x52   :  { %1895 = vmatprep.subr.mxu0 %v176_v41  ;;  %1928 = vmatprep.subr.mxu1 %v209_v42  ;;  %v275_v41 = vld [vmem:[%s3813_s1 + $0x7e0] sm:$0xff]  ;;  %v226_v42 = vld [vmem:[%s3813_s1 + $0x658] sm:$0xff] }
  0x53   :  { %1896 = vmatpush3.msra.mxu0 %v160_v43  ;;  %1929 = vmatpush3.msra.mxu1 %v193_v44  ;;  %v259_v43 = vld [vmem:[%s3813_s1 + $0x760] sm:$0xff]  ;;  %v241_v44 = vld [vmem:[%s3813_s1 + $0x6d0] sm:$0xff] }
  0x54   :  { %1897 = vmatprep.subr.mxu0 %v175_v45  ;;  %1930 = vmatprep.subr.mxu1 %v208_v46  ;;  %v274_v45 = vld [vmem:[%s3813_s1 + $0x7d8] sm:$0xff]  ;;  %v225_v46 = vld [vmem:[%s3813_s1 + $0x650] sm:$0xff] }
  0x55   :  { %1898 = vmatpush3.msra.mxu0 %v159_v47  ;;  %1931 = vmatpush3.msra.mxu1 %v192_v49  ;;  %v258_v47 = vld [vmem:[%s3813_s1 + $0x758] sm:$0xff]  ;;  %v240_v49 = vld [vmem:[%s3813_s1 + $0x6c8] sm:$0xff] }
  0x56   :  { %1899 = vmatprep.subr.mxu0 %v174_v50  ;;  %1932 = vmatprep.subr.mxu1 %v207_v51  ;;  %v273_v50 = vld [vmem:[%s3813_s1 + $0x7d0] sm:$0xff]  ;;  %v224_v51 = vld [vmem:[%s3813_s1 + $0x648] sm:$0xff] }
  0x57   :  { %1900 = vmatpush3.msra.mxu0 %v158_v52  ;;  %1933 = vmatpush3.msra.mxu1 %v191_v53  ;;  %v257_v52 = vld [vmem:[%s3813_s1 + $0x750] sm:$0xff]  ;;  %v239_v53 = vld [vmem:[%s3813_s1 + $0x6c0] sm:$0xff] }
  0x58   :  { %1901 = vmatprep.subr.mxu0 %v173_v54  ;;  %1934 = vmatprep.subr.mxu1 %v206_v55  ;;  %v272_v54 = vld [vmem:[%s3813_s1 + $0x7c8] sm:$0xff]  ;;  %v223_v55 = vld [vmem:[%s3813_s1 + $0x640] sm:$0xff] }
  0x59   :  { %1902 = vmatpush3.msra.mxu0 %v157_v56  ;;  %1935 = vmatpush3.msra.mxu1 %v190_v57  ;;  %v256_v56 = vld [vmem:[%s3813_s1 + $0x748] sm:$0xff]  ;;  %v238_v57 = vld [vmem:[%s3813_s1 + $0x6b8] sm:$0xff] }
  0x5a   :  { %1903 = vmatprep.subr.mxu0 %v172_v58  ;;  %1936 = vmatprep.subr.mxu1 %v205_v59  ;;  %v271_v58 = vld [vmem:[%s3813_s1 + $0x7c0] sm:$0xff]  ;;  %v222_v59 = vld [vmem:[%s3813_s1 + $0x638] sm:$0xff] }
  0x5b   :  { %1904 = vmatpush3.msra.mxu0 %v156_v60  ;;  %1937 = vmatpush3.msra.mxu1 %v189_v61  ;;  %v255_v60 = vld [vmem:[%s3813_s1 + $0x740] sm:$0xff]  ;;  %v237_v61 = vld [vmem:[%s3813_s1 + $0x6b0] sm:$0xff] }
  0x5c   :  { %1905 = vmatprep.subr.mxu0 %v171_v62  ;;  %1938 = vmatprep.subr.mxu1 %v204_v63  ;;  %v270_v62 = vld [vmem:[%s3813_s1 + $0x7b8] sm:$0xff]  ;;  %v221_v63 = vld [vmem:[%s3813_s1 + $0x630] sm:$0xff] }
  0x5d   :  { %1906 = vmatpush3.msra.mxu0 %v155_v0  ;;  %1939 = vmatpush3.msra.mxu1 %v188_v2  ;;  %v254_v0 = vld [vmem:[%s3813_s1 + $0x738] sm:$0xff]  ;;  %v269_v2 = vld [vmem:[%s3813_s1 + $0x7b0] sm:$0xff] }
  0x5e   :  { %1907 = vmatprep.subr.mxu0 %v170_v3  ;;  %1940 = vmatprep.subr.mxu1 %v203_v4  ;;  %v220_v3 = vld [vmem:[%s3813_s1 + $0x628] sm:$0xff]  ;;  %v253_v4 = vld [vmem:[%s3813_s1 + $0x730] sm:$0xff] }
  0x5f   :  { %1908 = vmatpush3.msra.mxu0 %v154_v5  ;;  %1941 = vmatpush3.msra.mxu1 %v187_v6  ;;  %v235_v5 = vld [vmem:[%s3813_s1 + $0x6a0] sm:$0xff]  ;;  %v268_v6 = vld [vmem:[%s3813_s1 + $0x7a8] sm:$0xff] }
  0x60   :  { %1909 = vmatprep.subr.mxu0 %v169_v7  ;;  %1942 = vmatprep.subr.mxu1 %v202_v9  ;;  %v219_v7 = vld [vmem:[%s3813_s1 + $0x620] sm:$0xff]  ;;  %v252_v9 = vld [vmem:[%s3813_s1 + $0x728] sm:$0xff] }
  0x61   :  { %1910 = vmatpush3.msra.mxu0 %v153_v10  ;;  %1943 = vmatpush3.msra.mxu1 %v186_v12  ;;  %v234_v10 = vld [vmem:[%s3813_s1 + $0x698] sm:$0xff] }
  0x62   :  { %1911 = vmatprep.subr.mxu0 %v168_v13  ;;  %1944 = vmatprep.subr.mxu1 %v201_v14  ;;  %v218_v12 = vld [vmem:[%s3813_s1 + $0x618] sm:$0xff]  ;;  %v251_v13 = vld [vmem:[%s3813_s1 + $0x720] sm:$0xff]  ;;  %v233_v14 = vld [vmem:[%s3813_s1 + $0x690] sm:$0xff] }
  0x63   :  { %1912 = vmatpush3.msra.mxu0 %v152_v15  ;;  %1945 = vmatpush3.msra.mxu1 %v185_v16  ;;  %v569_v15 = vcombine.high %v18_v8, %v18_v8  ;;  %v266_v16 = vld [vmem:[%s3813_s1 + $0x798] sm:$0xff] }
  0x64   :  { %1913 = vmatprep.subr.mxu0 %v167_v17  ;;  %1946 = vmatprep.subr.mxu1 %v200_v19  ;;  %v217_v17 = vld [vmem:[%s3813_s1 + $0x610] sm:$0xff]  ;;  %v250_v19 = vld [vmem:[%s3813_s1 + $0x718] sm:$0xff] }
  0x65   :  { %1914 = vmatpush3.msra.mxu0 %v151_v20  ;;  %1019 = vmatprep.mubr.f32.mxu0 %v567_v21  ;;  %v232_v20 = vld [vmem:[%s3813_s1 + $0x688] sm:$0xff]  ;;  %v265_v21 = vld [vmem:[%s3813_s1 + $0x790] sm:$0xff] }
  0x66   :  { %1947 = vmatpush3.msra.mxu1 %v184_v22  ;;  %1020 = vmatmul.mubr.f32.vlgmr.msra.gmra.mxu0 %v559_v11  ;;  %v267_v11 = vld [vmem:[%s3813_s1 + $0x7a0] sm:$0xff]  ;;  %v216_v22 = vld [vmem:[%s3813_s1 + $0x608] sm:$0xff] }
  0x67   :  { %1948 = vmatprep.subr.mxu1 %v199_v23  ;;  %1953 = vmatprep.subr.mxu0 %v246_v24  ;;  %v249_v23 = vld [vmem:[%s3813_s1 + $0x710] sm:$0xff]  ;;  %v231_v24 = vld [vmem:[%s3813_s1 + $0x680] sm:$0xff] }
  0x68   :  { %1949 = vmatpush3.msra.mxu1 %v183_v25  ;;  %1089 = vmatprep.mubr.f32.mxu1 %v568_v26  ;;  %v583_v25 = vrot.slane %v569_v15, %v2450_v48  ;;  %v264_v26 = vld [vmem:[%s3813_s1 + $0x788] sm:$0xff]  ;;  %v19_v15 = vld [vmem:[%s3812_s0 + $0x20] sm:$0xff] }
  0x69   :  { %1954 = vmatpush3.msra.mxu0 %v230_v27  ;;  %1090 = vmatmul.mubr.f32.vlgmr.msra.gmra.mxu1 %v566_v18  ;;  %v576_v18 = vrot.slane %v18_v8, %v2450_v48  ;;  %v215_v27 = vld [vmem:[%s3813_s1 + $0x600] sm:$0xff]  ;;  %v300_v8 = vld [vmem:[%s3813_s1 + $0x8a8] sm:$0xff] }
  0x6a   :  { %1955 = vmatprep.subr.mxu0 %v245_v28  ;;  %1988 = vmatprep.subr.mxu1 %v278_v29  ;;  %v248_v29 = vld [vmem:[%s3813_s1 + $0x708] sm:$0xff] }
  0x6b   :  { %1956 = vmatpush3.msra.mxu0 %v229_v30  ;;  %1989 = vmatpush3.msra.mxu1 %v262_v31  ;;  %v584_v28 = vcombine.high %v576_v18, %v576_v18  ;;  %v263_v30 = vld [vmem:[%s3813_s1 + $0x780] sm:$0xff]  ;;  %v310_v31 = vld [vmem:[%s3813_s1 + $0x8f8] sm:$0xff] }
  0x6c   :  { %1957 = vmatprep.subr.mxu0 %v244_v32  ;;  %1990 = vmatprep.subr.mxu1 %v277_v33  ;;  %v247_v32 = vld [vmem:[%s3813_s1 + $0x700] sm:$0xff]  ;;  %v585_v33 = vcombine.high %v583_v25, %v583_v25 }
  0x6d   :  { %1958 = vmatpush3.msra.mxu0 %v228_v34  ;;  %1991 = vmatpush3.msra.mxu1 %v261_v35  ;;  %v294_v34 = vld [vmem:[%s3813_s1 + $0x878] sm:$0xff]  ;;  %v309_v35 = vld [vmem:[%s3813_s1 + $0x8f0] sm:$0xff] }
  0x6e   :  { %1959 = vmatprep.subr.mxu0 %v243_v36  ;;  %1992 = vmatprep.subr.mxu1 %v276_v37  ;;  %v342_v36 = vld [vmem:[%s3813_s1 + $0x9f8] sm:$0xff]  ;;  %v293_v37 = vld [vmem:[%s3813_s1 + $0x870] sm:$0xff] }
  0x6f   :  { %1960 = vmatpush3.msra.mxu0 %v227_v38  ;;  %1993 = vmatpush3.msra.mxu1 %v260_v39  ;;  %v326_v38 = vld [vmem:[%s3813_s1 + $0x978] sm:$0xff]  ;;  %v308_v39 = vld [vmem:[%s3813_s1 + $0x8e8] sm:$0xff] }
  0x70   :  { %1961 = vmatprep.subr.mxu0 %v242_v40  ;;  %1994 = vmatprep.subr.mxu1 %v275_v41  ;;  %v341_v40 = vld [vmem:[%s3813_s1 + $0x9f0] sm:$0xff]  ;;  %v292_v41 = vld [vmem:[%s3813_s1 + $0x868] sm:$0xff] }
  0x71   :  { %1962 = vmatpush3.msra.mxu0 %v226_v42  ;;  %1995 = vmatpush3.msra.mxu1 %v259_v43  ;;  %v325_v42 = vld [vmem:[%s3813_s1 + $0x970] sm:$0xff]  ;;  %v307_v43 = vld [vmem:[%s3813_s1 + $0x8e0] sm:$0xff] }
  0x72   :  { %1963 = vmatprep.subr.mxu0 %v241_v44  ;;  %1996 = vmatprep.subr.mxu1 %v274_v45  ;;  %v340_v44 = vld [vmem:[%s3813_s1 + $0x9e8] sm:$0xff]  ;;  %v291_v45 = vld [vmem:[%s3813_s1 + $0x860] sm:$0xff] }
  0x73   :  { %1964 = vmatpush3.msra.mxu0 %v225_v46  ;;  %1997 = vmatpush3.msra.mxu1 %v258_v47  ;;  %v324_v46 = vld [vmem:[%s3813_s1 + $0x968] sm:$0xff]  ;;  %v306_v47 = vld [vmem:[%s3813_s1 + $0x8d8] sm:$0xff] }
  0x74   :  { %1965 = vmatprep.subr.mxu0 %v240_v49  ;;  %1998 = vmatprep.subr.mxu1 %v273_v50  ;;  %v339_v49 = vld [vmem:[%s3813_s1 + $0x9e0] sm:$0xff]  ;;  %v290_v50 = vld [vmem:[%s3813_s1 + $0x858] sm:$0xff] }
  0x75   :  { %1966 = vmatpush3.msra.mxu0 %v224_v51  ;;  %1999 = vmatpush3.msra.mxu1 %v257_v52  ;;  %v323_v51 = vld [vmem:[%s3813_s1 + $0x960] sm:$0xff]  ;;  %v305_v52 = vld [vmem:[%s3813_s1 + $0x8d0] sm:$0xff] }
  0x76   :  { %1967 = vmatprep.subr.mxu0 %v239_v53  ;;  %2000 = vmatprep.subr.mxu1 %v272_v54  ;;  %v338_v53 = vld [vmem:[%s3813_s1 + $0x9d8] sm:$0xff]  ;;  %v289_v54 = vld [vmem:[%s3813_s1 + $0x850] sm:$0xff] }
  0x77   :  { %1968 = vmatpush3.msra.mxu0 %v223_v55  ;;  %2001 = vmatpush3.msra.mxu1 %v256_v56  ;;  %v322_v55 = vld [vmem:[%s3813_s1 + $0x958] sm:$0xff]  ;;  %v304_v56 = vld [vmem:[%s3813_s1 + $0x8c8] sm:$0xff] }
  0x78   :  { %1969 = vmatprep.subr.mxu0 %v238_v57  ;;  %2002 = vmatprep.subr.mxu1 %v271_v58  ;;  %v337_v57 = vld [vmem:[%s3813_s1 + $0x9d0] sm:$0xff]  ;;  %v288_v58 = vld [vmem:[%s3813_s1 + $0x848] sm:$0xff] }
  0x79   :  { %1970 = vmatpush3.msra.mxu0 %v222_v59  ;;  %2003 = vmatpush3.msra.mxu1 %v255_v60  ;;  %v321_v59 = vld [vmem:[%s3813_s1 + $0x950] sm:$0xff]  ;;  %v303_v60 = vld [vmem:[%s3813_s1 + $0x8c0] sm:$0xff] }
  0x7a   :  { %1971 = vmatprep.subr.mxu0 %v237_v61  ;;  %2004 = vmatprep.subr.mxu1 %v270_v62  ;;  %v336_v61 = vld [vmem:[%s3813_s1 + $0x9c8] sm:$0xff]  ;;  %v287_v62 = vld [vmem:[%s3813_s1 + $0x840] sm:$0xff] }
  0x7b   :  { %1972 = vmatpush3.msra.mxu0 %v221_v63  ;;  %2005 = vmatpush3.msra.mxu1 %v254_v0  ;;  %v320_v63 = vld [vmem:[%s3813_s1 + $0x948] sm:$0xff]  ;;  %v302_v0 = vld [vmem:[%s3813_s1 + $0x8b8] sm:$0xff] }
  0x7c   :  { %1973 = vmatprep.subr.mxu0 %v236_v1  ;;  %2006 = vmatprep.subr.mxu1 %v269_v2  ;;  %v335_v1 = vld [vmem:[%s3813_s1 + $0x9c0] sm:$0xff]  ;;  %v286_v2 = vld [vmem:[%s3813_s1 + $0x838] sm:$0xff] }
  0x7d   :  { %1974 = vmatpush3.msra.mxu0 %v220_v3  ;;  %2007 = vmatpush3.msra.mxu1 %v253_v4  ;;  %v319_v3 = vld [vmem:[%s3813_s1 + $0x940] sm:$0xff]  ;;  %v301_v4 = vld [vmem:[%s3813_s1 + $0x8b0] sm:$0xff] }
  0x7e   :  { %1975 = vmatprep.subr.mxu0 %v235_v5  ;;  %2008 = vmatprep.subr.mxu1 %v268_v6  ;;  %v334_v5 = vld [vmem:[%s3813_s1 + $0x9b8] sm:$0xff]  ;;  %v285_v6 = vld [vmem:[%s3813_s1 + $0x830] sm:$0xff] }
  0x7f   :  { %1976 = vmatpush3.msra.mxu0 %v219_v7  ;;  %2009 = vmatpush3.msra.mxu1 %v252_v9  ;;  %v318_v7 = vld [vmem:[%s3813_s1 + $0x938] sm:$0xff]  ;;  %v333_v9 = vld [vmem:[%s3813_s1 + $0x9b0] sm:$0xff] }
  0x80   :  { %1977 = vmatprep.subr.mxu0 %v234_v10  ;;  %2010 = vmatprep.subr.mxu1 %v267_v11  ;;  %v284_v10 = vld [vmem:[%s3813_s1 + $0x828] sm:$0xff]  ;;  %v317_v11 = vld [vmem:[%s3813_s1 + $0x930] sm:$0xff] }
  0x81   :  { %1978 = vmatpush3.msra.mxu0 %v218_v12  ;;  %2011 = vmatpush3.msra.mxu1 %v251_v13  ;;  %v299_v12 = vld [vmem:[%s3813_s1 + $0x8a0] sm:$0xff]  ;;  %v332_v13 = vld [vmem:[%s3813_s1 + $0x9a8] sm:$0xff] }
  0x82   :  { %1979 = vmatprep.subr.mxu0 %v233_v14  ;;  %2012 = vmatprep.subr.mxu1 %v266_v16  ;;  %v283_v14 = vld [vmem:[%s3813_s1 + $0x820] sm:$0xff]  ;;  %v316_v16 = vld [vmem:[%s3813_s1 + $0x928] sm:$0xff] }
  0x83   :  { %1980 = vmatpush3.msra.mxu0 %v217_v17  ;;  %2013 = vmatpush3.msra.mxu1 %v250_v19  ;;  %v298_v17 = vld [vmem:[%s3813_s1 + $0x898] sm:$0xff] }
  0x84   :  { %1981 = vmatprep.subr.mxu0 %v232_v20  ;;  %2014 = vmatprep.subr.mxu1 %v265_v21  ;;  %v282_v19 = vld [vmem:[%s3813_s1 + $0x818] sm:$0xff]  ;;  %v315_v20 = vld [vmem:[%s3813_s1 + $0x920] sm:$0xff]  ;;  %v297_v21 = vld [vmem:[%s3813_s1 + $0x890] sm:$0xff] }
  0x85   :  { %1982 = vmatpush3.msra.mxu0 %v216_v22  ;;  %2015 = vmatpush3.msra.mxu1 %v249_v23  ;;  %v586_v22 = vcombine.high %v19_v15, %v19_v15  ;;  %v330_v23 = vld [vmem:[%s3813_s1 + $0x998] sm:$0xff] }
  0x86   :  { %1983 = vmatprep.subr.mxu0 %v231_v24  ;;  %2016 = vmatprep.subr.mxu1 %v264_v26  ;;  %v281_v24 = vld [vmem:[%s3813_s1 + $0x810] sm:$0xff]  ;;  %v314_v26 = vld [vmem:[%s3813_s1 + $0x918] sm:$0xff] }
  0x87   :  { %1984 = vmatpush3.msra.mxu0 %v215_v27  ;;  %1159 = vmatprep.mubr.f32.mxu0 %v584_v28  ;;  %v296_v27 = vld [vmem:[%s3813_s1 + $0x888] sm:$0xff]  ;;  %v329_v28 = vld [vmem:[%s3813_s1 + $0x990] sm:$0xff] }
  0x88   :  { %2017 = vmatpush3.msra.mxu1 %v248_v29  ;;  %1160 = vmatmul.mubr.f32.vlgmr.msra.gmra.mxu0 %v576_v18  ;;  %v331_v18 = vld [vmem:[%s3813_s1 + $0x9a0] sm:$0xff]  ;;  %v280_v29 = vld [vmem:[%s3813_s1 + $0x808] sm:$0xff] }
  0x89   :  { %2018 = vmatprep.subr.mxu1 %v263_v30  ;;  %2023 = vmatprep.subr.mxu0 %v310_v31  ;;  %v313_v30 = vld [vmem:[%s3813_s1 + $0x910] sm:$0xff]  ;;  %v295_v31 = vld [vmem:[%s3813_s1 + $0x880] sm:$0xff] }
  0x8a   :  { %2019 = vmatpush3.msra.mxu1 %v247_v32  ;;  %1229 = vmatprep.mubr.f32.mxu1 %v585_v33  ;;  %v600_v32 = vrot.slane %v586_v22, %v2450_v48 }
  0x8b   :  { %2024 = vmatpush3.msra.mxu0 %v294_v34  ;;  %1230 = vmatmul.mubr.f32.vlgmr.msra.gmra.mxu1 %v583_v25  ;;  %v593_v25 = vrot.slane %v19_v15, %v2450_v48 }
  0x8c   :  { %2025 = vmatprep.subr.mxu0 %v309_v35  ;;  %2058 = vmatprep.subr.mxu1 %v342_v36 }
  0x8d   :  { %2026 = vmatpush3.msra.mxu0 %v293_v37  ;;  %2059 = vmatpush3.msra.mxu1 %v326_v38 }
  0x8e   :  { %2027 = vmatprep.subr.mxu0 %v308_v39  ;;  %2060 = vmatprep.subr.mxu1 %v341_v40 }
  0x8f   :  { %2028 = vmatpush3.msra.mxu0 %v292_v41  ;;  %2061 = vmatpush3.msra.mxu1 %v325_v42 }
  0x90   :  { %2029 = vmatprep.subr.mxu0 %v307_v43  ;;  %2062 = vmatprep.subr.mxu1 %v340_v44 }
  0x91   :  { %2030 = vmatpush3.msra.mxu0 %v291_v45  ;;  %2063 = vmatpush3.msra.mxu1 %v324_v46 }
  0x92   :  { %2031 = vmatprep.subr.mxu0 %v306_v47  ;;  %2064 = vmatprep.subr.mxu1 %v339_v49 }
  0x93   :  { %2032 = vmatpush3.msra.mxu0 %v290_v50  ;;  %2065 = vmatpush3.msra.mxu1 %v323_v51 }
  0x94   :  { %2033 = vmatprep.subr.mxu0 %v305_v52  ;;  %2066 = vmatprep.subr.mxu1 %v338_v53 }
  0x95   :  { %2034 = vmatpush3.msra.mxu0 %v289_v54  ;;  %2067 = vmatpush3.msra.mxu1 %v322_v55 }
  0x96   :  { %2035 = vmatprep.subr.mxu0 %v304_v56  ;;  %2068 = vmatprep.subr.mxu1 %v337_v57 }
  0x97   :  { %2036 = vmatpush3.msra.mxu0 %v288_v58  ;;  %2069 = vmatpush3.msra.mxu1 %v321_v59 }
  0x98   :  { %2037 = vmatprep.subr.mxu0 %v303_v60  ;;  %2070 = vmatprep.subr.mxu1 %v336_v61 }
  0x99   :  { %2038 = vmatpush3.msra.mxu0 %v287_v62  ;;  %2071 = vmatpush3.msra.mxu1 %v320_v63 }
  0x9a   :  { %2039 = vmatprep.subr.mxu0 %v302_v0  ;;  %2072 = vmatprep.subr.mxu1 %v335_v1 }
  0x9b   :  { %2040 = vmatpush3.msra.mxu0 %v286_v2  ;;  %2073 = vmatpush3.msra.mxu1 %v319_v3 }
  0x9c   :  { %2041 = vmatprep.subr.mxu0 %v301_v4  ;;  %2074 = vmatprep.subr.mxu1 %v334_v5 }
  0x9d   :  { %2042 = vmatpush3.msra.mxu0 %v285_v6  ;;  %2075 = vmatpush3.msra.mxu1 %v318_v7 }
  0x9e   :  { %2043 = vmatprep.subr.mxu0 %v300_v8  ;;  %2076 = vmatprep.subr.mxu1 %v333_v9 }
  0x9f   :  { %2044 = vmatpush3.msra.mxu0 %v284_v10  ;;  %2077 = vmatpush3.msra.mxu1 %v317_v11 }
  0xa0   :  { %2045 = vmatprep.subr.mxu0 %v299_v12  ;;  %2078 = vmatprep.subr.mxu1 %v332_v13 }
  0xa1   :  { %2046 = vmatpush3.msra.mxu0 %v283_v14  ;;  %2079 = vmatpush3.msra.mxu1 %v316_v16 }
  0xa2   :  { %2047 = vmatprep.subr.mxu0 %v298_v17  ;;  %2080 = vmatprep.subr.mxu1 %v331_v18 }
  0xa3   :  { %2048 = vmatpush3.msra.mxu0 %v282_v19  ;;  %2081 = vmatpush3.msra.mxu1 %v315_v20 }
  0xa4   :  { %2049 = vmatprep.subr.mxu0 %v297_v21  ;;  %2082 = vmatprep.subr.mxu1 %v330_v23 }
  0xa5   :  { %2050 = vmatpush3.msra.mxu0 %v281_v24 }
  0xa6   :  { %8 = vsyncpa [#allocation3], 0  ;;  %2083 = vmatpush3.msra.mxu1 %v314_v26  ;;  %2051 = vmatprep.subr.mxu0 %v296_v27  ;;  %v328_v33 = vld [vmem:[%s3813_s1 + $0x988] sm:$0xff]  ;;  %v279_v34 = vld [vmem:[%s3813_s1 + $0x800] sm:$0xff]  ;;  %v601_v35 = vcombine.high %v593_v25, %v593_v25  ;;  %v602_v40 = vcombine.high %v600_v32, %v600_v32  ;;  %vm1725_vm0 = vcmask 517120  }
  0xa7   :  { %2084 = vmatprep.subr.mxu1 %v329_v28  ;;  %2052 = vmatpush3.msra.mxu0 %v280_v29  ;;  %v312_v36 = vld [vmem:[%s3813_s1 + $0x908] sm:$0xff]  ;;  %v327_v37 = vld [vmem:[%s3813_s1 + $0x980] sm:$0xff]  ;;  %v374_v38 = vld [vmem:[%s3813_s1 + $0xaf8] sm:$0xff] }
  0xa8   :  { %2085 = vmatpush3.msra.mxu1 %v313_v30  ;;  %2053 = vmatprep.subr.mxu0 %v295_v31  ;;  %v311_v39 = vld [vmem:[%s3813_s1 + $0x900] sm:$0xff]  ;;  %v358_v41 = vld [vmem:[%s3813_s1 + $0xa78] sm:$0xff]  ;;  %v373_v42 = vld [vmem:[%s3813_s1 + $0xaf0] sm:$0xff] }
  0xa9   :  { %2086 = vmatprep.subr.mxu1 %v328_v33  ;;  %2054 = vmatpush3.msra.mxu0 %v279_v34  ;;  %v406_v43 = vld [vmem:[%s3813_s1 + $0xbf8] sm:$0xff]  ;;  %v357_v44 = vld [vmem:[%s3813_s1 + $0xa70] sm:$0xff]  ;;  %v372_v46 = vld [vmem:[%s3813_s1 + $0xae8] sm:$0xff] }
  0xaa   :  { %1299 = vmatprep.mubr.f32.mxu0 %v601_v35  ;;  %2087 = vmatpush3.msra.mxu1 %v312_v36  ;;  %v390_v45 = vld [vmem:[%s3813_s1 + $0xb78] sm:$0xff]  ;;  %v405_v47 = vld [vmem:[%s3813_s1 + $0xbf0] sm:$0xff]  ;;  %v356_v49 = vld [vmem:[%s3813_s1 + $0xa68] sm:$0xff] }
  0xab   :  { %1300 = vmatmul.mubr.f32.vlgmr.msra.gmra.mxu0 %v593_v25  ;;  %2088 = vmatprep.subr.mxu1 %v327_v37  ;;  %v389_v50 = vld [vmem:[%s3813_s1 + $0xb70] sm:$0xff]  ;;  %v371_v51 = vld [vmem:[%s3813_s1 + $0xae0] sm:$0xff]  ;;  %v404_v52 = vld [vmem:[%s3813_s1 + $0xbe8] sm:$0xff] }
  0xac   :  { %2093 = vmatprep.subr.mxu0 %v374_v38  ;;  %2089 = vmatpush3.msra.mxu1 %v311_v39  ;;  %v355_v53 = vld [vmem:[%s3813_s1 + $0xa60] sm:$0xff]  ;;  %v388_v54 = vld [vmem:[%s3813_s1 + $0xb68] sm:$0xff]  ;;  %v370_v55 = vld [vmem:[%s3813_s1 + $0xad8] sm:$0xff] }
  0xad   :  { %1369 = vmatprep.mubr.f32.mxu1 %v602_v40  ;;  %2094 = vmatpush3.msra.mxu0 %v358_v41  ;;  %v403_v56 = vld [vmem:[%s3813_s1 + $0xbe0] sm:$0xff]  ;;  %v354_v57 = vld [vmem:[%s3813_s1 + $0xa58] sm:$0xff]  ;;  %v369_v59 = vld [vmem:[%s3813_s1 + $0xad0] sm:$0xff] }
  0xae   :  { %1370 = vmatmul.mubr.f32.vlgmr.msra.gmra.mxu1 %v600_v32  ;;  %2095 = vmatprep.subr.mxu0 %v373_v42  ;;  %v387_v58 = vld [vmem:[%s3813_s1 + $0xb60] sm:$0xff]  ;;  %v402_v60 = vld [vmem:[%s3813_s1 + $0xbd8] sm:$0xff]  ;;  %v353_v61 = vld [vmem:[%s3813_s1 + $0xa50] sm:$0xff] }
  0xaf   :  { %2128 = vmatprep.subr.mxu1 %v406_v43  ;;  %2096 = vmatpush3.msra.mxu0 %v357_v44  ;;  %v386_v62 = vld [vmem:[%s3813_s1 + $0xb58] sm:$0xff]  ;;  %v368_v63 = vld [vmem:[%s3813_s1 + $0xac8] sm:$0xff]  ;;  %v401_v0 = vld [vmem:[%s3813_s1 + $0xbd0] sm:$0xff] }
  0xb0   :  { %2129 = vmatpush3.msra.mxu1 %v390_v45  ;;  %2097 = vmatprep.subr.mxu0 %v372_v46  ;;  %v352_v1 = vld [vmem:[%s3813_s1 + $0xa48] sm:$0xff]  ;;  %v385_v2 = vld [vmem:[%s3813_s1 + $0xb50] sm:$0xff]  ;;  %v367_v3 = vld [vmem:[%s3813_s1 + $0xac0] sm:$0xff] }
  0xb1   :  { %2130 = vmatprep.subr.mxu1 %v405_v47  ;;  %2098 = vmatpush3.msra.mxu0 %v356_v49  ;;  %v400_v4 = vld [vmem:[%s3813_s1 + $0xbc8] sm:$0xff]  ;;  %v351_v5 = vld [vmem:[%s3813_s1 + $0xa40] sm:$0xff]  ;;  %v366_v7 = vld [vmem:[%s3813_s1 + $0xab8] sm:$0xff] }
  0xb2   :  { %2131 = vmatpush3.msra.mxu1 %v389_v50  ;;  %2099 = vmatprep.subr.mxu0 %v371_v51  ;;  %v384_v6 = vld [vmem:[%s3813_s1 + $0xb48] sm:$0xff]  ;;  %v399_v8 = vld [vmem:[%s3813_s1 + $0xbc0] sm:$0xff]  ;;  %v350_v9 = vld [vmem:[%s3813_s1 + $0xa38] sm:$0xff] }
  0xb3   :  { %2132 = vmatprep.subr.mxu1 %v404_v52  ;;  %2100 = vmatpush3.msra.mxu0 %v355_v53  ;;  %v383_v10 = vld [vmem:[%s3813_s1 + $0xb40] sm:$0xff]  ;;  %v365_v11 = vld [vmem:[%s3813_s1 + $0xab0] sm:$0xff]  ;;  %v398_v12 = vld [vmem:[%s3813_s1 + $0xbb8] sm:$0xff] }
  0xb4   :  { %2133 = vmatpush3.msra.mxu1 %v388_v54  ;;  %2101 = vmatprep.subr.mxu0 %v370_v55  ;;  %v349_v13 = vld [vmem:[%s3813_s1 + $0xa30] sm:$0xff]  ;;  %v382_v14 = vld [vmem:[%s3813_s1 + $0xb38] sm:$0xff]  ;;  %v364_v15 = vld [vmem:[%s3813_s1 + $0xaa8] sm:$0xff] }
  0xb5   :  { %2134 = vmatprep.subr.mxu1 %v403_v56  ;;  %2102 = vmatpush3.msra.mxu0 %v354_v57  ;;  %v397_v16 = vld [vmem:[%s3813_s1 + $0xbb0] sm:$0xff]  ;;  %v348_v17 = vld [vmem:[%s3813_s1 + $0xa28] sm:$0xff]  ;;  %v363_v19 = vld [vmem:[%s3813_s1 + $0xaa0] sm:$0xff] }
  0xb6   :  { %2135 = vmatpush3.msra.mxu1 %v387_v58  ;;  %2103 = vmatprep.subr.mxu0 %v369_v59  ;;  %v381_v18 = vld [vmem:[%s3813_s1 + $0xb30] sm:$0xff]  ;;  %v396_v20 = vld [vmem:[%s3813_s1 + $0xba8] sm:$0xff]  ;;  %v347_v21 = vld [vmem:[%s3813_s1 + $0xa20] sm:$0xff] }
  0xb7   :  { %2136 = vmatprep.subr.mxu1 %v402_v60  ;;  %2104 = vmatpush3.msra.mxu0 %v353_v61  ;;  %v20_v22 = vld [vmem:[%s3812_s0 + $0x28] sm:$0xff]  ;;  %v362_v24 = vld [vmem:[%s3813_s1 + $0xa98] sm:$0xff]  ;;  %v395_v25 = vld [vmem:[%s3813_s1 + $0xba0] sm:$0xff] }
  0xb8   :  { %2137 = vmatpush3.msra.mxu1 %v386_v62  ;;  %2105 = vmatprep.subr.mxu0 %v368_v63  ;;  %v380_v23 = vld [vmem:[%s3813_s1 + $0xb28] sm:$0xff]  ;;  %v346_v26 = vld [vmem:[%s3813_s1 + $0xa18] sm:$0xff]  ;;  %v379_v27 = vld [vmem:[%s3813_s1 + $0xb20] sm:$0xff]  ;;  %v603_v29 = vcombine.high %v20_v22, %v20_v22  ;;  %v610_v32 = vrot.slane %v20_v22, %v2450_v48 }
  0xb9   :  { %2138 = vmatprep.subr.mxu1 %v401_v0  ;;  %2106 = vmatpush3.msra.mxu0 %v352_v1  ;;  %v361_v28 = vld [vmem:[%s3813_s1 + $0xa90] sm:$0xff]  ;;  %v394_v30 = vld [vmem:[%s3813_s1 + $0xb98] sm:$0xff]  ;;  %v360_v34 = vld [vmem:[%s3813_s1 + $0xa88] sm:$0xff] }
  0xba   :  { %2139 = vmatpush3.msra.mxu1 %v385_v2  ;;  %2107 = vmatprep.subr.mxu0 %v367_v3  ;;  %v345_v31 = vld [vmem:[%s3813_s1 + $0xa10] sm:$0xff]  ;;  %v378_v33 = vld [vmem:[%s3813_s1 + $0xb18] sm:$0xff]  ;;  %v344_v36 = vld [vmem:[%s3813_s1 + $0xa08] sm:$0xff]  ;;  %v617_v39 = vrot.slane %v603_v29, %v2450_v48  ;;  %v618_v42 = vcombine.high %v610_v32, %v610_v32 }
  0xbb   :  { %2140 = vmatprep.subr.mxu1 %v400_v4  ;;  %2108 = vmatpush3.msra.mxu0 %v351_v5  ;;  %v393_v35 = vld [vmem:[%s3813_s1 + $0xb90] sm:$0xff]  ;;  %v359_v38 = vld [vmem:[%s3813_s1 + $0xa80] sm:$0xff]  ;;  %v392_v40 = vld [vmem:[%s3813_s1 + $0xb88] sm:$0xff] }
  0xbc   :  { %2141 = vmatpush3.msra.mxu1 %v384_v6  ;;  %2109 = vmatprep.subr.mxu0 %v366_v7  ;;  %v377_v37 = vld [vmem:[%s3813_s1 + $0xb10] sm:$0xff]  ;;  %v343_v41 = vld [vmem:[%s3813_s1 + $0xa00] sm:$0xff]  ;;  %v376_v43 = vld [vmem:[%s3813_s1 + $0xb08] sm:$0xff]  ;;  %v619_v47 = vcombine.high %v617_v39, %v617_v39 }
  0xbd   :  { %2142 = vmatprep.subr.mxu1 %v399_v8  ;;  %2110 = vmatpush3.msra.mxu0 %v350_v9  ;;  %v391_v44 = vld [vmem:[%s3813_s1 + $0xb80] sm:$0xff]  ;;  %v438_v45 = vld [vmem:[%s3813_s1 + $0xcf8] sm:$0xff]  ;;  %v437_v50 = vld [vmem:[%s3813_s1 + $0xcf0] sm:$0xff] }
  0xbe   :  { %2143 = vmatpush3.msra.mxu1 %v383_v10  ;;  %2111 = vmatprep.subr.mxu0 %v365_v11  ;;  %v375_v46 = vld [vmem:[%s3813_s1 + $0xb00] sm:$0xff]  ;;  %v422_v49 = vld [vmem:[%s3813_s1 + $0xc78] sm:$0xff]  ;;  %v421_v52 = vld [vmem:[%s3813_s1 + $0xc70] sm:$0xff] }
  0xbf   :  { %2144 = vmatprep.subr.mxu1 %v398_v12  ;;  %2112 = vmatpush3.msra.mxu0 %v349_v13  ;;  %v470_v51 = vld [vmem:[%s3813_s1 + $0xdf8] sm:$0xff]  ;;  %v436_v54 = vld [vmem:[%s3813_s1 + $0xce8] sm:$0xff]  ;;  %v469_v55 = vld [vmem:[%s3813_s1 + $0xdf0] sm:$0xff] }
  0xc0   :  { %2145 = vmatpush3.msra.mxu1 %v382_v14  ;;  %2113 = vmatprep.subr.mxu0 %v364_v15  ;;  %v454_v53 = vld [vmem:[%s3813_s1 + $0xd78] sm:$0xff]  ;;  %v420_v56 = vld [vmem:[%s3813_s1 + $0xc68] sm:$0xff]  ;;  %v453_v57 = vld [vmem:[%s3813_s1 + $0xd70] sm:$0xff] }
  0xc1   :  { %2146 = vmatprep.subr.mxu1 %v397_v16  ;;  %2114 = vmatpush3.msra.mxu0 %v348_v17  ;;  %v435_v58 = vld [vmem:[%s3813_s1 + $0xce0] sm:$0xff]  ;;  %v468_v59 = vld [vmem:[%s3813_s1 + $0xde8] sm:$0xff]  ;;  %v434_v62 = vld [vmem:[%s3813_s1 + $0xcd8] sm:$0xff] }
  0xc2   :  { %2147 = vmatpush3.msra.mxu1 %v381_v18  ;;  %2115 = vmatprep.subr.mxu0 %v363_v19  ;;  %v419_v60 = vld [vmem:[%s3813_s1 + $0xc60] sm:$0xff]  ;;  %v452_v61 = vld [vmem:[%s3813_s1 + $0xd68] sm:$0xff]  ;;  %v418_v0 = vld [vmem:[%s3813_s1 + $0xc58] sm:$0xff] }
  0xc3   :  { %2148 = vmatprep.subr.mxu1 %v396_v20  ;;  %2116 = vmatpush3.msra.mxu0 %v347_v21  ;;  %v467_v63 = vld [vmem:[%s3813_s1 + $0xde0] sm:$0xff]  ;;  %v433_v2 = vld [vmem:[%s3813_s1 + $0xcd0] sm:$0xff]  ;;  %v466_v3 = vld [vmem:[%s3813_s1 + $0xdd8] sm:$0xff] }
  0xc4   :  { %2149 = vmatpush3.msra.mxu1 %v380_v23  ;;  %2117 = vmatprep.subr.mxu0 %v362_v24  ;;  %v451_v1 = vld [vmem:[%s3813_s1 + $0xd60] sm:$0xff]  ;;  %v417_v4 = vld [vmem:[%s3813_s1 + $0xc50] sm:$0xff]  ;;  %v450_v5 = vld [vmem:[%s3813_s1 + $0xd58] sm:$0xff] }
  0xc5   :  { %2150 = vmatprep.subr.mxu1 %v395_v25  ;;  %2118 = vmatpush3.msra.mxu0 %v346_v26  ;;  %v432_v6 = vld [vmem:[%s3813_s1 + $0xcc8] sm:$0xff]  ;;  %v465_v7 = vld [vmem:[%s3813_s1 + $0xdd0] sm:$0xff]  ;;  %v431_v10 = vld [vmem:[%s3813_s1 + $0xcc0] sm:$0xff] }
  0xc6   :  { %2151 = vmatpush3.msra.mxu1 %v379_v27  ;;  %2119 = vmatprep.subr.mxu0 %v361_v28  ;;  %v416_v8 = vld [vmem:[%s3813_s1 + $0xc48] sm:$0xff]  ;;  %v449_v9 = vld [vmem:[%s3813_s1 + $0xd50] sm:$0xff]  ;;  %v415_v12 = vld [vmem:[%s3813_s1 + $0xc40] sm:$0xff] }
  0xc7   :  { %2152 = vmatprep.subr.mxu1 %v394_v30  ;;  %2120 = vmatpush3.msra.mxu0 %v345_v31  ;;  %v464_v11 = vld [vmem:[%s3813_s1 + $0xdc8] sm:$0xff]  ;;  %v430_v14 = vld [vmem:[%s3813_s1 + $0xcb8] sm:$0xff]  ;;  %v463_v15 = vld [vmem:[%s3813_s1 + $0xdc0] sm:$0xff] }
  0xc8   :  { %2153 = vmatpush3.msra.mxu1 %v378_v33  ;;  %2121 = vmatprep.subr.mxu0 %v360_v34  ;;  %v448_v13 = vld [vmem:[%s3813_s1 + $0xd48] sm:$0xff]  ;;  %v414_v16 = vld [vmem:[%s3813_s1 + $0xc38] sm:$0xff]  ;;  %v447_v17 = vld [vmem:[%s3813_s1 + $0xd40] sm:$0xff] }
  0xc9   :  { %2154 = vmatprep.subr.mxu1 %v393_v35  ;;  %2122 = vmatpush3.msra.mxu0 %v344_v36  ;;  %v429_v18 = vld [vmem:[%s3813_s1 + $0xcb0] sm:$0xff]  ;;  %v462_v19 = vld [vmem:[%s3813_s1 + $0xdb8] sm:$0xff]  ;;  %v428_v22 = vld [vmem:[%s3813_s1 + $0xca8] sm:$0xff] }
  0xca   :  { %2155 = vmatpush3.msra.mxu1 %v377_v37  ;;  %2123 = vmatprep.subr.mxu0 %v359_v38  ;;  %v413_v20 = vld [vmem:[%s3813_s1 + $0xc30] sm:$0xff]  ;;  %v446_v21 = vld [vmem:[%s3813_s1 + $0xd38] sm:$0xff]  ;;  %v412_v24 = vld [vmem:[%s3813_s1 + $0xc28] sm:$0xff] }
  0xcb   :  { %2156 = vmatprep.subr.mxu1 %v392_v40  ;;  %2124 = vmatpush3.msra.mxu0 %v343_v41  ;;  %v461_v23 = vld [vmem:[%s3813_s1 + $0xdb0] sm:$0xff]  ;;  %v427_v26 = vld [vmem:[%s3813_s1 + $0xca0] sm:$0xff]  ;;  %v460_v27 = vld [vmem:[%s3813_s1 + $0xda8] sm:$0xff] }
  0xcc   :  { %1439 = vmatprep.mubr.f32.mxu0 %v618_v42  ;;  %2157 = vmatpush3.msra.mxu1 %v376_v43  ;;  %v445_v25 = vld [vmem:[%s3813_s1 + $0xd30] sm:$0xff]  ;;  %v411_v28 = vld [vmem:[%s3813_s1 + $0xc20] sm:$0xff]  ;;  %v444_v30 = vld [vmem:[%s3813_s1 + $0xd28] sm:$0xff] }
  0xcd   :  { %1440 = vmatmul.mubr.f32.vlgmr.msra.gmra.mxu0 %v610_v32  ;;  %2158 = vmatprep.subr.mxu1 %v391_v44  ;;  %v21_v29 = vld [vmem:[%s3812_s0 + $0x30] sm:$0xff]  ;;  %v426_v31 = vld [vmem:[%s3813_s1 + $0xc98] sm:$0xff]  ;;  %v459_v32 = vld [vmem:[%s3813_s1 + $0xda0] sm:$0xff] }
  0xce   :  { %2163 = vmatprep.subr.mxu0 %v438_v45  ;;  %2159 = vmatpush3.msra.mxu1 %v375_v46  ;;  %v410_v33 = vld [vmem:[%s3813_s1 + $0xc18] sm:$0xff]  ;;  %v443_v34 = vld [vmem:[%s3813_s1 + $0xd20] sm:$0xff]  ;;  %v425_v35 = vld [vmem:[%s3813_s1 + $0xc90] sm:$0xff]  ;;  %v620_v36 = vcombine.high %v21_v29, %v21_v29 }
  0xcf   :  { %1509 = vmatprep.mubr.f32.mxu1 %v619_v47  ;;  %2164 = vmatpush3.msra.mxu0 %v422_v49  ;;  %v458_v37 = vld [vmem:[%s3813_s1 + $0xd98] sm:$0xff]  ;;  %v409_v38 = vld [vmem:[%s3813_s1 + $0xc10] sm:$0xff]  ;;  %v424_v41 = vld [vmem:[%s3813_s1 + $0xc88] sm:$0xff] }
  0xd0   :  { %1510 = vmatmul.mubr.f32.vlgmr.msra.gmra.mxu1 %v617_v39  ;;  %2165 = vmatprep.subr.mxu0 %v437_v50  ;;  %v627_v39 = vrot.slane %v21_v29, %v2450_v48  ;;  %v442_v40 = vld [vmem:[%s3813_s1 + $0xd18] sm:$0xff]  ;;  %v457_v42 = vld [vmem:[%s3813_s1 + $0xd90] sm:$0xff]  ;;  %v408_v43 = vld [vmem:[%s3813_s1 + $0xc08] sm:$0xff]  ;;  %v634_v46 = vrot.slane %v620_v36, %v2450_v48 }
  0xd1   :  { %2198 = vmatprep.subr.mxu1 %v470_v51  ;;  %2166 = vmatpush3.msra.mxu0 %v421_v52  ;;  %v441_v44 = vld [vmem:[%s3813_s1 + $0xd10] sm:$0xff]  ;;  %v423_v45 = vld [vmem:[%s3813_s1 + $0xc80] sm:$0xff]  ;;  %v456_v47 = vld [vmem:[%s3813_s1 + $0xd88] sm:$0xff] }
  0xd2   :  { %2199 = vmatpush3.msra.mxu1 %v454_v53  ;;  %2167 = vmatprep.subr.mxu0 %v436_v54  ;;  %v407_v49 = vld [vmem:[%s3813_s1 + $0xc00] sm:$0xff]  ;;  %v635_v50 = vcombine.high %v627_v39, %v627_v39  ;;  %v440_v51 = vld [vmem:[%s3813_s1 + $0xd08] sm:$0xff]  ;;  %v3702_v52 = vld.sshfl [vmem:[%s3812_s0 + $0x38] sm:$0x33 pattern:$0x76325410] }
  0xd3   :  { %2200 = vmatprep.subr.mxu1 %v469_v55  ;;  %2168 = vmatpush3.msra.mxu0 %v420_v56  ;;  %v455_v48 = vld [vmem:[%s3813_s1 + $0xd80] sm:$0xff]  ;;  %v502_v53 = vld [vmem:[%s3813_s1 + $0xef8] sm:$0xff]  ;;  %v636_v55 = vcombine.high %v634_v46, %v634_v46 }
  0xd4   :  { %2201 = vmatpush3.msra.mxu1 %v453_v57  ;;  %2169 = vmatprep.subr.mxu0 %v435_v58  ;;  %v439_v54 = vld [vmem:[%s3813_s1 + $0xd00] sm:$0xff]  ;;  %v486_v56 = vld [vmem:[%s3813_s1 + $0xe78] sm:$0xff]  ;;  %v501_v57 = vld [vmem:[%s3813_s1 + $0xef0] sm:$0xff]  ;;  %v644_v58 = vcombine.high %v3702_v52, %v3702_v52 }
  0xd5   :  { %2202 = vmatprep.subr.mxu1 %v468_v59  ;;  %2170 = vmatpush3.msra.mxu0 %v419_v60  ;;  %v485_v59 = vld [vmem:[%s3813_s1 + $0xe70] sm:$0xff]  ;;  %v500_v60 = vld [vmem:[%s3813_s1 + $0xee8] sm:$0xff]  ;;  %v1741_v29 = vld [vmem:[%s3814_s2] ss:$0 sm:$0xff] }
  0xd6   :  { %2203 = vmatpush3.msra.mxu1 %v452_v61  ;;  %2171 = vmatprep.subr.mxu0 %v434_v62  ;;  %v484_v61 = vld [vmem:[%s3813_s1 + $0xe68] sm:$0xff]  ;;  %v499_v62 = vld [vmem:[%s3813_s1 + $0xee0] sm:$0xff] }
  0xd7   :  { %2204 = vmatprep.subr.mxu1 %v467_v63  ;;  %2172 = vmatpush3.msra.mxu0 %v418_v0  ;;  %v483_v63 = vld [vmem:[%s3813_s1 + $0xe60] sm:$0xff]  ;;  %v498_v0 = vld [vmem:[%s3813_s1 + $0xed8] sm:$0xff] }
  0xd8   :  { %2205 = vmatpush3.msra.mxu1 %v451_v1  ;;  %2173 = vmatprep.subr.mxu0 %v433_v2  ;;  %v482_v1 = vld [vmem:[%s3813_s1 + $0xe58] sm:$0xff]  ;;  %v497_v2 = vld [vmem:[%s3813_s1 + $0xed0] sm:$0xff] }
  0xd9   :  { %2206 = vmatprep.subr.mxu1 %v466_v3  ;;  %2174 = vmatpush3.msra.mxu0 %v417_v4  ;;  %v481_v3 = vld [vmem:[%s3813_s1 + $0xe50] sm:$0xff]  ;;  %v496_v4 = vld [vmem:[%s3813_s1 + $0xec8] sm:$0xff] }
  0xda   :  { %2207 = vmatpush3.msra.mxu1 %v450_v5  ;;  %2175 = vmatprep.subr.mxu0 %v432_v6  ;;  %v480_v5 = vld [vmem:[%s3813_s1 + $0xe48] sm:$0xff]  ;;  %v495_v6 = vld [vmem:[%s3813_s1 + $0xec0] sm:$0xff] }
  0xdb   :  { %2208 = vmatprep.subr.mxu1 %v465_v7  ;;  %2176 = vmatpush3.msra.mxu0 %v416_v8  ;;  %v479_v7 = vld [vmem:[%s3813_s1 + $0xe40] sm:$0xff]  ;;  %v494_v8 = vld [vmem:[%s3813_s1 + $0xeb8] sm:$0xff] }
  0xdc   :  { %2209 = vmatpush3.msra.mxu1 %v449_v9  ;;  %2177 = vmatprep.subr.mxu0 %v431_v10  ;;  %v478_v9 = vld [vmem:[%s3813_s1 + $0xe38] sm:$0xff]  ;;  %v493_v10 = vld [vmem:[%s3813_s1 + $0xeb0] sm:$0xff] }
  0xdd   :  { %2210 = vmatprep.subr.mxu1 %v464_v11  ;;  %2178 = vmatpush3.msra.mxu0 %v415_v12  ;;  %v477_v11 = vld [vmem:[%s3813_s1 + $0xe30] sm:$0xff]  ;;  %v492_v12 = vld [vmem:[%s3813_s1 + $0xea8] sm:$0xff] }
  0xde   :  { %2211 = vmatpush3.msra.mxu1 %v448_v13  ;;  %2179 = vmatprep.subr.mxu0 %v430_v14  ;;  %v476_v13 = vld [vmem:[%s3813_s1 + $0xe28] sm:$0xff]  ;;  %v491_v14 = vld [vmem:[%s3813_s1 + $0xea0] sm:$0xff] }
  0xdf   :  { %2212 = vmatprep.subr.mxu1 %v463_v15  ;;  %2180 = vmatpush3.msra.mxu0 %v414_v16  ;;  %v475_v15 = vld [vmem:[%s3813_s1 + $0xe20] sm:$0xff]  ;;  %v490_v16 = vld [vmem:[%s3813_s1 + $0xe98] sm:$0xff] }
  0xe0   :  { %2213 = vmatpush3.msra.mxu1 %v447_v17  ;;  %2181 = vmatprep.subr.mxu0 %v429_v18  ;;  %v474_v17 = vld [vmem:[%s3813_s1 + $0xe18] sm:$0xff]  ;;  %v489_v18 = vld [vmem:[%s3813_s1 + $0xe90] sm:$0xff] }
  0xe1   :  { %2214 = vmatprep.subr.mxu1 %v462_v19  ;;  %2182 = vmatpush3.msra.mxu0 %v413_v20  ;;  %v473_v19 = vld [vmem:[%s3813_s1 + $0xe10] sm:$0xff]  ;;  %v488_v20 = vld [vmem:[%s3813_s1 + $0xe88] sm:$0xff] }
  0xe2   :  { %2215 = vmatpush3.msra.mxu1 %v446_v21  ;;  %2183 = vmatprep.subr.mxu0 %v428_v22  ;;  %v472_v21 = vld [vmem:[%s3813_s1 + $0xe08] sm:$0xff]  ;;  %v487_v22 = vld [vmem:[%s3813_s1 + $0xe80] sm:$0xff] }
  0xe3   :  { %2216 = vmatprep.subr.mxu1 %v461_v23  ;;  %2184 = vmatpush3.msra.mxu0 %v412_v24  ;;  %v471_v23 = vld [vmem:[%s3813_s1 + $0xe00] sm:$0xff]  ;;  %v1775_v24 = vpop.f32.mrf.mxu0  ;;  %s2300_s1 = smov [#allocation2]  }
  0xe4   :  { %2217 = vmatpush3.msra.mxu1 %v445_v25  ;;  %2185 = vmatprep.subr.mxu0 %v427_v26  ;;  %s1733_s2 = sshll.u32 %s2300_s1, 4  ;;  %s1734_s2 = int_to_ptr.vmem [resolvable:$true] %s1733_s2 }
  0xe5   :  { %2218 = vmatprep.subr.mxu1 %v460_v27  ;;  %2186 = vmatpush3.msra.mxu0 %v411_v28  ;;  %v1776_v25 = vpop.f32.mrf.mxu0  ;;  %v1810_v26 = vpop.f32.mrf.mxu1  ;;  %s2277_s15 = scalar_lea.vmem %s1734_s2, 32  ;;  %p2282_p1 = scmp.lt.s32.totalorder %s1734_s2, %s1734_s2 }
  0xe6   :  { %2219 = vmatpush3.msra.mxu1 %v444_v30  ;;  %2187 = vmatprep.subr.mxu0 %v426_v31  ;;  %v1777_v28 = vadd.f32 %v1776_v25, %v1775_v24  ;;  %p2278_p0 = scmp.ne.s32.totalorder %s1734_s2, %s2277_s15  ;;  %p2283_p2 = scmp.lt.s32.totalorder %s2277_s15, %s2277_s15 }
  0xe7   :  { %2220 = vmatprep.subr.mxu1 %v459_v32  ;;  %2188 = vmatpush3.msra.mxu0 %v410_v33  ;;  %v1811_v30 = vpop.f32.mrf.mxu1 }
  0xe8   :  { %2221 = vmatpush3.msra.mxu1 %v443_v34  ;;  %2189 = vmatprep.subr.mxu0 %v425_v35  ;;  %v742_v33 = vadd.f32 %v1777_v28, %v1741_v29  ;;  %v1812_v34 = vadd.f32 %v1811_v30, %v1810_v26  ;;  %p2284_p3 = por %p2283_p2, %p2282_p1 }
  0xe9   :  { %2222 = vmatprep.subr.mxu1 %v458_v37  ;;  %2190 = vmatpush3.msra.mxu0 %v409_v38 }
  0xea   :  { %2223 = vmatpush3.msra.mxu1 %v442_v40  ;;  %2191 = vmatprep.subr.mxu0 %v424_v41  ;;  %v812_v38 = vadd.f32 %v1812_v34, %v742_v33  ;;  %p2285_p4 = pnand %p2284_p3, %p2278_p0 }
  0xeb   :  { %2224 = vmatprep.subr.mxu1 %v457_v42  ;;  %2192 = vmatpush3.msra.mxu0 %v408_v43 }
  0xec   :  { %2225 = vmatpush3.msra.mxu1 %v441_v44  ;;  %2193 = vmatprep.subr.mxu0 %v423_v45 }
  0xed   :  { %2226 = vmatprep.subr.mxu1 %v456_v47  ;;  %2194 = vmatpush3.msra.mxu0 %v407_v49 }
  0xee   :  { %1579 = vmatprep.mubr.f32.mxu0 %v635_v50  ;;  %2227 = vmatpush3.msra.mxu1 %v440_v51 }
  0xef   :  { %1580 = vmatmul.mubr.f32.vlgmr.msra.gmra.mxu0 %v627_v39  ;;  %2228 = vmatprep.subr.mxu1 %v455_v48 }
  0xf0   :  { %2233 = vmatprep.subr.mxu0 %v502_v53  ;;  %2229 = vmatpush3.msra.mxu1 %v439_v54 }
  0xf1   :  { %1649 = vmatprep.mubr.f32.mxu1 %v636_v55  ;;  %2234 = vmatpush3.msra.mxu0 %v486_v56 }
  0xf2   :  { %1650 = vmatmul.mubr.f32.vlgmr.msra.gmra.mxu1 %v634_v46  ;;  %2235 = vmatprep.subr.mxu0 %v501_v57 }
  0xf3   :  { %2236 = vmatpush3.msra.mxu0 %v485_v59  ;;  %1719 = vmatprep.mubr.f32.mxu0 %v644_v58 }
  0xf4   :  { %2237 = vmatprep.subr.mxu0 %v500_v60 }
  0xf5   :  { %2238 = vmatpush3.msra.mxu0 %v484_v61 }
  0xf6   :  { %2239 = vmatprep.subr.mxu0 %v499_v62 }
  0xf7   :  { %2240 = vmatpush3.msra.mxu0 %v483_v63 }
  0xf8   :  { %2241 = vmatprep.subr.mxu0 %v498_v0 }
  0xf9   :  { %2242 = vmatpush3.msra.mxu0 %v482_v1 }
  0xfa   :  { %2243 = vmatprep.subr.mxu0 %v497_v2 }
  0xfb   :  { %2244 = vmatpush3.msra.mxu0 %v481_v3 }
  0xfc   :  { %2245 = vmatprep.subr.mxu0 %v496_v4 }
  0xfd   :  { %2246 = vmatpush3.msra.mxu0 %v480_v5 }
  0xfe   :  { %2247 = vmatprep.subr.mxu0 %v495_v6 }
  0xff   :  { %2248 = vmatpush3.msra.mxu0 %v479_v7 }
 0x100   :  { %2249 = vmatprep.subr.mxu0 %v494_v8 }
 0x101   :  { %2250 = vmatpush3.msra.mxu0 %v478_v9 }
 0x102   :  { %2251 = vmatprep.subr.mxu0 %v493_v10 }
 0x103   :  { %2252 = vmatpush3.msra.mxu0 %v477_v11 }
 0x104   :  { %2253 = vmatprep.subr.mxu0 %v492_v12  ;;  %v1845_v27 = vpop.f32.mrf.mxu0 }
 0x105   :  { %2254 = vmatpush3.msra.mxu0 %v476_v13 }
 0x106   :  { %2255 = vmatprep.subr.mxu0 %v491_v14  ;;  %v1846_v31 = vpop.f32.mrf.mxu0 }
 0x107   :  { %2256 = vmatpush3.msra.mxu0 %v475_v15  ;;  %v1880_v32 = vpop.f32.mrf.mxu1  ;;  %v1847_v36 = vadd.f32 %v1846_v31, %v1845_v27 }
 0x108   :  { %2257 = vmatprep.subr.mxu0 %v490_v16 }
 0x109   :  { %2258 = vmatpush3.msra.mxu0 %v474_v17  ;;  %v1881_v37 = vpop.f32.mrf.mxu1  ;;  %v882_v41 = vadd.f32 %v1847_v36, %v812_v38 }
 0x10a   :  { %2259 = vmatprep.subr.mxu0 %v489_v18  ;;  %v1882_v42 = vadd.f32 %v1881_v37, %v1880_v32 }
 0x10b   :  { %2260 = vmatpush3.msra.mxu0 %v473_v19 }
 0x10c   :  { %2261 = vmatprep.subr.mxu0 %v488_v20  ;;  %v952_v46 = vadd.f32 %v1882_v42, %v882_v41 }
 0x10d   :  { %2262 = vmatpush3.msra.mxu0 %v472_v21 }
 0x10e   :  { %2263 = vmatprep.subr.mxu0 %v487_v22 }
 0x10f   :  { %2264 = vmatpush3.msra.mxu0 %v471_v23 }
 0x110   :  { %1720 = vmatmul.mubr.f32.vlgmr.msra.gmra.mxu0 %v3702_v52 }
 0x126   :  { %v1915_v35 = vpop.f32.mrf.mxu0 }
 0x128   :  { %v1916_v39 = vpop.f32.mrf.mxu0 }
 0x129   :  { %v1950_v40 = vpop.f32.mrf.mxu1  ;;  %v1917_v44 = vadd.f32 %v1916_v39, %v1915_v35 }
 0x12b   :  { %v1951_v45 = vpop.f32.mrf.mxu1  ;;  %v1022_v50 = vadd.f32 %v1917_v44, %v952_v46 }
 0x12c   :  { %v1952_v51 = vadd.f32 %v1951_v45, %v1950_v40 }
 0x12e   :  { %v1092_v54 = vadd.f32 %v1952_v51, %v1022_v50 }
 0x148   :  { %v1985_v43 = vpop.f32.mrf.mxu0 }
 0x14a   :  { %v1986_v47 = vpop.f32.mrf.mxu0 }
 0x14b   :  { %v2020_v49 = vpop.f32.mrf.mxu1  ;;  %v1987_v52 = vadd.f32 %v1986_v47, %v1985_v43 }
 0x14d   :  { %v2021_v53 = vpop.f32.mrf.mxu1  ;;  %v1162_v57 = vadd.f32 %v1987_v52, %v1092_v54 }
 0x14e   :  { %v2022_v58 = vadd.f32 %v2021_v53, %v2020_v49 }
 0x150   :  { %v1232_v62 = vadd.f32 %v2022_v58, %v1162_v57 }
 0x16b   :  { %v2055_v48 = vpop.f32.mrf.mxu0 }
 0x16d   :  { %v2056_v55 = vpop.f32.mrf.mxu0 }
 0x16e   :  { %v2090_v56 = vpop.f32.mrf.mxu1  ;;  %v2057_v60 = vadd.f32 %v2056_v55, %v2055_v48 }
 0x170   :  { %v2091_v61 = vpop.f32.mrf.mxu1  ;;  %v1302_v1 = vadd.f32 %v2057_v60, %v1232_v62 }
 0x171   :  { %v2092_v2 = vadd.f32 %v2091_v61, %v2090_v56 }
 0x173   :  { %v1372_v6 = vadd.f32 %v2092_v2, %v1302_v1 }
 0x18d   :  { %v2125_v59 = vpop.f32.mrf.mxu0 }
 0x18f   :  { %v2126_v63 = vpop.f32.mrf.mxu0 }
 0x190   :  { %v2160_v0 = vpop.f32.mrf.mxu1  ;;  %v2127_v4 = vadd.f32 %v2126_v63, %v2125_v59 }
 0x192   :  { %v2161_v5 = vpop.f32.mrf.mxu1  ;;  %v1442_v9 = vadd.f32 %v2127_v4, %v1372_v6 }
 0x193   :  { %v2162_v10 = vadd.f32 %v2161_v5, %v2160_v0 }
 0x195   :  { %v1512_v13 = vadd.f32 %v2162_v10, %v1442_v9 }
 0x1af   :  { %v2195_v3 = vpop.f32.mrf.mxu0 }
 0x1b1   :  { %v2196_v7 = vpop.f32.mrf.mxu0 }
 0x1b2   :  { %v2230_v8 = vpop.f32.mrf.mxu1  ;;  %v2197_v11 = vadd.f32 %v2196_v7, %v2195_v3 }
 0x1b4   :  { %v2231_v12 = vpop.f32.mrf.mxu1  ;;  %v1582_v14 = vadd.f32 %v2197_v11, %v1512_v13 }
 0x1b5   :  { %v2232_v15 = vadd.f32 %v2231_v12, %v2230_v8 }
 0x1b7   :  { %v1652_v18 = vadd.f32 %v2232_v15, %v1582_v14 }
 0x1d0   :  { %v2265_v16 = vpop.f32.mrf.mxu0 }
 0x1d2   :  { %v2266_v17 = vpop.f32.mrf.mxu0 }
 0x1d3   :  { %v2267_v19 = vadd.f32 %v2266_v17, %v2265_v16 }
 0x1d5   :  { %v1722_v20 = vadd.f32 %v2267_v19, %v1652_v18 }
 0x1d7   :  { %1726 = vst.msk [vmem:[#allocation2] sm:$0x3] %vm1725_vm0, %v1722_v20 }
 0x1d8   :  { %2288 = shalt.err (!%p2285_p4)
}
 0x1d9   :  { %1736 = dma.vmem_to_hbm [thread:$0]  %s1734_s2, 32, %s3815_s3, [#allocation3]  }
 0x1da   :  { %2297 = dma.done.wait [#allocation3], 32  }
 0x1db   :  { %2298 = vsyncadd [#allocation3], 4294967264 }
 0x1dc   :  { %1740 = vsyncpa [#allocation3], 1 }

</bundles_post_ra>
